<compile_context>
chip_gen: v6e
topology: v6e:2x2x1
jax: 0.10.0
libtpu: 0.0.40
codegen_flags: <defaults>
</compile_context>

<pallas_src>
import functools

import jax
import jax.numpy as jnp
from jax.experimental import pallas as pl
from jax.experimental.pallas import tpu as pltpu

# ----- model hyper-parameters (VanillaNeRF.__init__ defaults) -----
D = 8
W = 256
INPUT_CH = 3
OUTPUT_CH = 4
# skips = []  -> no concat branch in the forward pass

IN_PAD = 8        # pad layer-0 input features 3 -> 8 (clean sublane shape)
OUT_MM_PAD = 128  # output_linear weight padded to 128 cols for a clean MXU shape
ROW_ALIGN = 256   # row-tile granularity


def _nerf_kernel(x_ref, w0_ref, b0_ref, wh_ref, bh_ref, wo_ref, bo_ref, out_ref):
    """One tile of rows through the whole MLP.

    x_ref  : [TN, IN_PAD]        bf16  (zero-padded input)
    w0_ref : [IN_PAD, W]         bf16  (first pts_linear, transposed, zero-padded rows)
    b0_ref : [1, W]              ew    (ew = bf16 on v6e/v7x, f32 on v5e)
    wh_ref : [D-1, W, W]         bf16  (remaining pts_linears, transposed)
    bh_ref : [D-1, 1, W]         ew
    wo_ref : [W, OUT_MM_PAD]     bf16  (output_linear, transposed, zero-padded cols)
    bo_ref : [1, OUT_MM_PAD]     f32
    out_ref: [TN, OUTPUT_CH]     f32   (only the real 4 output columns are stored)
    """
    bf16 = jnp.bfloat16
    ew = b0_ref.dtype  # elementwise dtype: bf16 (v6e/v7x) or f32 (v5e)

    # layer 0: relu(x @ W0 + b0)   (bf16 MXU, f32 accumulate)
    acc = jnp.dot(x_ref[...], w0_ref[...], preferred_element_type=jnp.float32)
    h = jnp.maximum(acc.astype(ew) + b0_ref[...], 0.0).astype(bf16)

    # layers 1..D-1 (static unroll; weights indexed with a Python int)
    for i in range(D - 1):
        acc = jnp.dot(h, wh_ref[i], preferred_element_type=jnp.float32)
        h = jnp.maximum(acc.astype(ew) + bh_ref[i], 0.0).astype(bf16)

    # output_linear (no activation); matmul at a clean 128-col shape, keep the
    # final bias-add in f32, store only the 4 real columns (16 B/row to HBM).
    out = jnp.dot(h, wo_ref[...], preferred_element_type=jnp.float32) + bo_ref[...]
    out_ref[...] = out[:, :OUTPUT_CH].astype(out_ref.dtype)


@functools.partial(jax.jit, static_argnames=("tile_n", "bf16_elementwise"))
def vanilla_nerf_forward(x, w0, b0, wh, bh, wo, bo, *, tile_n=2048,
                         bf16_elementwise=True):
    """x: [N, INPUT_CH] f32, params in PyTorch-equivalent (transposed) f32 shapes.

    Returns [N, OUTPUT_CH] f32.
    """
    n, in_ch = x.shape
    assert in_ch == INPUT_CH

    ew = jnp.bfloat16 if bf16_elementwise else jnp.float32

    # ---- static tile selection ----
    # Big tiles amortize the ~0.35us/step pipeline overhead and per-layer MXU
    # weight reload, but keep >= 2 grid steps when N allows so both v7x
    # TensorCores get work, and don't over-pad tiny batches.
    max_useful = pl.cdiv(n, 2 * ROW_ALIGN) * ROW_ALIGN
    tile = max(ROW_ALIGN, min(tile_n, max_useful))
    n_pad = pl.cdiv(n, tile) * tile
    grid = (n_pad // tile,)

    # ---- wrapper-side padding / dtype prep (all zero-padding => exact math) ----
    x_p = jnp.pad(x, ((0, n_pad - n), (0, IN_PAD - INPUT_CH))).astype(jnp.bfloat16)

    w0_p = jnp.pad(w0, ((0, IN_PAD - INPUT_CH), (0, 0))).astype(jnp.bfloat16)      # [IN_PAD, W]
    b0_p = b0.astype(ew)                                                           # [1, W]
    wh_p = wh.astype(jnp.bfloat16)                                                 # [D-1, W, W]
    bh_p = bh.reshape(D - 1, 1, W).astype(ew)                                      # [D-1, 1, W]
    wo_p = jnp.pad(wo, ((0, 0), (0, OUT_MM_PAD - OUTPUT_CH))).astype(jnp.bfloat16) # [W, 128]
    bo_p = jnp.pad(bo, ((0, 0), (0, OUT_MM_PAD - OUTPUT_CH)))                      # [1, 128] f32

    # Weights/biases are small enough to live fully in VMEM; constant index_map
    # means they are fetched once (not re-DMA'd per grid step).
    full = lambda shape: pl.BlockSpec(shape, lambda i: (0,) * len(shape))

    flops = 2 * n_pad * (IN_PAD * W + (D - 1) * W * W + W * OUT_MM_PAD)
    bytes_accessed = (
        x_p.size * 2
        + w0_p.size * 2 + wh_p.size * 2 + wo_p.size * 2
        + b0_p.size * b0_p.dtype.itemsize
        + bh_p.size * bh_p.dtype.itemsize
        + bo_p.size * 4
        + n_pad * OUTPUT_CH * 4
    )

    out = pl.pallas_call(
        _nerf_kernel,
        out_shape=jax.ShapeDtypeStruct((n_pad, OUTPUT_CH), jnp.float32),
        grid_spec=pltpu.PrefetchScalarGridSpec(
            num_scalar_prefetch=0,
            grid=grid,
            in_specs=[
                pl.BlockSpec((tile, IN_PAD), lambda i: (i, 0)),     # x tile
                full((IN_PAD, W)),                                  # w0
                full((1, W)),                                       # b0
                full((D - 1, W, W)),                                # wh
                full((D - 1, 1, W)),                                # bh
                full((W, OUT_MM_PAD)),                              # wo
                full((1, OUT_MM_PAD)),                              # bo
            ],
            out_specs=pl.BlockSpec((tile, OUTPUT_CH), lambda i: (i, 0)),
        ),
        compiler_params=pltpu.CompilerParams(
            dimension_semantics=("parallel",),
            vmem_limit_bytes=48 * 1024 * 1024,   # > 16/32 MiB defaults, < v7x 64 MiB
        ),
        cost_estimate=pl.CostEstimate(
            flops=flops, transcendentals=0, bytes_accessed=bytes_accessed),
    )(x_p, w0_p, b0_p, wh_p, bh_p, wo_p, bo_p)

    # strip row padding only (padded rows hold garbage relu(b) chains; never
    # reduce over the raw [n_pad, 4] buffer without this slice)
    return out[:n] if n_pad != n else out


def init_params(key):
    """Deterministic synthetic init (uniform +-1/sqrt(fan_in), like nn.Linear)."""
    ks = jax.random.split(key, 4)

    def lin(k, fan_in, fan_out):
        kw, kb = jax.random.split(k)
        bound = 1.0 / jnp.sqrt(jnp.float32(fan_in))
        w = jax.random.uniform(kw, (fan_in, fan_out), jnp.float32, -bound, bound)
        b = jax.random.uniform(kb, (1, fan_out), jnp.float32, -bound, bound)
        return w, b

    w0, b0 = lin(ks[0], INPUT_CH, W)

    hk = jax.random.split(ks[1], D - 1)
    whs, bhs = [], []
    for i in range(D - 1):
        w, b = lin(hk[i], W, W)
        whs.append(w)
        bhs.append(b[0])
    wh = jnp.stack(whs, axis=0)          # [D-1, W, W]
    bh = jnp.stack(bhs, axis=0)          # [D-1, W]

    wo, bo = lin(ks[2], W, OUTPUT_CH)
    return w0, b0, wh, bh, wo, bo


def reference_forward(x, w0, b0, wh, bh, wo, bo, *, bf16_elementwise=True):
    """Pure-JAX reference mirroring the PyTorch forward, with the same
    bf16-matmul / f32-accumulation (and matching elementwise dtype) numerics
    as the kernel."""
    bf16 = jnp.bfloat16
    ew = bf16 if bf16_elementwise else jnp.float32
    h = x.astype(bf16)
    acc = jnp.dot(h, w0.astype(bf16), preferred_element_type=jnp.float32)
    h = jnp.maximum(acc.astype(ew) + b0.astype(ew), 0.0).astype(bf16)
    for i in range(D - 1):
        acc = jnp.dot(h, wh[i].astype(bf16), preferred_element_type=jnp.float32)
        h = jnp.maximum(acc.astype(ew) + bh[i][None, :].astype(ew), 0.0).astype(bf16)
    return jnp.dot(h, wo.astype(bf16), preferred_element_type=jnp.float32) + bo


if __name__ == "__main__":
    key = jax.random.PRNGKey(0)
    k_x, k_p = jax.random.split(key)

    # small batch of sample points; N not a multiple of the row tile to
    # exercise the padding path
    N = 500
    x = jax.random.normal(k_x, (N, INPUT_CH), jnp.float32)

    params = init_params(k_p)

    # bf16 elementwise only where the VPU supports it (v6e / v7x); f32 on v5e
    # and older so the kernel never asks for unsupported bf16 VALU ops.
    kind = jax.devices()[0].device_kind.lower()
    use_bf16_ew = ("v6" in kind) or ("v7" in kind)

    out = vanilla_nerf_forward(x, *params, tile_n=2048,
                               bf16_elementwise=use_bf16_ew)
    out = jax.block_until_ready(out)

    ref = reference_forward(x, *params, bf16_elementwise=use_bf16_ew)
    assert out.shape == (N, OUTPUT_CH)
    assert jnp.allclose(out, ref, atol=2e-2, rtol=2e-2), "mismatch vs reference"

    print("KERNEL_OK")
</pallas_src>

<mosaic_0001>
module attributes {stable_mosaic.version = 11 : i64} {
  func.func @_nerf_kernel(%arg0: i32, %arg1: memref<256x8xbf16, #tpu.memory_space<vmem>>, %arg2: memref<8x256xbf16, #tpu.memory_space<vmem>>, %arg3: memref<1x256xf32, #tpu.memory_space<vmem>>, %arg4: memref<7x256x256xbf16, #tpu.memory_space<vmem>>, %arg5: memref<7x1x256xf32, #tpu.memory_space<vmem>>, %arg6: memref<256x128xbf16, #tpu.memory_space<vmem>>, %arg7: memref<1x128xf32, #tpu.memory_space<vmem>>, %arg8: memref<256x4xf32, #tpu.memory_space<vmem>>) attributes {dimension_semantics = [#tpu.dimension_semantics<parallel>], iteration_bounds = array<i64: 2>, scalar_prefetch = 0 : i64, scratch_operands = 0 : i64, tpu.core_type = #tpu.core_type<tc>, window_params = [{transform_indices = @transform_0, window_bounds = array<i64: 256, 8>}, {pipeline_mode = #tpu.pipeline_mode<synchronous>, transform_indices = @transform_1, window_bounds = array<i64: 8, 256>}, {pipeline_mode = #tpu.pipeline_mode<synchronous>, transform_indices = @transform_2, window_bounds = array<i64: 1, 256>}, {pipeline_mode = #tpu.pipeline_mode<synchronous>, transform_indices = @transform_3, window_bounds = array<i64: 7, 256, 256>}, {pipeline_mode = #tpu.pipeline_mode<synchronous>, transform_indices = @transform_4, window_bounds = array<i64: 7, 1, 256>}, {pipeline_mode = #tpu.pipeline_mode<synchronous>, transform_indices = @transform_5, window_bounds = array<i64: 256, 128>}, {pipeline_mode = #tpu.pipeline_mode<synchronous>, transform_indices = @transform_6, window_bounds = array<i64: 1, 128>}, {transform_indices = @transform_7, window_bounds = array<i64: 256, 4>}]} {
    %c0 = arith.constant 0 : index
    %c0_0 = arith.constant 0 : index
    %0 = vector.load %arg1[%c0, %c0_0] : memref<256x8xbf16, #tpu.memory_space<vmem>>, vector<256x8xbf16>
    %c0_1 = arith.constant 0 : index
    %c0_2 = arith.constant 0 : index
    %1 = vector.load %arg2[%c0_1, %c0_2] : memref<8x256xbf16, #tpu.memory_space<vmem>>, vector<8x256xbf16>
    %cst = arith.constant dense<0.000000e+00> : vector<256x256xf32>
    %2 = tpu.matmul %0, %1, %cst {dimension_numbers = #tpu.dot_dimension_numbers<[1], [0], [0], [1], [0, 0, 1, 1], [], []>} : vector<256x8xbf16>, vector<8x256xbf16>, vector<256x256xf32> -> vector<256x256xf32>
    %c0_3 = arith.constant 0 : index
    %c0_4 = arith.constant 0 : index
    %3 = vector.load %arg3[%c0_3, %c0_4] : memref<1x256xf32, #tpu.memory_space<vmem>>, vector<1x256xf32>
    %4 = vector.broadcast %3 : vector<1x256xf32> to vector<256x256xf32>
    %5 = arith.addf %2, %4 : vector<256x256xf32>
    %cst_5 = arith.constant 0.000000e+00 : f32
    %6 = vector.broadcast %cst_5 : f32 to vector<256x256xf32>
    %7 = arith.maximumf %5, %6 : vector<256x256xf32>
    %8 = arith.truncf %7 : vector<256x256xf32> to vector<256x256xbf16>
    %c0_6 = arith.constant 0 : index
    %c0_7 = arith.constant 0 : index
    %c0_8 = arith.constant 0 : index
    %9 = vector.load %arg4[%c0_6, %c0_7, %c0_8] : memref<7x256x256xbf16, #tpu.memory_space<vmem>>, vector<1x256x256xbf16>
    %10 = vector.shape_cast %9 : vector<1x256x256xbf16> to vector<256x256xbf16>
    %cst_9 = arith.constant dense<0.000000e+00> : vector<256x256xf32>
    %11 = tpu.matmul %8, %10, %cst_9 {dimension_numbers = #tpu.dot_dimension_numbers<[1], [0], [0], [1], [0, 0, 1, 1], [], []>} : vector<256x256xbf16>, vector<256x256xbf16>, vector<256x256xf32> -> vector<256x256xf32>
    %c0_10 = arith.constant 0 : index
    %c0_11 = arith.constant 0 : index
    %c0_12 = arith.constant 0 : index
    %12 = vector.load %arg5[%c0_10, %c0_11, %c0_12] : memref<7x1x256xf32, #tpu.memory_space<vmem>>, vector<1x1x256xf32>
    %13 = vector.shape_cast %12 : vector<1x1x256xf32> to vector<1x256xf32>
    %14 = vector.broadcast %13 : vector<1x256xf32> to vector<256x256xf32>
    %15 = arith.addf %11, %14 : vector<256x256xf32>
    %cst_13 = arith.constant 0.000000e+00 : f32
    %16 = vector.broadcast %cst_13 : f32 to vector<256x256xf32>
    %17 = arith.maximumf %15, %16 : vector<256x256xf32>
    %18 = arith.truncf %17 : vector<256x256xf32> to vector<256x256xbf16>
    %c1 = arith.constant 1 : index
    %c0_14 = arith.constant 0 : index
    %c0_15 = arith.constant 0 : index
    %19 = vector.load %arg4[%c1, %c0_14, %c0_15] : memref<7x256x256xbf16, #tpu.memory_space<vmem>>, vector<1x256x256xbf16>
    %20 = vector.shape_cast %19 : vector<1x256x256xbf16> to vector<256x256xbf16>
    %cst_16 = arith.constant dense<0.000000e+00> : vector<256x256xf32>
    %21 = tpu.matmul %18, %20, %cst_16 {dimension_numbers = #tpu.dot_dimension_numbers<[1], [0], [0], [1], [0, 0, 1, 1], [], []>} : vector<256x256xbf16>, vector<256x256xbf16>, vector<256x256xf32> -> vector<256x256xf32>
    %c1_17 = arith.constant 1 : index
    %c0_18 = arith.constant 0 : index
    %c0_19 = arith.constant 0 : index
    %22 = vector.load %arg5[%c1_17, %c0_18, %c0_19] : memref<7x1x256xf32, #tpu.memory_space<vmem>>, vector<1x1x256xf32>
    %23 = vector.shape_cast %22 : vector<1x1x256xf32> to vector<1x256xf32>
    %24 = vector.broadcast %23 : vector<1x256xf32> to vector<256x256xf32>
    %25 = arith.addf %21, %24 : vector<256x256xf32>
    %cst_20 = arith.constant 0.000000e+00 : f32
    %26 = vector.broadcast %cst_20 : f32 to vector<256x256xf32>
    %27 = arith.maximumf %25, %26 : vector<256x256xf32>
    %28 = arith.truncf %27 : vector<256x256xf32> to vector<256x256xbf16>
    %c2 = arith.constant 2 : index
    %c0_21 = arith.constant 0 : index
    %c0_22 = arith.constant 0 : index
    %29 = vector.load %arg4[%c2, %c0_21, %c0_22] : memref<7x256x256xbf16, #tpu.memory_space<vmem>>, vector<1x256x256xbf16>
    %30 = vector.shape_cast %29 : vector<1x256x256xbf16> to vector<256x256xbf16>
    %cst_23 = arith.constant dense<0.000000e+00> : vector<256x256xf32>
    %31 = tpu.matmul %28, %30, %cst_23 {dimension_numbers = #tpu.dot_dimension_numbers<[1], [0], [0], [1], [0, 0, 1, 1], [], []>} : vector<256x256xbf16>, vector<256x256xbf16>, vector<256x256xf32> -> vector<256x256xf32>
    %c2_24 = arith.constant 2 : index
    %c0_25 = arith.constant 0 : index
    %c0_26 = arith.constant 0 : index
    %32 = vector.load %arg5[%c2_24, %c0_25, %c0_26] : memref<7x1x256xf32, #tpu.memory_space<vmem>>, vector<1x1x256xf32>
    %33 = vector.shape_cast %32 : vector<1x1x256xf32> to vector<1x256xf32>
    %34 = vector.broadcast %33 : vector<1x256xf32> to vector<256x256xf32>
    %35 = arith.addf %31, %34 : vector<256x256xf32>
    %cst_27 = arith.constant 0.000000e+00 : f32
    %36 = vector.broadcast %cst_27 : f32 to vector<256x256xf32>
    %37 = arith.maximumf %35, %36 : vector<256x256xf32>
    %38 = arith.truncf %37 : vector<256x256xf32> to vector<256x256xbf16>
    %c3 = arith.constant 3 : index
    %c0_28 = arith.constant 0 : index
    %c0_29 = arith.constant 0 : index
    %39 = vector.load %arg4[%c3, %c0_28, %c0_29] : memref<7x256x256xbf16, #tpu.memory_space<vmem>>, vector<1x256x256xbf16>
    %40 = vector.shape_cast %39 : vector<1x256x256xbf16> to vector<256x256xbf16>
    %cst_30 = arith.constant dense<0.000000e+00> : vector<256x256xf32>
    %41 = tpu.matmul %38, %40, %cst_30 {dimension_numbers = #tpu.dot_dimension_numbers<[1], [0], [0], [1], [0, 0, 1, 1], [], []>} : vector<256x256xbf16>, vector<256x256xbf16>, vector<256x256xf32> -> vector<256x256xf32>
    %c3_31 = arith.constant 3 : index
    %c0_32 = arith.constant 0 : index
    %c0_33 = arith.constant 0 : index
    %42 = vector.load %arg5[%c3_31, %c0_32, %c0_33] : memref<7x1x256xf32, #tpu.memory_space<vmem>>, vector<1x1x256xf32>
    %43 = vector.shape_cast %42 : vector<1x1x256xf32> to vector<1x256xf32>
    %44 = vector.broadcast %43 : vector<1x256xf32> to vector<256x256xf32>
    %45 = arith.addf %41, %44 : vector<256x256xf32>
    %cst_34 = arith.constant 0.000000e+00 : f32
    %46 = vector.broadcast %cst_34 : f32 to vector<256x256xf32>
    %47 = arith.maximumf %45, %46 : vector<256x256xf32>
    %48 = arith.truncf %47 : vector<256x256xf32> to vector<256x256xbf16>
    %c4 = arith.constant 4 : index
    %c0_35 = arith.constant 0 : index
    %c0_36 = arith.constant 0 : index
    %49 = vector.load %arg4[%c4, %c0_35, %c0_36] : memref<7x256x256xbf16, #tpu.memory_space<vmem>>, vector<1x256x256xbf16>
    %50 = vector.shape_cast %49 : vector<1x256x256xbf16> to vector<256x256xbf16>
    %cst_37 = arith.constant dense<0.000000e+00> : vector<256x256xf32>
    %51 = tpu.matmul %48, %50, %cst_37 {dimension_numbers = #tpu.dot_dimension_numbers<[1], [0], [0], [1], [0, 0, 1, 1], [], []>} : vector<256x256xbf16>, vector<256x256xbf16>, vector<256x256xf32> -> vector<256x256xf32>
    %c4_38 = arith.constant 4 : index
    %c0_39 = arith.constant 0 : index
    %c0_40 = arith.constant 0 : index
    %52 = vector.load %arg5[%c4_38, %c0_39, %c0_40] : memref<7x1x256xf32, #tpu.memory_space<vmem>>, vector<1x1x256xf32>
    %53 = vector.shape_cast %52 : vector<1x1x256xf32> to vector<1x256xf32>
    %54 = vector.broadcast %53 : vector<1x256xf32> to vector<256x256xf32>
    %55 = arith.addf %51, %54 : vector<256x256xf32>
    %cst_41 = arith.constant 0.000000e+00 : f32
    %56 = vector.broadcast %cst_41 : f32 to vector<256x256xf32>
    %57 = arith.maximumf %55, %56 : vector<256x256xf32>
    %58 = arith.truncf %57 : vector<256x256xf32> to vector<256x256xbf16>
    %c5 = arith.constant 5 : index
    %c0_42 = arith.constant 0 : index
    %c0_43 = arith.constant 0 : index
    %59 = vector.load %arg4[%c5, %c0_42, %c0_43] : memref<7x256x256xbf16, #tpu.memory_space<vmem>>, vector<1x256x256xbf16>
    %60 = vector.shape_cast %59 : vector<1x256x256xbf16> to vector<256x256xbf16>
    %cst_44 = arith.constant dense<0.000000e+00> : vector<256x256xf32>
    %61 = tpu.matmul %58, %60, %cst_44 {dimension_numbers = #tpu.dot_dimension_numbers<[1], [0], [0], [1], [0, 0, 1, 1], [], []>} : vector<256x256xbf16>, vector<256x256xbf16>, vector<256x256xf32> -> vector<256x256xf32>
    %c5_45 = arith.constant 5 : index
    %c0_46 = arith.constant 0 : index
    %c0_47 = arith.constant 0 : index
    %62 = vector.load %arg5[%c5_45, %c0_46, %c0_47] : memref<7x1x256xf32, #tpu.memory_space<vmem>>, vector<1x1x256xf32>
    %63 = vector.shape_cast %62 : vector<1x1x256xf32> to vector<1x256xf32>
    %64 = vector.broadcast %63 : vector<1x256xf32> to vector<256x256xf32>
    %65 = arith.addf %61, %64 : vector<256x256xf32>
    %cst_48 = arith.constant 0.000000e+00 : f32
    %66 = vector.broadcast %cst_48 : f32 to vector<256x256xf32>
    %67 = arith.maximumf %65, %66 : vector<256x256xf32>
    %68 = arith.truncf %67 : vector<256x256xf32> to vector<256x256xbf16>
    %c6 = arith.constant 6 : index
    %c0_49 = arith.constant 0 : index
    %c0_50 = arith.constant 0 : index
    %69 = vector.load %arg4[%c6, %c0_49, %c0_50] : memref<7x256x256xbf16, #tpu.memory_space<vmem>>, vector<1x256x256xbf16>
    %70 = vector.shape_cast %69 : vector<1x256x256xbf16> to vector<256x256xbf16>
    %cst_51 = arith.constant dense<0.000000e+00> : vector<256x256xf32>
    %71 = tpu.matmul %68, %70, %cst_51 {dimension_numbers = #tpu.dot_dimension_numbers<[1], [0], [0], [1], [0, 0, 1, 1], [], []>} : vector<256x256xbf16>, vector<256x256xbf16>, vector<256x256xf32> -> vector<256x256xf32>
    %c6_52 = arith.constant 6 : index
    %c0_53 = arith.constant 0 : index
    %c0_54 = arith.constant 0 : index
    %72 = vector.load %arg5[%c6_52, %c0_53, %c0_54] : memref<7x1x256xf32, #tpu.memory_space<vmem>>, vector<1x1x256xf32>
    %73 = vector.shape_cast %72 : vector<1x1x256xf32> to vector<1x256xf32>
    %74 = vector.broadcast %73 : vector<1x256xf32> to vector<256x256xf32>
    %75 = arith.addf %71, %74 : vector<256x256xf32>
    %cst_55 = arith.constant 0.000000e+00 : f32
    %76 = vector.broadcast %cst_55 : f32 to vector<256x256xf32>
    %77 = arith.maximumf %75, %76 : vector<256x256xf32>
    %78 = arith.truncf %77 : vector<256x256xf32> to vector<256x256xbf16>
    %c0_56 = arith.constant 0 : index
    %c0_57 = arith.constant 0 : index
    %79 = vector.load %arg6[%c0_56, %c0_57] : memref<256x128xbf16, #tpu.memory_space<vmem>>, vector<256x128xbf16>
    %cst_58 = arith.constant dense<0.000000e+00> : vector<256x128xf32>
    %80 = tpu.matmul %78, %79, %cst_58 {dimension_numbers = #tpu.dot_dimension_numbers<[1], [0], [0], [1], [0, 0, 1, 1], [], []>} : vector<256x256xbf16>, vector<256x128xbf16>, vector<256x128xf32> -> vector<256x128xf32>
    %c0_59 = arith.constant 0 : index
    %c0_60 = arith.constant 0 : index
    %81 = vector.load %arg7[%c0_59, %c0_60] : memref<1x128xf32, #tpu.memory_space<vmem>>, vector<1x128xf32>
    %82 = vector.broadcast %81 : vector<1x128xf32> to vector<256x128xf32>
    %83 = arith.addf %80, %82 : vector<256x128xf32>
    %84 = vector.extract_strided_slice %83 {offsets = [0, 0], sizes = [256, 4], strides = [1, 1]} : vector<256x128xf32> to vector<256x4xf32>
    %c0_61 = arith.constant 0 : index
    %c0_62 = arith.constant 0 : index
    %85 = vector.load %arg8[%c0_61, %c0_62] : memref<256x4xf32, #tpu.memory_space<vmem>>, vector<256x4xf32>
    tpu.vector_store %arg8[%c0_61, %c0_62], %84 {strides = array<i32>} : memref<256x4xf32, #tpu.memory_space<vmem>>, vector<256x4xf32>,
    return
  }
  func.func @transform_0(%arg0: i32) -> (i32, i32) {
    %c0_i32 = arith.constant 0 : i32
    %c0_i32_0 = arith.constant 0 : i32
    return %arg0, %c0_i32 : i32, i32
  }
  func.func @transform_1(%arg0: i32) -> (i32, i32) {
    %c0_i32 = arith.constant 0 : i32
    %c0_i32_0 = arith.constant 0 : i32
    %c0_i32_1 = arith.constant 0 : i32
    return %c0_i32, %c0_i32_0 : i32, i32
  }
  func.func @transform_2(%arg0: i32) -> (i32, i32) {
    %c0_i32 = arith.constant 0 : i32
    %c0_i32_0 = arith.constant 0 : i32
    %c0_i32_1 = arith.constant 0 : i32
    return %c0_i32, %c0_i32_0 : i32, i32
  }
  func.func @transform_3(%arg0: i32) -> (i32, i32, i32) {
    %c0_i32 = arith.constant 0 : i32
    %c0_i32_0 = arith.constant 0 : i32
    %c0_i32_1 = arith.constant 0 : i32
    %c0_i32_2 = arith.constant 0 : i32
    return %c0_i32, %c0_i32_0, %c0_i32_1 : i32, i32, i32
  }
  func.func @transform_4(%arg0: i32) -> (i32, i32, i32) {
    %c0_i32 = arith.constant 0 : i32
    %c0_i32_0 = arith.constant 0 : i32
    %c0_i32_1 = arith.constant 0 : i32
    %c0_i32_2 = arith.constant 0 : i32
    return %c0_i32, %c0_i32_0, %c0_i32_1 : i32, i32, i32
  }
  func.func @transform_5(%arg0: i32) -> (i32, i32) {
    %c0_i32 = arith.constant 0 : i32
    %c0_i32_0 = arith.constant 0 : i32
    %c0_i32_1 = arith.constant 0 : i32
    return %c0_i32, %c0_i32_0 : i32, i32
  }
  func.func @transform_6(%arg0: i32) -> (i32, i32) {
    %c0_i32 = arith.constant 0 : i32
    %c0_i32_0 = arith.constant 0 : i32
    %c0_i32_1 = arith.constant 0 : i32
    return %c0_i32, %c0_i32_0 : i32, i32
  }
  func.func @transform_7(%arg0: i32) -> (i32, i32) {
    %c0_i32 = arith.constant 0 : i32
    %c0_i32_0 = arith.constant 0 : i32
    return %arg0, %c0_i32 : i32, i32
  }
}

</mosaic_0001>

<bundles_post_ra>
// kernel: vanilla_nerf_forward.1
= control target key start
LH: loop header
LB: loop body
LE: loop exit
PB: predicated region body
PF: predicated region fallthrough
CT: control target
= control target key end

     0   :  { %s5633_s24 = smov 0   ;;  %s7181_s0 = inlined_call_operand.vmem [shape: bf16[512,8], index: 0, kind: input, shape index: {}]   ;;  %s7182_s1 = inlined_call_operand.vmem [shape: bf16[8,256], index: 1, kind: input, shape index: {}]   ;;  %s7183_s2 = inlined_call_operand.vmem [shape: f32[1,256], index: 2, kind: input, shape index: {}]   ;;  %s7184_s3 = inlined_call_operand.vmem [shape: bf16[7,256,256], index: 3, kind: input, shape index: {}]   ;;  %s7185_s4 = inlined_call_operand.vmem [shape: f32[7,1,256], index: 4, kind: input, shape index: {}]   ;;  %s7186_s5 = inlined_call_operand.vmem [shape: bf16[256,128], index: 5, kind: input, shape index: {}]   ;;  %s7187_s6 = inlined_call_operand.vmem [shape: f32[1,128], index: 6, kind: input, shape index: {}]   ;;  %s7188_s7 = inlined_call_operand.vmem [shape: f32[512,4], index: 7, kind: output, shape index: {}]  }
   0x1 LB: > { %s4606_s25 = sadd.s32 4294967295, %s5590_s24   ;;  %p4610_p0 = scmp.ge.s32.totalorder %s5590_s24, 1  ;;  %s5590_s24 = sphi %s5633_s24, %s17_s24  }
   0x2   : > { %p238_p1 = scmp.lt.s32.totalorder %s5590_s24, 3 }
   0x4   : > { %p239_p2 = pnand %p4610_p0, %p238_p1 }
   0x5   : > { %s4611_s28 = sshll.u32 (!%p239_p2), %s4606_s25, 5 }
   0x6   : > { %242 = sbr.rel (%p239_p2) target bundleno = 1990 (0x7c6), region = 48  ;;  %p271_p3 = scmp.lt.s32.totalorder (!%p239_p2), %s4611_s28, 63 }
   0xb   : > { %v315_v0 = vld [vmem:[%s7182_s1] sm:$0xff]  ;;  %vm462_vm0 = vcmask 1043456   ;;  %v5592_v3 = vmov 0   ;;  %v5234_v4 = vld [vmem:[%s7184_s3 + $0x74] ss:$8 sps:$4 sm:$0xff]   ;;  %s7190_s28 = smov (!%p271_p3, %s4611_s28), 63  ;;  %v318_v53 = vlaneseq }
   0xc   : > { %v4632_v1 = vcombine.high %v315_v0, %v315_v0  ;;  %v4631_v2 = vcombine.low %v315_v0, %v315_v0  ;;  %501 = vmatprep.mubr.bf16.mxu0 %v5592_v3  ;;  %581 = vmatprep.mubr.bf16.mxu1 %v5592_v3  ;;  %s4612_s8 = sshll.u32 %s7190_s28, 2  ;;  %vm413_vm1 = vcmask 64512   ;;  %v5232_v8 = vld [vmem:[%s7184_s3 + $0x70] ss:$8 sps:$4 sm:$0xff]   ;;  %v5237_v10 = vld [vmem:[%s7184_s3 + $0x64] ss:$8 sps:$4 sm:$0xff]  }
   0xd   : > { %s5655_s11 = scalar_lea.vmem %s7181_s0, %s4612_s8  ;;  %v5235_v11 = vld [vmem:[%s7184_s3 + $0x60] ss:$8 sps:$4 sm:$0xff]   ;;  %v5240_v12 = vld [vmem:[%s7184_s3 + $0x54] ss:$8 sps:$4 sm:$0xff]   ;;  %v5238_v15 = vld [vmem:[%s7184_s3 + $0x50] ss:$8 sps:$4 sm:$0xff]  }
   0xe   : > { %4633 = vmatprep.subr.msk.bf16.mxu0 %vm462_vm0, %v4632_v1  ;;  %v464_v5 = vsel %vm462_vm0, %v4631_v2, 0  ;;  %5203 = vmatprep.subr.msk.bf16.mxu1 %vm462_vm0, %v4632_v1  ;;  %v5216_v6 = vld [vmem:[%s5655_s11] sm:$0xff]   ;;  %v5217_v7 = vld [vmem:[%s5655_s11 + $0x8] sm:$0xff]   ;;  %v5218_v13 = vld [vmem:[%s5655_s11 + $0x10] sm:$0xff]   ;;  %v319_v54 = vshrl.u32 %v318_v53, 7  ;;  %s4614_s26 = sshll.u32 %s7190_s28, 3 }
   0xf   : > { %484 = vmatpush1.bf16.msra.mxu0 %v464_v5  ;;  %5204 = vmatpush1.bf16.msra.mxu1 %v464_v5  ;;  %v5224_v9 = vld [vmem:[%s5655_s11 + $0x40] sm:$0xff]   ;;  %v5225_v14 = vld [vmem:[%s5655_s11 + $0x48] sm:$0xff]   ;;  %v5246_v18 = vld [vmem:[%s7184_s3 + $0x34] ss:$8 sps:$4 sm:$0xff]   ;;  %vm4517_vm2 = vcmask 31744  }
  0x10   : > { %962 = vmatprep.subr.bf16.mxu1 %v5234_v4  ;;  %v5243_v16 = vld [vmem:[%s7184_s3 + $0x44] ss:$8 sps:$4 sm:$0xff]   ;;  %v5241_v17 = vld [vmem:[%s7184_s3 + $0x40] ss:$8 sps:$4 sm:$0xff]   ;;  %v5219_v19 = vld [vmem:[%s5655_s11 + $0x18] sm:$0xff]   ;;  %v5796_v55 = vsub.s32 1, %v319_v54 }
  0x11   : > { %v5226_v20 = vld [vmem:[%s5655_s11 + $0x50] sm:$0xff]   ;;  %v5249_v22 = vld [vmem:[%s7184_s3 + $0x24] ss:$8 sps:$4 sm:$0xff]   ;;  %v5247_v23 = vld [vmem:[%s7184_s3 + $0x20] ss:$8 sps:$4 sm:$0xff]   ;;  %v5798_v56 = vsub.s32 0, %v319_v54 }
  0x12   : > { %4634 = vmatmul.mubr.msk.bf16.vlgmr.msra.gmra.mxu0 %vm413_vm1, %v5216_v6  ;;  %4642 = vmatmul.mubr.msk.bf16.vlgmr.msra.gmra.mxu1 %vm413_vm1, %v5224_v9  ;;  %v5244_v21 = vld [vmem:[%s7184_s3 + $0x30] ss:$8 sps:$4 sm:$0xff]   ;;  %v5252_v24 = vld [vmem:[%s7184_s3 + $0x14] ss:$8 sps:$4 sm:$0xff]   ;;  %v5220_v25 = vld [vmem:[%s5655_s11 + $0x20] sm:$0xff]  }
  0x13   : > { %511 = vmatprep.mubr.bf16.mxu0 %v5592_v3  ;;  %591 = vmatprep.mubr.bf16.mxu1 %v5592_v3  ;;  %v5227_v26 = vld [vmem:[%s5655_s11 + $0x58] sm:$0xff]   ;;  %v5255_v28 = vld [vmem:[%s7184_s3 + $0x4] ss:$8 sps:$4 sm:$0xff]   ;;  %v5253_v29 = vld [vmem:[%s7184_s3] ss:$8 sps:$4 sm:$0xff]  }
  0x14   : > { %963 = vmatpush1.bf16.msra.mxu1 %v5232_v8  ;;  %v5250_v27 = vld [vmem:[%s7184_s3 + $0x10] ss:$8 sps:$4 sm:$0xff]   ;;  %v5258_v30 = vld [vmem:[%s7184_s3 + $0xf4] ss:$8 sps:$4 sm:$0xff]   ;;  %v5221_v31 = vld [vmem:[%s5655_s11 + $0x28] sm:$0xff]  }
  0x15   : > { %964 = vmatprep.subr.bf16.mxu1 %v5237_v10  ;;  %v5228_v32 = vld [vmem:[%s5655_s11 + $0x60] sm:$0xff]   ;;  %v5256_v33 = vld [vmem:[%s7184_s3 + $0xf0] ss:$8 sps:$4 sm:$0xff]   ;;  %v5264_v36 = vld [vmem:[%s7184_s3 + $0xd4] ss:$8 sps:$4 sm:$0xff]  }
  0x16   : > { %v5261_v34 = vld [vmem:[%s7184_s3 + $0xe4] ss:$8 sps:$4 sm:$0xff]   ;;  %v5259_v35 = vld [vmem:[%s7184_s3 + $0xe0] ss:$8 sps:$4 sm:$0xff]   ;;  %v5222_v37 = vld [vmem:[%s5655_s11 + $0x30] sm:$0xff]  }
  0x17   : > { %v5229_v38 = vld [vmem:[%s5655_s11 + $0x68] sm:$0xff]   ;;  %v5262_v39 = vld [vmem:[%s7184_s3 + $0xd0] ss:$8 sps:$4 sm:$0xff]   ;;  %v5270_v42 = vld [vmem:[%s7184_s3 + $0xb4] ss:$8 sps:$4 sm:$0xff]  }
  0x18   : > { %965 = vmatpush1.bf16.msra.mxu1 %v5235_v11  ;;  %v5267_v40 = vld [vmem:[%s7184_s3 + $0xc4] ss:$8 sps:$4 sm:$0xff]   ;;  %v5265_v41 = vld [vmem:[%s7184_s3 + $0xc0] ss:$8 sps:$4 sm:$0xff]   ;;  %v5223_v43 = vld [vmem:[%s5655_s11 + $0x38] sm:$0xff]  }
  0x19   : > { %966 = vmatprep.subr.bf16.mxu1 %v5240_v12  ;;  %v5230_v44 = vld [vmem:[%s5655_s11 + $0x70] sm:$0xff]   ;;  %v5231_v46 = vld [vmem:[%s5655_s11 + $0x78] sm:$0xff]   ;;  %v5273_v47 = vld [vmem:[%s7184_s3 + $0xa4] ss:$8 sps:$4 sm:$0xff]   ;;  %s7080_s11 = scalar_lea.vmem %s7188_s7, %s4614_s26 }
  0x1a   : > { %4635 = vmatmul.mubr.msk.bf16.gmra.mxu0 %vm413_vm1, %v5217_v7  ;;  %4643 = vmatmul.mubr.msk.bf16.gmra.mxu1 %vm413_vm1, %v5225_v14  ;;  %v5268_v45 = vld [vmem:[%s7184_s3 + $0xb0] ss:$8 sps:$4 sm:$0xff]   ;;  %v5271_v48 = vld [vmem:[%s7184_s3 + $0xa0] ss:$8 sps:$4 sm:$0xff]   ;;  %v5276_v49 = vld [vmem:[%s7184_s3 + $0x94] ss:$8 sps:$4 sm:$0xff]  }
  0x1b   : > { %521 = vmatprep.mubr.bf16.mxu0 %v5592_v3  ;;  %601 = vmatprep.mubr.bf16.mxu1 %v5592_v3  ;;  %v5274_v50 = vld [vmem:[%s7184_s3 + $0x90] ss:$8 sps:$4 sm:$0xff]   ;;  %v5279_v51 = vld [vmem:[%s7184_s3 + $0x84] ss:$8 sps:$4 sm:$0xff]   ;;  %v5277_v52 = vld [vmem:[%s7184_s3 + $0x80] ss:$8 sps:$4 sm:$0xff]  }
  0x1c   : > { %967 = vmatpush1.bf16.msra.mxu1 %v5238_v15  ;;  %v316_v57 = vld [vmem:[%s7183_s2] sm:$0x3]  ;;  %v5282_v4 = vld [vmem:[%s7184_s3 + $0x174] ss:$8 sps:$4 sm:$0xff]   ;;  %v5285_v6 = vld [vmem:[%s7184_s3 + $0x164] ss:$8 sps:$4 sm:$0xff]  }
  0x1d   : > { %968 = vmatprep.subr.bf16.mxu1 %v5243_v16  ;;  %v5804_v59 = vrot.slane %v316_v57, %v5796_v55  ;;  %v5807_v60 = vrot.slane %v316_v57, %v5798_v56  ;;  %1457 = vmatprep.subr.bf16.mxu0 %v5282_v4  ;;  %v5283_v12 = vld [vmem:[%s7184_s3 + $0x160] ss:$8 sps:$4 sm:$0xff]   ;;  %v5288_v16 = vld [vmem:[%s7184_s3 + $0x154] ss:$8 sps:$4 sm:$0xff]  }
  0x20   : > { %969 = vmatpush1.bf16.msra.mxu1 %v5241_v17 }
  0x21   : > { %970 = vmatprep.subr.bf16.mxu1 %v5246_v18 }
  0x22   : > { %4636 = vmatmul.mubr.msk.bf16.gmra.mxu0 %vm413_vm1, %v5218_v13  ;;  %4644 = vmatmul.mubr.msk.bf16.gmra.mxu1 %vm413_vm1, %v5226_v20 }
  0x23   : > { %531 = vmatprep.mubr.bf16.mxu0 %v5592_v3  ;;  %611 = vmatprep.mubr.bf16.mxu1 %v5592_v3 }
  0x24   : > { %971 = vmatpush1.bf16.msra.mxu1 %v5244_v21 }
  0x25   : > { %972 = vmatprep.subr.bf16.mxu1 %v5249_v22 }
  0x28   : > { %973 = vmatpush1.bf16.msra.mxu1 %v5247_v23  ;;  %v5286_v23 = vld [vmem:[%s7184_s3 + $0x150] ss:$8 sps:$4 sm:$0xff]  }
  0x29   : > { %974 = vmatprep.subr.bf16.mxu1 %v5252_v24 }
  0x2a   : > { %4637 = vmatmul.mubr.msk.bf16.gmra.mxu0 %vm413_vm1, %v5219_v19  ;;  %4645 = vmatmul.mubr.msk.bf16.gmra.mxu1 %vm413_vm1, %v5227_v26 }
  0x2b   : > { %541 = vmatprep.mubr.bf16.mxu0 %v5592_v3  ;;  %621 = vmatprep.mubr.bf16.mxu1 %v5592_v3 }
  0x2c   : > { %975 = vmatpush1.bf16.msra.mxu1 %v5250_v27  ;;  %v5291_v27 = vld [vmem:[%s7184_s3 + $0x144] ss:$8 sps:$4 sm:$0xff]  }
  0x2d   : > { %976 = vmatprep.subr.bf16.mxu1 %v5255_v28 }
  0x30   : > { %977 = vmatpush1.bf16.msra.mxu1 %v5253_v29 }
  0x31   : > { %978 = vmatprep.subr.bf16.mxu1 %v5258_v30 }
  0x32   : > { %4638 = vmatmul.mubr.msk.bf16.gmra.mxu0 %vm413_vm1, %v5220_v25  ;;  %4646 = vmatmul.mubr.msk.bf16.gmra.mxu1 %vm413_vm1, %v5228_v32 }
  0x33   : > { %551 = vmatprep.mubr.bf16.mxu0 %v5592_v3  ;;  %631 = vmatprep.mubr.bf16.mxu1 %v5592_v3 }
  0x34   : > { %979 = vmatpush2.bf16.msra.mxu1 %v5256_v33 }
  0x35   : > { %980 = vmatprep.subr.bf16.mxu1 %v5261_v34  ;;  %v5289_v34 = vld [vmem:[%s7184_s3 + $0x140] ss:$8 sps:$4 sm:$0xff]  }
  0x38   : > { %981 = vmatpush2.bf16.msra.mxu1 %v5259_v35 }
  0x39   : > { %982 = vmatprep.subr.bf16.mxu1 %v5264_v36 }
  0x3a   : > { %4639 = vmatmul.mubr.msk.bf16.gmra.mxu0 %vm413_vm1, %v5221_v31  ;;  %4647 = vmatmul.mubr.msk.bf16.gmra.mxu1 %vm413_vm1, %v5229_v38  ;;  %v5294_v38 = vld [vmem:[%s7184_s3 + $0x134] ss:$8 sps:$4 sm:$0xff]  }
  0x3b   : > { %561 = vmatprep.mubr.bf16.mxu0 %v5592_v3  ;;  %641 = vmatprep.mubr.bf16.mxu1 %v5592_v3 }
  0x3c   : > { %983 = vmatpush2.bf16.msra.mxu1 %v5262_v39 }
  0x3d   : > { %984 = vmatprep.subr.bf16.mxu1 %v5267_v40 }
  0x40   : > { %985 = vmatpush2.bf16.msra.mxu1 %v5265_v41 }
  0x41   : > { %986 = vmatprep.subr.bf16.mxu1 %v5270_v42 }
  0x42   : > { %4640 = vmatmul.mubr.msk.bf16.gmra.mxu0 %vm413_vm1, %v5222_v37  ;;  %4648 = vmatmul.mubr.msk.bf16.gmra.mxu1 %vm413_vm1, %v5230_v44 }
  0x43   : > { %571 = vmatprep.mubr.bf16.mxu0 %v5592_v3  ;;  %651 = vmatprep.mubr.bf16.mxu1 %v5592_v3  ;;  %v5280_v3 = vld [vmem:[%s7184_s3 + $0x170] ss:$8 sps:$4 sm:$0xff]  }
  0x44   : > { %987 = vmatpush2.bf16.msra.mxu1 %v5268_v45  ;;  %1458 = vmatpush1.bf16.msra.mxu0 %v5280_v3  ;;  %v5292_v45 = vld [vmem:[%s7184_s3 + $0x130] ss:$8 sps:$4 sm:$0xff]  }
  0x45   : > { %988 = vmatprep.subr.bf16.mxu1 %v5273_v47  ;;  %1459 = vmatprep.subr.bf16.mxu0 %v5285_v6 }
  0x48   : > { %989 = vmatpush2.bf16.msra.mxu1 %v5271_v48  ;;  %1460 = vmatpush1.bf16.msra.mxu0 %v5283_v12 }
  0x49   : > { %990 = vmatprep.subr.bf16.mxu1 %v5276_v49  ;;  %1461 = vmatprep.subr.bf16.mxu0 %v5288_v16  ;;  %v5297_v49 = vld [vmem:[%s7184_s3 + $0x124] ss:$8 sps:$4 sm:$0xff]  }
  0x4a   : > { %4641 = vmatmul.mubr.msk.bf16.gmra.mxu0 %vm413_vm1, %v5223_v43  ;;  %4649 = vmatmul.mubr.msk.bf16.gmra.mxu1 %vm413_vm1, %v5231_v46 }
  0x4c   : > { %991 = vmatpush2.bf16.msra.mxu1 %v5274_v50  ;;  %1462 = vmatpush1.bf16.msra.mxu0 %v5286_v23  ;;  %v5306_v23 = vld [vmem:[%s7184_s3 + $0x1f4] ss:$8 sps:$4 sm:$0xff]  }
  0x4d   : > { %992 = vmatprep.subr.bf16.mxu1 %v5279_v51  ;;  %1463 = vmatprep.subr.bf16.mxu0 %v5291_v27 }
  0x50   : > { %993 = vmatpush2.bf16.msra.mxu1 %v5277_v52  ;;  %1464 = vmatpush1.bf16.msra.mxu0 %v5289_v34 }
  0x51   : > { %1465 = vmatprep.subr.bf16.mxu0 %v5294_v38 }
  0x54   : > { %1466 = vmatpush1.bf16.msra.mxu0 %v5292_v45 }
  0x55   : > { %1467 = vmatprep.subr.bf16.mxu0 %v5297_v49 }
  0xd2   : > { %v503_v58 = vpop.f32.mrf.mxu0  ;;  %v5822_v9 = vpop.f32.mrf.mxu1 }
  0xd3   : > { %v504_v1 = vadd.f32 %v503_v58, %v5807_v60  ;;  %v5295_v58 = vld [vmem:[%s7184_s3 + $0x120] ss:$8 sps:$4 sm:$0xff]  }
  0xd4   : > { %v505_v61 = vpop.f32.mrf.mxu0  ;;  %v5827_v15 = vpop.f32.mrf.mxu1  ;;  %1468 = vmatpush1.bf16.msra.mxu0 %v5295_v58  ;;  %v5310_v58 = vld [vmem:[%s7184_s3 + $0x1d0] ss:$8 sps:$4 sm:$0xff]  }
  0xd5   : > { %v506_v63 = vadd.f32 %v505_v61, %v5804_v59  ;;  %v662_v13 = vmax.f32 %v504_v1, 0.0 }
  0xd6   : > { %v507_v62 = vpop.f32.mrf.mxu0  ;;  %v5832_v20 = vpop.f32.mrf.mxu1 }
  0xd7   : > { %v508_v0 = vadd.f32 %v507_v62, %v5807_v60  ;;  %v663_v10 = vmax.f32 %v506_v63, 0.0 }
  0xd8   : > { %v509_v2 = vpop.f32.mrf.mxu0  ;;  %v5840_v26 = vpop.f32.mrf.mxu1 }
  0xd9   : > { %v510_v5 = vadd.f32 %v509_v2, %v5804_v59  ;;  %v664_v7 = vmax.f32 %v508_v0, 0.0  ;;  %v5300_v0 = vld [vmem:[%s7184_s3 + $0x114] ss:$8 sps:$4 sm:$0xff]  }
  0xda   : > { %v513_v8 = vpop.f32.mrf.mxu0  ;;  %v5846_v31 = vpop.f32.mrf.mxu1  ;;  %1469 = vmatprep.subr.bf16.mxu0 %v5300_v0  ;;  %v5315_v0 = vld [vmem:[%s7184_s3 + $0x1c4] ss:$8 sps:$4 sm:$0xff]  }
  0xdb   : > { %v665_v11 = vmax.f32 %v510_v5, 0.0  ;;  %v726_v18 = vpack.c.bf16 %v664_v7, %v662_v13  ;;  %v514_v24 = vadd.f32 %v513_v8, %v5807_v60  ;;  %v5298_v7 = vld [vmem:[%s7184_s3 + $0x110] ss:$8 sps:$4 sm:$0xff]  }
  0xdc   : > { %v515_v14 = vpop.f32.mrf.mxu0  ;;  %v5851_v37 = vpop.f32.mrf.mxu1  ;;  %1470 = vmatpush1.bf16.msra.mxu0 %v5298_v7 }
  0xdd   : > { %v727_v17 = vpack.c.bf16 %v665_v11, %v663_v10  ;;  %v516_v21 = vadd.f32 %v515_v14, %v5804_v59  ;;  %v666_v35 = vmax.f32 %v514_v24, 0.0  ;;  %v5303_v11 = vld [vmem:[%s7184_s3 + $0x104] ss:$8 sps:$4 sm:$0xff]  }
  0xde   : > { %v517_v19 = vpop.f32.mrf.mxu0  ;;  %v5856_v42 = vpop.f32.mrf.mxu1  ;;  %1471 = vmatprep.subr.bf16.mxu0 %v5303_v11 }
  0xdf   : > { %v518_v22 = vadd.f32 %v517_v19, %v5807_v60  ;;  %994 = vmatprep.mubr.bf16.mxu1 %v727_v17  ;;  %v667_v32 = vmax.f32 %v516_v21, 0.0  ;;  %v5301_v19 = vld [vmem:[%s7184_s3 + $0x100] ss:$8 sps:$4 sm:$0xff]  }
  0xe0   : > { %v519_v25 = vpop.f32.mrf.mxu0  ;;  %995 = vmatmul.mubr.bf16.vlgmr.msra.gmra.mxu1 %v726_v18  ;;  %v5864_v48 = vpop.f32.mrf.mxu1  ;;  %1472 = vmatpush1.bf16.msra.mxu0 %v5301_v19 }
  0xe1   : > { %v520_v28 = vadd.f32 %v519_v25, %v5804_v59  ;;  %v668_v29 = vmax.f32 %v518_v22, 0.0  ;;  %1473 = vmatprep.subr.bf16.mxu0 %v5306_v23 }
  0xe2   : > { %v523_v30 = vpop.f32.mrf.mxu0  ;;  %v5870_v53 = vpop.f32.mrf.mxu1 }
  0xe3   : > { %v669_v33 = vmax.f32 %v520_v28, 0.0  ;;  %v728_v40 = vpack.c.bf16 %v668_v29, %v666_v35  ;;  %v524_v46 = vadd.f32 %v523_v30, %v5807_v60  ;;  %v5309_v35 = vld [vmem:[%s7184_s3 + $0x1e4] ss:$8 sps:$4 sm:$0xff]  }
  0xe4   : > { %v525_v36 = vpop.f32.mrf.mxu0  ;;  %v5875_v63 = vpop.f32.mrf.mxu1 }
  0xe5   : > { %v729_v39 = vpack.c.bf16 %v669_v33, %v667_v32  ;;  %v526_v43 = vadd.f32 %v525_v36, %v5804_v59  ;;  %v670_v61 = vmax.f32 %v524_v46, 0.0  ;;  %v5304_v32 = vld [vmem:[%s7184_s3 + $0x1f0] ss:$8 sps:$4 sm:$0xff]  }
  0xe6   : > { %v527_v41 = vpop.f32.mrf.mxu0  ;;  %v5880_v4 = vpop.f32.mrf.mxu1  ;;  %1474 = vmatpush2.bf16.msra.mxu0 %v5304_v32 }
  0xe7   : > { %v528_v44 = vadd.f32 %v527_v41, %v5807_v60  ;;  %1004 = vmatprep.mubr.bf16.mxu1 %v729_v39  ;;  %v671_v54 = vmax.f32 %v526_v43, 0.0  ;;  %1475 = vmatprep.subr.bf16.mxu0 %v5309_v35 }
  0xe8   : > { %v529_v47 = vpop.f32.mrf.mxu0  ;;  %1005 = vmatmul.mubr.bf16.gmra.mxu1 %v728_v40  ;;  %v5892_v16 = vpop.f32.mrf.mxu1 }
  0xe9   : > { %v530_v50 = vadd.f32 %v529_v47, %v5804_v59  ;;  %v672_v51 = vmax.f32 %v528_v44, 0.0  ;;  %v5307_v44 = vld [vmem:[%s7184_s3 + $0x1e0] ss:$8 sps:$4 sm:$0xff]   ;;  %v5312_v47 = vld [vmem:[%s7184_s3 + $0x1d4] ss:$8 sps:$4 sm:$0xff]  }
  0xea   : > { %v533_v52 = vpop.f32.mrf.mxu0  ;;  %v5900_v28 = vpop.f32.mrf.mxu1  ;;  %1476 = vmatpush2.bf16.msra.mxu0 %v5307_v44 }
  0xeb   : > { %v673_v57 = vmax.f32 %v530_v50, 0.0  ;;  %v730_v2 = vpack.c.bf16 %v672_v51, %v670_v61  ;;  %v534_v8 = vadd.f32 %v533_v52, %v5807_v60  ;;  %1477 = vmatprep.subr.bf16.mxu0 %v5312_v47 }
  0xec   : > { %v535_v62 = vpop.f32.mrf.mxu0  ;;  %v5912_v40 = vpop.f32.mrf.mxu1 }
  0xed   : > { %v731_v1 = vpack.c.bf16 %v673_v57, %v671_v54  ;;  %v536_v5 = vadd.f32 %v535_v62, %v5804_v59  ;;  %v674_v21 = vmax.f32 %v534_v8, 0.0  ;;  %v5313_v8 = vld [vmem:[%s7184_s3 + $0x1c0] ss:$8 sps:$4 sm:$0xff]  }
  0xee   : > { %v537_v3 = vpop.f32.mrf.mxu0  ;;  %v5920_v52 = vpop.f32.mrf.mxu1  ;;  %1478 = vmatpush2.bf16.msra.mxu0 %v5310_v58 }
  0xef   : > { %v538_v6 = vadd.f32 %v537_v3, %v5807_v60  ;;  %1014 = vmatprep.mubr.bf16.mxu1 %v731_v1  ;;  %v675_v17 = vmax.f32 %v536_v5, 0.0  ;;  %1479 = vmatprep.subr.bf16.mxu0 %v5315_v0 }
  0xf0   : > { %v539_v10 = vpop.f32.mrf.mxu0  ;;  %1015 = vmatmul.mubr.bf16.gmra.mxu1 %v730_v2  ;;  %v5932_v5 = vpop.f32.mrf.mxu1 }
  0xf1   : > { %v540_v12 = vadd.f32 %v539_v10, %v5804_v59  ;;  %v676_v13 = vmax.f32 %v538_v6, 0.0 }
  0xf2   : > { %v543_v14 = vpop.f32.mrf.mxu0  ;;  %1480 = vmatpush2.bf16.msra.mxu0 %v5313_v8 }
  0xf3   : > { %v677_v18 = vmax.f32 %v540_v12, 0.0  ;;  %v732_v25 = vpack.c.bf16 %v676_v13, %v674_v21  ;;  %v544_v33 = vadd.f32 %v543_v14, %v5807_v60  ;;  %v5318_v12 = vld [vmem:[%s7184_s3 + $0x1b4] ss:$8 sps:$4 sm:$0xff]  }
  0xf4   : > { %v545_v22 = vpop.f32.mrf.mxu0  ;;  %1481 = vmatprep.subr.bf16.mxu0 %v5318_v12 }
  0xf5   : > { %v733_v24 = vpack.c.bf16 %v677_v18, %v675_v17  ;;  %v546_v29 = vadd.f32 %v545_v22, %v5804_v59  ;;  %v678_v45 = vmax.f32 %v544_v33, 0.0  ;;  %v5940_v18 = vpop.f32.mrf.mxu1  ;;  %v5316_v22 = vld [vmem:[%s7184_s3 + $0x1b0] ss:$8 sps:$4 sm:$0xff]  }
  0xf6   : > { %v547_v27 = vpop.f32.mrf.mxu0  ;;  %1482 = vmatpush2.bf16.msra.mxu0 %v5316_v22  ;;  %v5321_v22 = vld [vmem:[%s7184_s3 + $0x1a4] ss:$8 sps:$4 sm:$0xff]  }
  0xf7   : > { %v548_v30 = vadd.f32 %v547_v27, %v5807_v60  ;;  %1024 = vmatprep.mubr.bf16.mxu1 %v733_v24  ;;  %v679_v41 = vmax.f32 %v546_v29, 0.0  ;;  %1483 = vmatprep.subr.bf16.mxu0 %v5321_v22 }
  0xf8   : > { %v549_v34 = vpop.f32.mrf.mxu0  ;;  %1025 = vmatmul.mubr.bf16.gmra.mxu1 %v732_v25 }
  0xf9   : > { %v550_v36 = vadd.f32 %v549_v34, %v5804_v59  ;;  %v680_v38 = vmax.f32 %v548_v30, 0.0  ;;  %v5949_v30 = vpop.f32.mrf.mxu1 }
  0xfa   : > { %v553_v39 = vpop.f32.mrf.mxu0 }
  0xfb   : > { %v681_v43 = vmax.f32 %v550_v36, 0.0  ;;  %v734_v50 = vpack.c.bf16 %v680_v38, %v678_v45  ;;  %v554_v61 = vadd.f32 %v553_v39, %v5807_v60  ;;  %v586_v36 = vadd.f32 %v5827_v15, %v5804_v59  ;;  %v5955_v44 = vpop.f32.mrf.mxu1 }
  0xfc   : > { %v555_v46 = vpop.f32.mrf.mxu0  ;;  %v590_v39 = vadd.f32 %v5840_v26, %v5804_v59 }
  0xfd   : > { %v735_v49 = vpack.c.bf16 %v681_v43, %v679_v41  ;;  %v556_v54 = vadd.f32 %v555_v46, %v5804_v59  ;;  %v682_v10 = vmax.f32 %v554_v61, 0.0 }
  0xfe   : > { %v557_v51 = vpop.f32.mrf.mxu0 }
  0xff   : > { %v558_v57 = vadd.f32 %v557_v51, %v5807_v60  ;;  %1034 = vmatprep.mubr.bf16.mxu1 %v735_v49  ;;  %v683_v6 = vmax.f32 %v556_v54, 0.0  ;;  %v697_v51 = vmax.f32 %v590_v39, 0.0 }
 0x100   : > { %v559_v62 = vpop.f32.mrf.mxu0  ;;  %1035 = vmatmul.mubr.bf16.gmra.mxu1 %v734_v50  ;;  %v695_v50 = vmax.f32 %v586_v36, 0.0  ;;  %v608_v36 = vadd.f32 %v5880_v4, %v5807_v60  ;;  %v626_v4 = vadd.f32 %v5949_v30, %v5804_v59 }
 0x101   : > { %v560_v1 = vadd.f32 %v559_v62, %v5804_v59  ;;  %v684_v2 = vmax.f32 %v558_v57, 0.0  ;;  %v629_v57 = vpop.f32.mrf.mxu1  ;;  %v596_v62 = vadd.f32 %v5851_v37, %v5804_v59 }
 0x102   : > { %v563_v3 = vpop.f32.mrf.mxu0 }
 0x103   : > { %v685_v7 = vmax.f32 %v560_v1, 0.0  ;;  %v736_v14 = vpack.c.bf16 %v684_v2, %v682_v10  ;;  %v564_v23 = vadd.f32 %v563_v3, %v5807_v60  ;;  %v743_v1 = vpack.c.bf16 %v697_v51, %v695_v50  ;;  %v5969_v8 = vpop.f32.mrf.mxu1 }
 0x104   : > { %v565_v11 = vpop.f32.mrf.mxu0  ;;  %v600_v2 = vadd.f32 %v5864_v48, %v5804_v59  ;;  %v584_v3 = vadd.f32 %v5822_v9, %v5807_v60  ;;  %v699_v10 = vmax.f32 %v596_v62, 0.0  ;;  %v606_v48 = vadd.f32 %v5875_v63, %v5804_v59 }
 0x105   : > { %v737_v13 = vpack.c.bf16 %v685_v7, %v683_v6  ;;  %v566_v19 = vadd.f32 %v565_v11, %v5804_v59  ;;  %v686_v34 = vmax.f32 %v564_v23, 0.0  ;;  %v588_v7 = vadd.f32 %v5832_v20, %v5807_v60 }
 0x106   : > { %v567_v17 = vpop.f32.mrf.mxu0  ;;  %v701_v11 = vmax.f32 %v600_v2, 0.0  ;;  %v694_v37 = vmax.f32 %v584_v3, 0.0  ;;  %v610_v9 = vadd.f32 %v5892_v16, %v5804_v59  ;;  %v594_v20 = vadd.f32 %v5846_v31, %v5807_v60  ;;  %v5319_v16 = vld [vmem:[%s7184_s3 + $0x1a0] ss:$8 sps:$4 sm:$0xff]  }
 0x107   : > { %v568_v21 = vadd.f32 %v567_v17, %v5807_v60  ;;  %1044 = vmatprep.mubr.bf16.mxu1 %v737_v13  ;;  %v687_v32 = vmax.f32 %v566_v19, 0.0  ;;  %v696_v12 = vmax.f32 %v588_v7, 0.0  ;;  %v635_v13 = vpop.f32.mrf.mxu1  ;;  %v598_v19 = vadd.f32 %v5856_v42, %v5807_v60  ;;  %1484 = vmatpush2.bf16.msra.mxu0 %v5319_v16  ;;  %v5324_v42 = vld [vmem:[%s7184_s3 + $0x194] ss:$8 sps:$4 sm:$0xff]  }
 0x108   : > { %v569_v24 = vpop.f32.mrf.mxu0  ;;  %1045 = vmatmul.mubr.bf16.gmra.mxu1 %v736_v14  ;;  %v745_v14 = vpack.c.bf16 %v701_v11, %v699_v10  ;;  %v703_v23 = vmax.f32 %v606_v48, 0.0  ;;  %v705_v63 = vmax.f32 %v610_v9, 0.0  ;;  %1485 = vmatprep.subr.bf16.mxu0 %v5324_v42  ;;  %v614_v50 = vadd.f32 %v5900_v28, %v5807_v60 }
 0x109   : > { %v570_v25 = vadd.f32 %v569_v24, %v5804_v59  ;;  %v688_v27 = vmax.f32 %v568_v21, 0.0  ;;  %v742_v17 = vpack.c.bf16 %v696_v12, %v694_v37  ;;  %v5979_v21 = vpop.f32.mrf.mxu1  ;;  %v698_v24 = vmax.f32 %v594_v20, 0.0 }
 0x10a   : > { %v573_v29 = vpop.f32.mrf.mxu0  ;;  %v636_v30 = vadd.f32 %v635_v13, %v5804_v59  ;;  %v624_v28 = vadd.f32 %v5940_v18, %v5807_v60  ;;  %v634_v18 = vadd.f32 %v5969_v8, %v5807_v60 }
 0x10b   : > { %v689_v33 = vmax.f32 %v570_v25, 0.0  ;;  %v738_v41 = vpack.c.bf16 %v688_v27, %v686_v34  ;;  %v574_v47 = vadd.f32 %v573_v29, %v5807_v60  ;;  %v700_v25 = vmax.f32 %v598_v19, 0.0  ;;  %v639_v31 = vpop.f32.mrf.mxu1 }
 0x10c   : > { %v575_v35 = vpop.f32.mrf.mxu0  ;;  %v616_v27 = vadd.f32 %v5912_v40, %v5804_v59  ;;  %v747_v29 = vpack.c.bf16 %v705_v63, %v703_v23  ;;  %v5327_v40 = vld [vmem:[%s7184_s3 + $0x184] ss:$8 sps:$4 sm:$0xff]   ;;  %v715_v3 = vmax.f32 %v636_v30, 0.0  ;;  %v710_v7 = vmax.f32 %v624_v28, 0.0 }
 0x10d   : > { %v739_v38 = vpack.c.bf16 %v689_v33, %v687_v32  ;;  %v576_v45 = vadd.f32 %v575_v35, %v5804_v59  ;;  %v690_v61 = vmax.f32 %v574_v47, 0.0  ;;  %v620_v32 = vadd.f32 %v5932_v5, %v5804_v59  ;;  %v5322_v33 = vld [vmem:[%s7184_s3 + $0x190] ss:$8 sps:$4 sm:$0xff]   ;;  %v5351_v28 = vld [vmem:[%s7184_s3 + $0x204] ss:$8 sps:$4 sm:$0xff]  }
 0x10e   : > { %v577_v43 = vpop.f32.mrf.mxu0  ;;  %v744_v34 = vpack.c.bf16 %v700_v25, %v698_v24  ;;  %v604_v35 = vadd.f32 %v5870_v53, %v5807_v60  ;;  %1486 = vmatpush2.bf16.msra.mxu0 %v5322_v33  ;;  %v707_v5 = vmax.f32 %v616_v27, 0.0  ;;  %v704_v53 = vmax.f32 %v608_v36, 0.0 }
 0x10f   : > { %v578_v46 = vadd.f32 %v577_v43, %v5807_v60  ;;  %1054 = vmatprep.mubr.bf16.mxu1 %v739_v38  ;;  %v691_v26 = vmax.f32 %v576_v45, 0.0  ;;  %v643_v38 = vpop.f32.mrf.mxu1  ;;  %v709_v39 = vmax.f32 %v620_v32, 0.0  ;;  %1487 = vmatprep.subr.bf16.mxu0 %v5327_v40  ;;  %v630_v47 = vadd.f32 %v629_v57, %v5804_v59  ;;  %v5330_v40 = vld [vmem:[%s7184_s3 + $0x274] ss:$8 sps:$4 sm:$0xff]  }
 0x110   : > { %v579_v49 = vpop.f32.mrf.mxu0  ;;  %1055 = vmatmul.mubr.bf16.gmra.mxu1 %v738_v41  ;;  %v5325_v41 = vld [vmem:[%s7184_s3 + $0x180] ss:$8 sps:$4 sm:$0xff]   ;;  %v702_v43 = vmax.f32 %v604_v35, 0.0  ;;  %v640_v57 = vadd.f32 %v639_v31, %v5804_v59  ;;  %v714_v20 = vmax.f32 %v634_v18, 0.0  ;;  %v644_v25 = vadd.f32 %v643_v38, %v5807_v60  ;;  %v5328_v38 = vld [vmem:[%s7184_s3 + $0x270] ss:$8 sps:$4 sm:$0xff]   ;;  %1952 = vmatprep.subr.bf16.mxu1 %v5330_v40 }
 0x111   : > { %v580_v15 = vadd.f32 %v579_v49, %v5804_v59  ;;  %v692_v54 = vmax.f32 %v578_v46, 0.0  ;;  %v645_v45 = vpop.f32.mrf.mxu1  ;;  %v749_v46 = vpack.c.bf16 %v709_v39, %v707_v5  ;;  %1953 = vmatpush1.bf16.msra.mxu1 %v5328_v38  ;;  %v5333_v5 = vld [vmem:[%s7184_s3 + $0x264] ss:$8 sps:$4 sm:$0xff]   ;;  %v5334_v39 = vld [vmem:[%s7184_s3 + $0x250] ss:$8 sps:$4 sm:$0xff]  }
 0x112   : > { %1488 = vmatpush2.bf16.msra.mxu0 %v5325_v41  ;;  %v746_v49 = vpack.c.bf16 %v704_v53, %v702_v43  ;;  %v646_v37 = vadd.f32 %v645_v45, %v5804_v59  ;;  %v718_v42 = vmax.f32 %v644_v25, 0.0  ;;  %1954 = vmatprep.subr.bf16.mxu1 %v5333_v5  ;;  %v5336_v41 = vld [vmem:[%s7184_s3 + $0x254] ss:$8 sps:$4 sm:$0xff]   ;;  %v5337_v43 = vld [vmem:[%s7184_s3 + $0x240] ss:$8 sps:$4 sm:$0xff]  }
 0x113   : > { %v693_v58 = vmax.f32 %v580_v15, 0.0  ;;  %v740_v6 = vpack.c.bf16 %v692_v54, %v690_v61  ;;  %v618_v15 = vadd.f32 %v5920_v52, %v5807_v60  ;;  %v647_v51 = vpop.f32.mrf.mxu1  ;;  %v711_v54 = vmax.f32 %v626_v4, 0.0  ;;  %v5339_v53 = vld [vmem:[%s7184_s3 + $0x244] ss:$8 sps:$4 sm:$0xff]   ;;  %v5340_v45 = vld [vmem:[%s7184_s3 + $0x230] ss:$8 sps:$4 sm:$0xff]  }
 0x114   : > { %v628_v52 = vadd.f32 %v5955_v44, %v5807_v60  ;;  %v638_v44 = vadd.f32 %v5979_v21, %v5807_v60  ;;  %v719_v9 = vmax.f32 %v646_v37, 0.0  ;;  %v648_v8 = vadd.f32 %v647_v51, %v5807_v60  ;;  %v5342_v4 = vld [vmem:[%s7184_s3 + $0x234] ss:$8 sps:$4 sm:$0xff]  }
 0x115   : > { %v741_v0 = vpack.c.bf16 %v693_v58, %v691_v26  ;;  %v713_v26 = vmax.f32 %v630_v47, 0.0  ;;  %v706_v58 = vmax.f32 %v614_v50, 0.0  ;;  %v708_v61 = vmax.f32 %v618_v15, 0.0  ;;  %v649_v62 = vpop.f32.mrf.mxu1  ;;  %v5343_v50 = vld [vmem:[%s7184_s3 + $0x220] ss:$8 sps:$4 sm:$0xff]  }
 0x116   : > { %v712_v10 = vmax.f32 %v628_v52, 0.0  ;;  %v650_v13 = vadd.f32 %v649_v62, %v5804_v59  ;;  %v716_v19 = vmax.f32 %v638_v44, 0.0  ;;  %v720_v27 = vmax.f32 %v648_v8, 0.0  ;;  %v5345_v15 = vld [vmem:[%s7184_s3 + $0x224] ss:$8 sps:$4 sm:$0xff]  }
 0x117   : > { %1064 = vmatprep.mubr.bf16.mxu1 %v741_v0  ;;  %v751_v0 = vpack.c.bf16 %v713_v26, %v711_v54  ;;  %v653_v2 = vpop.f32.mrf.mxu1  ;;  %v5354_v37 = vld [vmem:[%s7184_s3 + $0x2f4] ss:$8 sps:$4 sm:$0xff]  }
 0x118   : > { %1065 = vmatmul.mubr.bf16.gmra.mxu1 %v740_v6  ;;  %v717_v6 = vmax.f32 %v640_v57, 0.0  ;;  %v750_v48 = vpack.c.bf16 %v712_v10, %v710_v7  ;;  %v752_v24 = vpack.c.bf16 %v716_v19, %v714_v20  ;;  %v754_v32 = vpack.c.bf16 %v720_v27, %v718_v42  ;;  %v5348_v57 = vld [vmem:[%s7184_s3 + $0x214] ss:$8 sps:$4 sm:$0xff]   ;;  %v5349_v7 = vld [vmem:[%s7184_s3 + $0x200] ss:$8 sps:$4 sm:$0xff]  }
 0x119   : > { %1074 = vmatprep.mubr.bf16.mxu1 %v743_v1  ;;  %v748_v1 = vpack.c.bf16 %v708_v61, %v706_v58  ;;  %v655_v11 = vpop.f32.mrf.mxu1  ;;  %v654_v33 = vadd.f32 %v653_v2, %v5807_v60  ;;  %v5357_v20 = vld [vmem:[%s7184_s3 + $0x2e4] ss:$8 sps:$4 sm:$0xff]  }
 0x11a   : > { %v753_v12 = vpack.c.bf16 %v717_v6, %v715_v3  ;;  %v656_v23 = vadd.f32 %v655_v11, %v5804_v59 }
 0x11c   : > { %v723_v21 = vmax.f32 %v656_v23, 0.0 }
 0x120   : > { %1075 = vmatmul.mubr.bf16.gmra.mxu1 %v742_v17  ;;  %v721_v17 = vmax.f32 %v650_v13, 0.0 }
 0x121   : > { %1084 = vmatprep.mubr.bf16.mxu1 %v745_v14  ;;  %v657_v14 = vpop.f32.mrf.mxu1 }
 0x122   : > { %v755_v63 = vpack.c.bf16 %v721_v17, %v719_v9 }
 0x123   : > { %v659_v22 = vpop.f32.mrf.mxu1 }
 0x124   : > { %v660_v16 = vadd.f32 %v659_v22, %v5804_v59  ;;  %v722_v59 = vmax.f32 %v654_v33, 0.0  ;;  %v5358_v33 = vld [vmem:[%s7184_s3 + $0x2d0] ss:$8 sps:$4 sm:$0xff]  }
 0x126   : > { %v725_v31 = vmax.f32 %v660_v16, 0.0 }
 0x128   : > { %1085 = vmatmul.mubr.bf16.gmra.mxu1 %v744_v34  ;;  %v658_v34 = vadd.f32 %v657_v14, %v5807_v60  ;;  %v5331_v60 = vld [vmem:[%s7184_s3 + $0x260] ss:$8 sps:$4 sm:$0xff]   ;;  %v5352_v14 = vld [vmem:[%s7184_s3 + $0x2f0] ss:$8 sps:$4 sm:$0xff]  }
 0x129   : > { %1094 = vmatprep.mubr.bf16.mxu1 %v747_v29  ;;  %v757_v29 = vpack.c.bf16 %v725_v31, %v723_v21  ;;  %1955 = vmatpush1.bf16.msra.mxu1 %v5331_v60  ;;  %v5360_v21 = vld [vmem:[%s7184_s3 + $0x2d4] ss:$8 sps:$4 sm:$0xff]  }
 0x12a   : > { %v724_v35 = vmax.f32 %v658_v34, 0.0  ;;  %1956 = vmatprep.subr.bf16.mxu1 %v5336_v41 }
 0x12c   : > { %v756_v36 = vpack.c.bf16 %v724_v35, %v722_v59  ;;  %v5363_v35 = vld [vmem:[%s7184_s3 + $0x2c4] ss:$8 sps:$4 sm:$0xff]  }
 0x12d   : > { %1957 = vmatpush1.bf16.msra.mxu1 %v5334_v39  ;;  %v5361_v39 = vld [vmem:[%s7184_s3 + $0x2c0] ss:$8 sps:$4 sm:$0xff]  }
 0x12e   : > { %1958 = vmatprep.subr.bf16.mxu1 %v5339_v53  ;;  %v5366_v53 = vld [vmem:[%s7184_s3 + $0x2b4] ss:$8 sps:$4 sm:$0xff]  }
 0x130   : > { %1095 = vmatmul.mubr.bf16.gmra.mxu1 %v746_v49 }
 0x131   : > { %1104 = vmatprep.mubr.bf16.mxu1 %v749_v46  ;;  %1959 = vmatpush1.bf16.msra.mxu1 %v5337_v43  ;;  %v790_v46 = vld [vmem:[%s7185_s4] sm:$0x3] }
 0x132   : > { %1960 = vmatprep.subr.bf16.mxu1 %v5342_v4  ;;  %v6066_v49 = vrot.slane %v790_v46, %v5796_v55  ;;  %v6075_v51 = vrot.slane %v790_v46, %v5798_v56 }
 0x135   : > { %1961 = vmatpush1.bf16.msra.mxu1 %v5340_v45 }
 0x136   : > { %1962 = vmatprep.subr.bf16.mxu1 %v5345_v15  ;;  %v5364_v15 = vld [vmem:[%s7184_s3 + $0x2b0] ss:$8 sps:$4 sm:$0xff]  }
 0x138   : > { %1105 = vmatmul.mubr.bf16.gmra.mxu1 %v748_v1 }
 0x139   : > { %1114 = vmatprep.mubr.bf16.mxu1 %v751_v0  ;;  %1963 = vmatpush1.bf16.msra.mxu1 %v5343_v50  ;;  %v5346_v0 = vld [vmem:[%s7184_s3 + $0x210] ss:$8 sps:$4 sm:$0xff]  }
 0x13a   : > { %1964 = vmatprep.subr.bf16.mxu1 %v5348_v57 }
 0x13d   : > { %1965 = vmatpush1.bf16.msra.mxu1 %v5346_v0 }
 0x13e   : > { %1966 = vmatprep.subr.bf16.mxu1 %v5351_v28 }
 0x140   : > { %1115 = vmatmul.mubr.bf16.gmra.mxu1 %v750_v48 }
 0x141   : > { %1124 = vmatprep.mubr.bf16.mxu1 %v753_v12  ;;  %1967 = vmatpush1.bf16.msra.mxu1 %v5349_v7 }
 0x142   : > { %1968 = vmatprep.subr.bf16.mxu1 %v5354_v37  ;;  %v5370_v37 = vld [vmem:[%s7184_s3 + $0x290] ss:$8 sps:$4 sm:$0xff]  }
 0x145   : > { %1969 = vmatpush2.bf16.msra.mxu1 %v5352_v14 }
 0x146   : > { %1970 = vmatprep.subr.bf16.mxu1 %v5357_v20 }
 0x148   : > { %1125 = vmatmul.mubr.bf16.gmra.mxu1 %v752_v24  ;;  %v5355_v24 = vld [vmem:[%s7184_s3 + $0x2e0] ss:$8 sps:$4 sm:$0xff]  }
 0x149   : > { %1134 = vmatprep.mubr.bf16.mxu1 %v755_v63  ;;  %1971 = vmatpush2.bf16.msra.mxu1 %v5355_v24 }
 0x14a   : > { %1972 = vmatprep.subr.bf16.mxu1 %v5360_v21 }
 0x14d   : > { %1973 = vmatpush2.bf16.msra.mxu1 %v5358_v33 }
 0x14e   : > { %1974 = vmatprep.subr.bf16.mxu1 %v5363_v35 }
 0x150   : > { %1135 = vmatmul.mubr.bf16.gmra.mxu1 %v754_v32 }
 0x151   : > { %1144 = vmatprep.mubr.bf16.mxu1 %v757_v29  ;;  %1975 = vmatpush2.bf16.msra.mxu1 %v5361_v39 }
 0x152   : > { %1976 = vmatprep.subr.bf16.mxu1 %v5366_v53 }
 0x155   : > { %1977 = vmatpush2.bf16.msra.mxu1 %v5364_v15 }
 0x158   : > { %1145 = vmatmul.mubr.bf16.gmra.mxu1 %v756_v36 }
 0x1a0   : > { %v996_v47 = vpop.f32.mrf.mxu1 }
 0x1a1   : > { %v997_v62 = vadd.f32 %v996_v47, %v6075_v51 }
 0x1a2   : > { %v998_v54 = vpop.f32.mrf.mxu1 }
 0x1a3   : > { %v999_v58 = vadd.f32 %v998_v54, %v6066_v49  ;;  %v1155_v10 = vmax.f32 %v997_v62, 0.0 }
 0x1a4   : > { %v1000_v26 = vpop.f32.mrf.mxu1 }
 0x1a5   : > { %v1001_v61 = vadd.f32 %v1000_v26, %v6075_v51  ;;  %v1156_v3 = vmax.f32 %v999_v58, 0.0  ;;  %v5369_v58 = vld [vmem:[%s7184_s3 + $0x2a4] ss:$8 sps:$4 sm:$0xff]  }
 0x1a6   : > { %v1002_v30 = vpop.f32.mrf.mxu1  ;;  %1978 = vmatprep.subr.bf16.mxu1 %v5369_v58 }
 0x1a7   : > { %v1003_v1 = vadd.f32 %v1002_v30, %v6066_v49  ;;  %v1157_v52 = vmax.f32 %v1001_v61, 0.0 }
 0x1a8   : > { %v1006_v2 = vpop.f32.mrf.mxu1 }
 0x1a9   : > { %v1158_v6 = vmax.f32 %v1003_v1, 0.0  ;;  %v1219_v13 = vpack.c.bf16 %v1157_v52, %v1155_v10  ;;  %v1007_v9 = vadd.f32 %v1006_v2, %v6075_v51  ;;  %v5367_v1 = vld [vmem:[%s7184_s3 + $0x2a0] ss:$8 sps:$4 sm:$0xff]   ;;  %v5372_v2 = vld [vmem:[%s7184_s3 + $0x294] ss:$8 sps:$4 sm:$0xff]  }
 0x1aa   : > { %v1008_v11 = vpop.f32.mrf.mxu1  ;;  %1979 = vmatpush2.bf16.msra.mxu1 %v5367_v1 }
 0x1ab   : > { %v1220_v12 = vpack.c.bf16 %v1158_v6, %v1156_v3  ;;  %v1009_v18 = vadd.f32 %v1008_v11, %v6066_v49  ;;  %v1159_v25 = vmax.f32 %v1007_v9, 0.0  ;;  %1980 = vmatprep.subr.bf16.mxu1 %v5372_v2 }
 0x1ac   : > { %v1010_v48 = vpop.f32.mrf.mxu1 }
 0x1ad   : > { %v1011_v44 = vadd.f32 %v1010_v48, %v6075_v51  ;;  %1489 = vmatprep.mubr.bf16.mxu0 %v1220_v12  ;;  %v1160_v63 = vmax.f32 %v1009_v18, 0.0 }
 0x1ae   : > { %v1012_v17 = vpop.f32.mrf.mxu1  ;;  %1490 = vmatmul.mubr.bf16.vlgmr.msra.gmra.mxu0 %v1219_v13  ;;  %1981 = vmatpush2.bf16.msra.mxu1 %v5370_v37 }
 0x1af   : > { %v1013_v19 = vadd.f32 %v1012_v17, %v6066_v49  ;;  %v1161_v22 = vmax.f32 %v1011_v44, 0.0 }
 0x1b0   : > { %v1016_v23 = vpop.f32.mrf.mxu1 }
 0x1b1   : > { %v1162_v16 = vmax.f32 %v1013_v19, 0.0  ;;  %v1221_v42 = vpack.c.bf16 %v1161_v22, %v1159_v25  ;;  %v1017_v34 = vadd.f32 %v1016_v23, %v6075_v51 }
 0x1b2   : > { %v1018_v8 = vpop.f32.mrf.mxu1 }
 0x1b3   : > { %v1222_v31 = vpack.c.bf16 %v1162_v16, %v1160_v63  ;;  %v1019_v29 = vadd.f32 %v1018_v8, %v6066_v49  ;;  %v1163_v41 = vmax.f32 %v1017_v34, 0.0 }
 0x1b4   : > { %v1020_v27 = vpop.f32.mrf.mxu1 }
 0x1b5   : > { %v1021_v32 = vadd.f32 %v1020_v27, %v6075_v51  ;;  %1499 = vmatprep.mubr.bf16.mxu0 %v1222_v31  ;;  %v1164_v60 = vmax.f32 %v1019_v29, 0.0 }
 0x1b6   : > { %v1022_v59 = vpop.f32.mrf.mxu1  ;;  %1500 = vmatmul.mubr.bf16.gmra.mxu0 %v1221_v42 }
 0x1b7   : > { %v1023_v36 = vadd.f32 %v1022_v59, %v6066_v49  ;;  %v1165_v38 = vmax.f32 %v1021_v32, 0.0 }
 0x1b8   : > { %v1026_v40 = vpop.f32.mrf.mxu1 }
 0x1b9   : > { %v1166_v5 = vmax.f32 %v1023_v36, 0.0  ;;  %v1223_v4 = vpack.c.bf16 %v1165_v38, %v1163_v41  ;;  %v1027_v54 = vadd.f32 %v1026_v40, %v6075_v51 }
 0x1ba   : > { %v1028_v43 = vpop.f32.mrf.mxu1 }
 0x1bb   : > { %v1224_v45 = vpack.c.bf16 %v1166_v5, %v1164_v60  ;;  %v1029_v47 = vadd.f32 %v1028_v43, %v6066_v49  ;;  %v1167_v28 = vmax.f32 %v1027_v54, 0.0 }
 0x1bc   : > { %v1030_v46 = vpop.f32.mrf.mxu1 }
 0x1bd   : > { %v1031_v50 = vadd.f32 %v1030_v46, %v6075_v51  ;;  %1509 = vmatprep.mubr.bf16.mxu0 %v1224_v45  ;;  %v1168_v0 = vmax.f32 %v1029_v47, 0.0 }
 0x1be   : > { %v1032_v26 = vpop.f32.mrf.mxu1  ;;  %1510 = vmatmul.mubr.bf16.gmra.mxu0 %v1223_v4 }
 0x1bf   : > { %v1033_v61 = vadd.f32 %v1032_v26, %v6066_v49  ;;  %v1169_v62 = vmax.f32 %v1031_v50, 0.0 }
 0x1c0   : > { %v1036_v30 = vpop.f32.mrf.mxu1 }
 0x1c1   : > { %v1170_v57 = vmax.f32 %v1033_v61, 0.0  ;;  %v1225_v6 = vpack.c.bf16 %v1169_v62, %v1167_v28  ;;  %v1037_v12 = vadd.f32 %v1036_v30, %v6075_v51 }
 0x1c2   : > { %v1038_v52 = vpop.f32.mrf.mxu1 }
 0x1c3   : > { %v1226_v3 = vpack.c.bf16 %v1170_v57, %v1168_v0  ;;  %v1039_v10 = vadd.f32 %v1038_v52, %v6066_v49  ;;  %v1171_v17 = vmax.f32 %v1037_v12, 0.0 }
 0x1c4   : > { %v1040_v7 = vpop.f32.mrf.mxu1 }
 0x1c5   : > { %v1041_v11 = vadd.f32 %v1040_v7, %v6075_v51  ;;  %1519 = vmatprep.mubr.bf16.mxu0 %v1226_v3  ;;  %v1172_v14 = vmax.f32 %v1039_v10, 0.0 }
 0x1c6   : > { %v1042_v13 = vpop.f32.mrf.mxu1  ;;  %1520 = vmatmul.mubr.bf16.gmra.mxu0 %v1225_v6 }
 0x1c7   : > { %v1043_v48 = vadd.f32 %v1042_v13, %v6066_v49  ;;  %v1173_v18 = vmax.f32 %v1041_v11, 0.0 }
 0x1c8   : > { %v1046_v44 = vpop.f32.mrf.mxu1 }
 0x1c9   : > { %v1174_v9 = vmax.f32 %v1043_v48, 0.0  ;;  %v1227_v22 = vpack.c.bf16 %v1173_v18, %v1171_v17  ;;  %v1047_v24 = vadd.f32 %v1046_v44, %v6075_v51 }
 0x1ca   : > { %v1048_v20 = vpop.f32.mrf.mxu1 }
 0x1cb   : > { %v1228_v19 = vpack.c.bf16 %v1174_v9, %v1172_v14  ;;  %v1049_v63 = vadd.f32 %v1048_v20, %v6066_v49  ;;  %v1175_v29 = vmax.f32 %v1047_v24, 0.0 }
 0x1cc   : > { %v1050_v23 = vpop.f32.mrf.mxu1 }
 0x1cd   : > { %v1051_v16 = vadd.f32 %v1050_v23, %v6075_v51  ;;  %1529 = vmatprep.mubr.bf16.mxu0 %v1228_v19  ;;  %v1176_v42 = vmax.f32 %v1049_v63, 0.0 }
 0x1ce   : > { %v1052_v25 = vpop.f32.mrf.mxu1  ;;  %1530 = vmatmul.mubr.bf16.gmra.mxu0 %v1227_v22 }
 0x1cf   : > { %v1053_v8 = vadd.f32 %v1052_v25, %v6066_v49  ;;  %v1177_v21 = vmax.f32 %v1051_v16, 0.0 }
 0x1d0   : > { %v1056_v31 = vpop.f32.mrf.mxu1 }
 0x1d1   : > { %v1178_v27 = vmax.f32 %v1053_v8, 0.0  ;;  %v1229_v34 = vpack.c.bf16 %v1177_v21, %v1175_v29  ;;  %v1057_v38 = vadd.f32 %v1056_v31, %v6075_v51 }
 0x1d2   : > { %v1058_v32 = vpop.f32.mrf.mxu1 }
 0x1d3   : > { %v1230_v33 = vpack.c.bf16 %v1178_v27, %v1176_v42  ;;  %v1059_v35 = vadd.f32 %v1058_v32, %v6066_v49  ;;  %v1179_v53 = vmax.f32 %v1057_v38, 0.0  ;;  %v5373_v38 = vld [vmem:[%s7184_s3 + $0x280] ss:$8 sps:$4 sm:$0xff]  }
 0x1d4   : > { %v1060_v59 = vpop.f32.mrf.mxu1 }
 0x1d5   : > { %v1061_v36 = vadd.f32 %v1060_v59, %v6075_v51  ;;  %1539 = vmatprep.mubr.bf16.mxu0 %v1230_v33  ;;  %v1180_v41 = vmax.f32 %v1059_v35, 0.0  ;;  %v5375_v35 = vld [vmem:[%s7184_s3 + $0x284] ss:$8 sps:$4 sm:$0xff]  }
 0x1d6   : > { %v1062_v40 = vpop.f32.mrf.mxu1  ;;  %1540 = vmatmul.mubr.bf16.gmra.mxu0 %v1229_v34  ;;  %1982 = vmatprep.subr.bf16.mxu1 %v5375_v35 }
 0x1d7   : > { %v1063_v60 = vadd.f32 %v1062_v40, %v6066_v49  ;;  %v1181_v5 = vmax.f32 %v1061_v36, 0.0  ;;  %1983 = vmatpush2.bf16.msra.mxu1 %v5373_v38 }
 0x1d8   : > { %v1066_v39 = vpop.f32.mrf.mxu1 }
 0x1d9   : > { %v1182_v43 = vmax.f32 %v1063_v60, 0.0  ;;  %v1231_v46 = vpack.c.bf16 %v1181_v5, %v1179_v53  ;;  %v1067_v54 = vadd.f32 %v1066_v39, %v6075_v51 }
 0x1da   : > { %v1068_v45 = vpop.f32.mrf.mxu1 }
 0x1db   : > { %v1232_v4 = vpack.c.bf16 %v1182_v43, %v1180_v41  ;;  %v1069_v50 = vadd.f32 %v1068_v45, %v6066_v49  ;;  %v1183_v57 = vmax.f32 %v1067_v54, 0.0 }
 0x1dc   : > { %v1070_v47 = vpop.f32.mrf.mxu1 }
 0x1dd   : > { %v1071_v15 = vadd.f32 %v1070_v47, %v6075_v51  ;;  %1549 = vmatprep.mubr.bf16.mxu0 %v1232_v4  ;;  %v1184_v30 = vmax.f32 %v1069_v50, 0.0 }
 0x1de   : > { %v1072_v26 = vpop.f32.mrf.mxu1  ;;  %1550 = vmatmul.mubr.bf16.gmra.mxu0 %v1231_v46 }
 0x1df   : > { %v1073_v58 = vadd.f32 %v1072_v26, %v6066_v49  ;;  %v1185_v61 = vmax.f32 %v1071_v15, 0.0 }
 0x1e0   : > { %v1076_v62 = vpop.f32.mrf.mxu1 }
 0x1e1   : > { %v1186_v0 = vmax.f32 %v1073_v58, 0.0  ;;  %v1233_v52 = vpack.c.bf16 %v1185_v61, %v1183_v57  ;;  %v1077_v7 = vadd.f32 %v1076_v62, %v6075_v51 }
 0x1e2   : > { %v1078_v1 = vpop.f32.mrf.mxu1 }
 0x1e3   : > { %v1234_v28 = vpack.c.bf16 %v1186_v0, %v1184_v30  ;;  %v1079_v3 = vadd.f32 %v1078_v1, %v6066_v49  ;;  %v1187_v18 = vmax.f32 %v1077_v7, 0.0 }
 0x1e4   : > { %v1080_v2 = vpop.f32.mrf.mxu1 }
 0x1e5   : > { %v1081_v6 = vadd.f32 %v1080_v2, %v6075_v51  ;;  %1559 = vmatprep.mubr.bf16.mxu0 %v1234_v28  ;;  %v1188_v13 = vmax.f32 %v1079_v3, 0.0 }
 0x1e6   : > { %v1082_v10 = vpop.f32.mrf.mxu1  ;;  %1560 = vmatmul.mubr.bf16.gmra.mxu0 %v1233_v52 }
 0x1e7   : > { %v1083_v11 = vadd.f32 %v1082_v10, %v6066_v49  ;;  %v1189_v37 = vmax.f32 %v1081_v6, 0.0 }
 0x1e8   : > { %v1086_v12 = vpop.f32.mrf.mxu1 }
 0x1e9   : > { %v1190_v48 = vmax.f32 %v1083_v11, 0.0  ;;  %v1235_v9 = vpack.c.bf16 %v1189_v37, %v1187_v18  ;;  %v1087_v22 = vadd.f32 %v1086_v12, %v6075_v51 }
 0x1ea   : > { %v1088_v44 = vpop.f32.mrf.mxu1 }
 0x1eb   : > { %v1236_v14 = vpack.c.bf16 %v1190_v48, %v1188_v13  ;;  %v1089_v20 = vadd.f32 %v1088_v44, %v6066_v49  ;;  %v1191_v21 = vmax.f32 %v1087_v22, 0.0 }
 0x1ec   : > { %v1090_v17 = vpop.f32.mrf.mxu1 }
 0x1ed   : > { %v1091_v19 = vadd.f32 %v1090_v17, %v6075_v51  ;;  %1569 = vmatprep.mubr.bf16.mxu0 %v1236_v14  ;;  %v1192_v25 = vmax.f32 %v1089_v20, 0.0 }
 0x1ee   : > { %v1092_v23 = vpop.f32.mrf.mxu1  ;;  %1570 = vmatmul.mubr.bf16.gmra.mxu0 %v1235_v9 }
 0x1ef   : > { %v1093_v63 = vadd.f32 %v1092_v23, %v6066_v49  ;;  %v1193_v16 = vmax.f32 %v1091_v19, 0.0 }
 0x1f0   : > { %v1096_v24 = vpop.f32.mrf.mxu1 }
 0x1f1   : > { %v1194_v8 = vmax.f32 %v1093_v63, 0.0  ;;  %v1237_v27 = vpack.c.bf16 %v1193_v16, %v1191_v21  ;;  %v1097_v34 = vadd.f32 %v1096_v24, %v6075_v51 }
 0x1f2   : > { %v1098_v31 = vpop.f32.mrf.mxu1 }
 0x1f3   : > { %v1238_v42 = vpack.c.bf16 %v1194_v8, %v1192_v25  ;;  %v1099_v32 = vadd.f32 %v1098_v31, %v6066_v49  ;;  %v1195_v41 = vmax.f32 %v1097_v34, 0.0 }
 0x1f4   : > { %v1100_v29 = vpop.f32.mrf.mxu1 }
 0x1f5   : > { %v1101_v33 = vadd.f32 %v1100_v29, %v6075_v51  ;;  %1579 = vmatprep.mubr.bf16.mxu0 %v1238_v42  ;;  %v1196_v5 = vmax.f32 %v1099_v32, 0.0 }
 0x1f6   : > { %v1102_v59 = vpop.f32.mrf.mxu1  ;;  %1580 = vmatmul.mubr.bf16.gmra.mxu0 %v1237_v27 }
 0x1f7   : > { %v1103_v36 = vadd.f32 %v1102_v59, %v6066_v49  ;;  %v1197_v40 = vmax.f32 %v1101_v33, 0.0 }
 0x1f8   : > { %v1106_v60 = vpop.f32.mrf.mxu1 }
 0x1f9   : > { %v1198_v39 = vmax.f32 %v1103_v36, 0.0  ;;  %v1239_v45 = vpack.c.bf16 %v1197_v40, %v1195_v41  ;;  %v1107_v50 = vadd.f32 %v1106_v60, %v6075_v51 }
 0x1fa   : > { %v1108_v43 = vpop.f32.mrf.mxu1 }
 0x1fb   : > { %v1240_v53 = vpack.c.bf16 %v1198_v39, %v1196_v5  ;;  %v1109_v46 = vadd.f32 %v1108_v43, %v6066_v49  ;;  %v1199_v30 = vmax.f32 %v1107_v50, 0.0 }
 0x1fc   : > { %v1110_v4 = vpop.f32.mrf.mxu1 }
 0x1fd   : > { %v1111_v47 = vadd.f32 %v1110_v4, %v6075_v51  ;;  %1589 = vmatprep.mubr.bf16.mxu0 %v1240_v53  ;;  %v1200_v61 = vmax.f32 %v1109_v46, 0.0 }
 0x1fe   : > { %v1112_v15 = vpop.f32.mrf.mxu1  ;;  %1590 = vmatmul.mubr.bf16.gmra.mxu0 %v1239_v45 }
 0x1ff   : > { %v1113_v54 = vadd.f32 %v1112_v15, %v6066_v49  ;;  %v1201_v26 = vmax.f32 %v1111_v47, 0.0 }
 0x200   : > { %v1116_v58 = vpop.f32.mrf.mxu1 }
 0x201   : > { %v1202_v62 = vmax.f32 %v1113_v54, 0.0  ;;  %v1241_v1 = vpack.c.bf16 %v1201_v26, %v1199_v30  ;;  %v1117_v3 = vadd.f32 %v1116_v58, %v6075_v51  ;;  %v5382_v30 = vld [vmem:[%s7184_s3 + $0x350] ss:$8 sps:$4 sm:$0xff]  }
 0x202   : > { %v1118_v0 = vpop.f32.mrf.mxu1 }
 0x203   : > { %v1242_v57 = vpack.c.bf16 %v1202_v62, %v1200_v61  ;;  %v1119_v52 = vadd.f32 %v1118_v0, %v6066_v49  ;;  %v1203_v13 = vmax.f32 %v1117_v3, 0.0  ;;  %v5376_v61 = vld [vmem:[%s7184_s3 + $0x370] ss:$8 sps:$4 sm:$0xff]   ;;  %v5381_v62 = vld [vmem:[%s7184_s3 + $0x364] ss:$8 sps:$4 sm:$0xff]  }
 0x204   : > { %v1120_v28 = vpop.f32.mrf.mxu1  ;;  %v5384_v0 = vld [vmem:[%s7184_s3 + $0x354] ss:$8 sps:$4 sm:$0xff]  }
 0x205   : > { %v1121_v2 = vadd.f32 %v1120_v28, %v6075_v51  ;;  %1599 = vmatprep.mubr.bf16.mxu0 %v1242_v57  ;;  %v1204_v37 = vmax.f32 %v1119_v52, 0.0  ;;  %v5385_v57 = vld [vmem:[%s7184_s3 + $0x340] ss:$8 sps:$4 sm:$0xff]   ;;  %v5388_v28 = vld [vmem:[%s7184_s3 + $0x330] ss:$8 sps:$4 sm:$0xff]  }
 0x206   : > { %v1122_v6 = vpop.f32.mrf.mxu1  ;;  %1600 = vmatmul.mubr.bf16.gmra.mxu0 %v1241_v1  ;;  %v5387_v1 = vld [vmem:[%s7184_s3 + $0x344] ss:$8 sps:$4 sm:$0xff]   ;;  %v5390_v52 = vld [vmem:[%s7184_s3 + $0x334] ss:$8 sps:$4 sm:$0xff]  }
 0x207   : > { %v1123_v7 = vadd.f32 %v1122_v6, %v6066_v49  ;;  %v1205_v10 = vmax.f32 %v1121_v2, 0.0  ;;  %v4714_v2 = vld [vmem:[%s7185_s4 + $0x2] sm:$0x3] }
 0x208   : > { %v1126_v11 = vpop.f32.mrf.mxu1  ;;  %v6235_v6 = vrot.slane %v4714_v2, %v5796_v55 }
 0x209   : > { %v1206_v12 = vmax.f32 %v1123_v7, 0.0  ;;  %v1243_v44 = vpack.c.bf16 %v1205_v10, %v1203_v13  ;;  %v1127_v20 = vadd.f32 %v1126_v11, %v6075_v51  ;;  %v5391_v7 = vld [vmem:[%s7184_s3 + $0x320] ss:$8 sps:$4 sm:$0xff]   ;;  %v5393_v10 = vld [vmem:[%s7184_s3 + $0x324] ss:$8 sps:$4 sm:$0xff]   ;;  %v6244_v11 = vrot.slane %v4714_v2, %v5798_v56 }
 0x20a   : > { %v1128_v48 = vpop.f32.mrf.mxu1 }
 0x20b   : > { %v1244_v18 = vpack.c.bf16 %v1206_v12, %v1204_v37  ;;  %v1129_v9 = vadd.f32 %v1128_v48, %v6066_v49  ;;  %v1207_v25 = vmax.f32 %v1127_v20, 0.0  ;;  %v5399_v20 = vld [vmem:[%s7184_s3 + $0x304] ss:$8 sps:$4 sm:$0xff]  }
 0x20c   : > { %v1130_v14 = vpop.f32.mrf.mxu1 }
 0x20d   : > { %v1131_v17 = vadd.f32 %v1130_v14, %v6075_v51  ;;  %1609 = vmatprep.mubr.bf16.mxu0 %v1244_v18  ;;  %v1208_v16 = vmax.f32 %v1129_v9, 0.0  ;;  %v5394_v14 = vld [vmem:[%s7184_s3 + $0x310] ss:$8 sps:$4 sm:$0xff]   ;;  %v5396_v9 = vld [vmem:[%s7184_s3 + $0x314] ss:$8 sps:$4 sm:$0xff]  }
 0x20e   : > { %v1132_v19 = vpop.f32.mrf.mxu1  ;;  %1610 = vmatmul.mubr.bf16.gmra.mxu0 %v1243_v44 }
 0x20f   : > { %v1133_v22 = vadd.f32 %v1132_v19, %v6066_v49  ;;  %v1209_v23 = vmax.f32 %v1131_v17, 0.0 }
 0x210   : > { %v1136_v63 = vpop.f32.mrf.mxu1 }
 0x211   : > { %v1210_v24 = vmax.f32 %v1133_v22, 0.0  ;;  %v1245_v31 = vpack.c.bf16 %v1209_v23, %v1207_v25  ;;  %v1137_v32 = vadd.f32 %v1136_v63, %v6075_v51 }
 0x212   : > { %v1138_v8 = vpop.f32.mrf.mxu1 }
 0x213   : > { %v1246_v21 = vpack.c.bf16 %v1210_v24, %v1208_v16  ;;  %v1139_v27 = vadd.f32 %v1138_v8, %v6066_v49  ;;  %v1211_v40 = vmax.f32 %v1137_v32, 0.0  ;;  %v5397_v16 = vld [vmem:[%s7184_s3 + $0x300] ss:$8 sps:$4 sm:$0xff]   ;;  %v5402_v8 = vld [vmem:[%s7184_s3 + $0x3f4] ss:$8 sps:$4 sm:$0xff]  }
 0x214   : > { %v1140_v42 = vpop.f32.mrf.mxu1  ;;  %v5400_v32 = vld [vmem:[%s7184_s3 + $0x3f0] ss:$8 sps:$4 sm:$0xff]  }
 0x215   : > { %v1141_v29 = vadd.f32 %v1140_v42, %v6075_v51  ;;  %1619 = vmatprep.mubr.bf16.mxu0 %v1246_v21  ;;  %v1212_v36 = vmax.f32 %v1139_v27, 0.0 }
 0x216   : > { %v1142_v33 = vpop.f32.mrf.mxu1  ;;  %1620 = vmatmul.mubr.bf16.gmra.mxu0 %v1245_v31 }
 0x217   : > { %v1143_v34 = vadd.f32 %v1142_v33, %v6066_v49  ;;  %v1213_v59 = vmax.f32 %v1141_v29, 0.0 }
 0x218   : > { %v1146_v35 = vpop.f32.mrf.mxu1 }
 0x219   : > { %v1214_v38 = vmax.f32 %v1143_v34, 0.0  ;;  %v1247_v39 = vpack.c.bf16 %v1213_v59, %v1211_v40  ;;  %v1147_v45 = vadd.f32 %v1146_v35, %v6075_v51  ;;  %v5405_v59 = vld [vmem:[%s7184_s3 + $0x3e4] ss:$8 sps:$4 sm:$0xff]  }
 0x21a   : > { %v1148_v60 = vpop.f32.mrf.mxu1 }
 0x21b   : > { %v1248_v5 = vpack.c.bf16 %v1214_v38, %v1212_v36  ;;  %v1149_v43 = vadd.f32 %v1148_v60, %v6066_v49  ;;  %v1215_v54 = vmax.f32 %v1147_v45, 0.0 }
 0x21c   : > { %v1150_v41 = vpop.f32.mrf.mxu1 }
 0x21d   : > { %v1151_v53 = vadd.f32 %v1150_v41, %v6075_v51  ;;  %1629 = vmatprep.mubr.bf16.mxu0 %v1248_v5  ;;  %v1216_v50 = vmax.f32 %v1149_v43, 0.0  ;;  %v5378_v51 = vld [vmem:[%s7184_s3 + $0x374] ss:$8 sps:$4 sm:$0xff]   ;;  %v5403_v5 = vld [vmem:[%s7184_s3 + $0x3e0] ss:$8 sps:$4 sm:$0xff]  }
 0x21e   : > { %v1152_v4 = vpop.f32.mrf.mxu1  ;;  %1630 = vmatmul.mubr.bf16.gmra.mxu0 %v1247_v39  ;;  %2447 = vmatprep.subr.bf16.mxu0 %v5378_v51  ;;  %v5408_v43 = vld [vmem:[%s7184_s3 + $0x3d4] ss:$8 sps:$4 sm:$0xff]  }
 0x21f   : > { %v1153_v46 = vadd.f32 %v1152_v4, %v6066_v49  ;;  %v1217_v47 = vmax.f32 %v1151_v53, 0.0  ;;  %2448 = vmatpush1.bf16.msra.mxu0 %v5376_v61  ;;  %v5379_v49 = vld [vmem:[%s7184_s3 + $0x360] ss:$8 sps:$4 sm:$0xff]  }
 0x220   : > { %2449 = vmatprep.subr.bf16.mxu0 %v5381_v62 }
 0x221   : > { %v1218_v15 = vmax.f32 %v1153_v46, 0.0  ;;  %v1249_v58 = vpack.c.bf16 %v1217_v47, %v1215_v54 }
 0x223   : > { %v1250_v26 = vpack.c.bf16 %v1218_v15, %v1216_v50  ;;  %2450 = vmatpush1.bf16.msra.mxu0 %v5379_v49  ;;  %v5406_v50 = vld [vmem:[%s7184_s3 + $0x3d0] ss:$8 sps:$4 sm:$0xff]  }
 0x224   : > { %2451 = vmatprep.subr.bf16.mxu0 %v5384_v0 }
 0x225   : > { %1639 = vmatprep.mubr.bf16.mxu0 %v1250_v26  ;;  %v5411_v26 = vld [vmem:[%s7184_s3 + $0x3c4] ss:$8 sps:$4 sm:$0xff]  }
 0x226   : > { %1640 = vmatmul.mubr.bf16.gmra.mxu0 %v1249_v58 }
 0x227   : > { %2452 = vmatpush1.bf16.msra.mxu0 %v5382_v30  ;;  %v5409_v30 = vld [vmem:[%s7184_s3 + $0x3c0] ss:$8 sps:$4 sm:$0xff]  }
 0x228   : > { %2453 = vmatprep.subr.bf16.mxu0 %v5387_v1  ;;  %v5414_v1 = vld [vmem:[%s7184_s3 + $0x3b4] ss:$8 sps:$4 sm:$0xff]  }
 0x22b   : > { %2454 = vmatpush1.bf16.msra.mxu0 %v5385_v57 }
 0x22c   : > { %2455 = vmatprep.subr.bf16.mxu0 %v5390_v52 }
 0x22f   : > { %2456 = vmatpush1.bf16.msra.mxu0 %v5388_v28 }
 0x230   : > { %2457 = vmatprep.subr.bf16.mxu0 %v5393_v10  ;;  %v5412_v10 = vld [vmem:[%s7184_s3 + $0x3b0] ss:$8 sps:$4 sm:$0xff]  }
 0x233   : > { %2458 = vmatpush1.bf16.msra.mxu0 %v5391_v7 }
 0x234   : > { %2459 = vmatprep.subr.bf16.mxu0 %v5396_v9 }
 0x237   : > { %2460 = vmatpush1.bf16.msra.mxu0 %v5394_v14 }
 0x238   : > { %2461 = vmatprep.subr.bf16.mxu0 %v5399_v20 }
 0x23b   : > { %2462 = vmatpush1.bf16.msra.mxu0 %v5397_v16 }
 0x23c   : > { %2463 = vmatprep.subr.bf16.mxu0 %v5402_v8  ;;  %v5418_v8 = vld [vmem:[%s7184_s3 + $0x390] ss:$8 sps:$4 sm:$0xff]  }
 0x23f   : > { %2464 = vmatpush2.bf16.msra.mxu0 %v5400_v32 }
 0x240   : > { %2465 = vmatprep.subr.bf16.mxu0 %v5405_v59 }
 0x243   : > { %2466 = vmatpush2.bf16.msra.mxu0 %v5403_v5 }
 0x244   : > { %2467 = vmatprep.subr.bf16.mxu0 %v5408_v43 }
 0x247   : > { %2468 = vmatpush2.bf16.msra.mxu0 %v5406_v50 }
 0x248   : > { %2469 = vmatprep.subr.bf16.mxu0 %v5411_v26 }
 0x24b   : > { %2470 = vmatpush2.bf16.msra.mxu0 %v5409_v30 }
 0x24c   : > { %2471 = vmatprep.subr.bf16.mxu0 %v5414_v1 }
 0x24f   : > { %2472 = vmatpush2.bf16.msra.mxu0 %v5412_v10 }
 0x26e   : > { %v1491_v3 = vpop.f32.mrf.mxu0 }
 0x26f   : > { %v1492_v18 = vadd.f32 %v1491_v3, %v6244_v11 }
 0x270   : > { %v1493_v37 = vpop.f32.mrf.mxu0 }
 0x271   : > { %v1494_v13 = vadd.f32 %v1493_v37, %v6235_v6  ;;  %v1650_v24 = vmax.f32 %v1492_v18, 0.0 }
 0x272   : > { %v1495_v12 = vpop.f32.mrf.mxu0 }
 0x273   : > { %v1496_v48 = vadd.f32 %v1495_v12, %v6244_v11  ;;  %v1651_v23 = vmax.f32 %v1494_v13, 0.0  ;;  %v5417_v13 = vld [vmem:[%s7184_s3 + $0x3a4] ss:$8 sps:$4 sm:$0xff]  }
 0x274   : > { %v1497_v44 = vpop.f32.mrf.mxu0  ;;  %2473 = vmatprep.subr.bf16.mxu0 %v5417_v13 }
 0x275   : > { %v1498_v17 = vadd.f32 %v1497_v44, %v6235_v6  ;;  %v1652_v19 = vmax.f32 %v1496_v48, 0.0 }
 0x276   : > { %v1501_v22 = vpop.f32.mrf.mxu0 }
 0x277   : > { %v1653_v63 = vmax.f32 %v1498_v17, 0.0  ;;  %v1714_v31 = vpack.c.bf16 %v1652_v19, %v1650_v24  ;;  %v1502_v33 = vadd.f32 %v1501_v22, %v6244_v11  ;;  %v5415_v17 = vld [vmem:[%s7184_s3 + $0x3a0] ss:$8 sps:$4 sm:$0xff]   ;;  %v5420_v22 = vld [vmem:[%s7184_s3 + $0x394] ss:$8 sps:$4 sm:$0xff]  }
 0x278   : > { %v1503_v25 = vpop.f32.mrf.mxu0  ;;  %2474 = vmatpush2.bf16.msra.mxu0 %v5415_v17 }
 0x279   : > { %v1715_v21 = vpack.c.bf16 %v1653_v63, %v1651_v23  ;;  %v1504_v27 = vadd.f32 %v1503_v25, %v6235_v6  ;;  %v1654_v39 = vmax.f32 %v1502_v33, 0.0  ;;  %2475 = vmatprep.subr.bf16.mxu0 %v5420_v22 }
 0x27a   : > { %v1505_v42 = vpop.f32.mrf.mxu0 }
 0x27b   : > { %v1506_v29 = vadd.f32 %v1505_v42, %v6244_v11  ;;  %1984 = vmatprep.mubr.bf16.mxu1 %v1715_v21  ;;  %v1655_v40 = vmax.f32 %v1504_v27, 0.0 }
 0x27c   : > { %v1507_v34 = vpop.f32.mrf.mxu0  ;;  %1985 = vmatmul.mubr.bf16.vlgmr.msra.gmra.mxu1 %v1714_v31  ;;  %2476 = vmatpush2.bf16.msra.mxu0 %v5418_v8 }
 0x27d   : > { %v1508_v35 = vadd.f32 %v1507_v34, %v6235_v6  ;;  %v1656_v36 = vmax.f32 %v1506_v29, 0.0 }
 0x27e   : > { %v1511_v38 = vpop.f32.mrf.mxu0 }
 0x27f   : > { %v1657_v60 = vmax.f32 %v1508_v35, 0.0  ;;  %v1716_v45 = vpack.c.bf16 %v1656_v36, %v1654_v39  ;;  %v1512_v15 = vadd.f32 %v1511_v38, %v6244_v11 }
 0x280   : > { %v1513_v41 = vpop.f32.mrf.mxu0 }
 0x281   : > { %v1717_v53 = vpack.c.bf16 %v1657_v60, %v1655_v40  ;;  %v1514_v46 = vadd.f32 %v1513_v41, %v6235_v6  ;;  %v1658_v0 = vmax.f32 %v1512_v15, 0.0 }
 0x282   : > { %v1515_v4 = vpop.f32.mrf.mxu0 }
 0x283   : > { %v1516_v47 = vadd.f32 %v1515_v4, %v6244_v11  ;;  %1994 = vmatprep.mubr.bf16.mxu1 %v1717_v53  ;;  %v1659_v49 = vmax.f32 %v1514_v46, 0.0 }
 0x284   : > { %v1517_v54 = vpop.f32.mrf.mxu0  ;;  %1995 = vmatmul.mubr.bf16.gmra.mxu1 %v1716_v45 }
 0x285   : > { %v1518_v58 = vadd.f32 %v1517_v54, %v6235_v6  ;;  %v1660_v61 = vmax.f32 %v1516_v47, 0.0 }
 0x286   : > { %v1521_v51 = vpop.f32.mrf.mxu0 }
 0x287   : > { %v1661_v62 = vmax.f32 %v1518_v58, 0.0  ;;  %v1718_v52 = vpack.c.bf16 %v1660_v61, %v1658_v0  ;;  %v1522_v37 = vadd.f32 %v1521_v51, %v6244_v11 }
 0x288   : > { %v1523_v57 = vpop.f32.mrf.mxu0 }
 0x289   : > { %v1719_v28 = vpack.c.bf16 %v1661_v62, %v1659_v49  ;;  %v1524_v3 = vadd.f32 %v1523_v57, %v6235_v6  ;;  %v1662_v20 = vmax.f32 %v1522_v37, 0.0 }
 0x28a   : > { %v1525_v2 = vpop.f32.mrf.mxu0 }
 0x28b   : > { %v1526_v7 = vadd.f32 %v1525_v2, %v6244_v11  ;;  %2004 = vmatprep.mubr.bf16.mxu1 %v1719_v28  ;;  %v1663_v14 = vmax.f32 %v1524_v3, 0.0 }
 0x28c   : > { %v1527_v12 = vpop.f32.mrf.mxu0  ;;  %2005 = vmatmul.mubr.bf16.gmra.mxu1 %v1718_v52 }
 0x28d   : > { %v1528_v48 = vadd.f32 %v1527_v12, %v6235_v6  ;;  %v1664_v18 = vmax.f32 %v1526_v7, 0.0 }
 0x28e   : > { %v1531_v44 = vpop.f32.mrf.mxu0 }
 0x28f   : > { %v1665_v9 = vmax.f32 %v1528_v48, 0.0  ;;  %v1720_v63 = vpack.c.bf16 %v1664_v18, %v1662_v20  ;;  %v1532_v21 = vadd.f32 %v1531_v44, %v6244_v11 }
 0x290   : > { %v1533_v19 = vpop.f32.mrf.mxu0 }
 0x291   : > { %v1721_v23 = vpack.c.bf16 %v1665_v9, %v1663_v14  ;;  %v1534_v24 = vadd.f32 %v1533_v19, %v6235_v6  ;;  %v1666_v34 = vmax.f32 %v1532_v21, 0.0 }
 0x292   : > { %v1535_v16 = vpop.f32.mrf.mxu0 }
 0x293   : > { %v1536_v25 = vadd.f32 %v1535_v16, %v6244_v11  ;;  %2014 = vmatprep.mubr.bf16.mxu1 %v1721_v23  ;;  %v1667_v32 = vmax.f32 %v1534_v24, 0.0 }
 0x294   : > { %v1537_v31 = vpop.f32.mrf.mxu0  ;;  %2015 = vmatmul.mubr.bf16.gmra.mxu1 %v1720_v63 }
 0x295   : > { %v1538_v42 = vadd.f32 %v1537_v31, %v6235_v6  ;;  %v1668_v27 = vmax.f32 %v1536_v25, 0.0 }
 0x296   : > { %v1541_v29 = vpop.f32.mrf.mxu0 }
 0x297   : > { %v1669_v33 = vmax.f32 %v1538_v42, 0.0  ;;  %v1722_v36 = vpack.c.bf16 %v1668_v27, %v1666_v34  ;;  %v1542_v5 = vadd.f32 %v1541_v29, %v6244_v11 }
 0x298   : > { %v1543_v59 = vpop.f32.mrf.mxu0 }
 0x299   : > { %v1723_v35 = vpack.c.bf16 %v1669_v33, %v1667_v32  ;;  %v1544_v40 = vadd.f32 %v1543_v59, %v6235_v6  ;;  %v1670_v46 = vmax.f32 %v1542_v5, 0.0 }
 0x29a   : > { %v1545_v38 = vpop.f32.mrf.mxu0 }
 0x29b   : > { %v1546_v60 = vadd.f32 %v1545_v38, %v6244_v11  ;;  %2024 = vmatprep.mubr.bf16.mxu1 %v1723_v35  ;;  %v1671_v45 = vmax.f32 %v1544_v40, 0.0 }
 0x29c   : > { %v1547_v39 = vpop.f32.mrf.mxu0  ;;  %2025 = vmatmul.mubr.bf16.gmra.mxu1 %v1722_v36 }
 0x29d   : > { %v1548_v41 = vadd.f32 %v1547_v39, %v6235_v6  ;;  %v1672_v43 = vmax.f32 %v1546_v60, 0.0 }
 0x29e   : > { %v1551_v53 = vpop.f32.mrf.mxu0 }
 0x29f   : > { %v1673_v4 = vmax.f32 %v1548_v41, 0.0  ;;  %v1724_v15 = vpack.c.bf16 %v1672_v43, %v1670_v46  ;;  %v1552_v61 = vadd.f32 %v1551_v53, %v6244_v11 }
 0x2a0   : > { %v1553_v47 = vpop.f32.mrf.mxu0 }
 0x2a1   : > { %v1725_v50 = vpack.c.bf16 %v1673_v4, %v1671_v45  ;;  %v1554_v26 = vadd.f32 %v1553_v47, %v6235_v6  ;;  %v1674_v1 = vmax.f32 %v1552_v61, 0.0  ;;  %v5421_v61 = vld [vmem:[%s7184_s3 + $0x380] ss:$8 sps:$4 sm:$0xff]  }
 0x2a2   : > { %v1555_v54 = vpop.f32.mrf.mxu0 }
 0x2a3   : > { %v1556_v58 = vadd.f32 %v1555_v54, %v6244_v11  ;;  %2034 = vmatprep.mubr.bf16.mxu1 %v1725_v50  ;;  %v1675_v0 = vmax.f32 %v1554_v26, 0.0  ;;  %v5423_v26 = vld [vmem:[%s7184_s3 + $0x384] ss:$8 sps:$4 sm:$0xff]  }
 0x2a4   : > { %v1557_v51 = vpop.f32.mrf.mxu0  ;;  %2035 = vmatmul.mubr.bf16.gmra.mxu1 %v1724_v15  ;;  %2477 = vmatprep.subr.bf16.mxu0 %v5423_v26 }
 0x2a5   : > { %v1558_v49 = vadd.f32 %v1557_v51, %v6235_v6  ;;  %v1676_v62 = vmax.f32 %v1556_v58, 0.0  ;;  %2478 = vmatpush2.bf16.msra.mxu0 %v5421_v61 }
 0x2a6   : > { %v1561_v30 = vpop.f32.mrf.mxu0 }
 0x2a7   : > { %v1677_v57 = vmax.f32 %v1558_v49, 0.0  ;;  %v1726_v2 = vpack.c.bf16 %v1676_v62, %v1674_v1  ;;  %v1562_v37 = vadd.f32 %v1561_v30, %v6244_v11 }
 0x2a8   : > { %v1563_v28 = vpop.f32.mrf.mxu0 }
 0x2a9   : > { %v1727_v52 = vpack.c.bf16 %v1677_v57, %v1675_v0  ;;  %v1564_v7 = vadd.f32 %v1563_v28, %v6235_v6  ;;  %v1678_v9 = vmax.f32 %v1562_v37, 0.0 }
 0x2aa   : > { %v1565_v3 = vpop.f32.mrf.mxu0 }
 0x2ab   : > { %v1566_v10 = vadd.f32 %v1565_v3, %v6244_v11  ;;  %2044 = vmatprep.mubr.bf16.mxu1 %v1727_v52  ;;  %v1679_v44 = vmax.f32 %v1564_v7, 0.0 }
 0x2ac   : > { %v1567_v12 = vpop.f32.mrf.mxu0  ;;  %2045 = vmatmul.mubr.bf16.gmra.mxu1 %v1726_v2 }
 0x2ad   : > { %v1568_v13 = vadd.f32 %v1567_v12, %v6235_v6  ;;  %v1680_v48 = vmax.f32 %v1566_v10, 0.0 }
 0x2ae   : > { %v1571_v18 = vpop.f32.mrf.mxu0 }
 0x2af   : > { %v1681_v14 = vmax.f32 %v1568_v13, 0.0  ;;  %v1728_v19 = vpack.c.bf16 %v1680_v48, %v1678_v9  ;;  %v1572_v16 = vadd.f32 %v1571_v18, %v6244_v11 }
 0x2b0   : > { %v1573_v17 = vpop.f32.mrf.mxu0 }
 0x2b1   : > { %v1729_v20 = vpack.c.bf16 %v1681_v14, %v1679_v44  ;;  %v1574_v23 = vadd.f32 %v1573_v17, %v6235_v6  ;;  %v1682_v27 = vmax.f32 %v1572_v16, 0.0 }
 0x2b2   : > { %v1575_v22 = vpop.f32.mrf.mxu0 }
 0x2b3   : > { %v1576_v63 = vadd.f32 %v1575_v22, %v6244_v11  ;;  %2054 = vmatprep.mubr.bf16.mxu1 %v1729_v20  ;;  %v1683_v31 = vmax.f32 %v1574_v23, 0.0 }
 0x2b4   : > { %v1577_v24 = vpop.f32.mrf.mxu0  ;;  %2055 = vmatmul.mubr.bf16.gmra.mxu1 %v1728_v19 }
 0x2b5   : > { %v1578_v25 = vadd.f32 %v1577_v24, %v6235_v6  ;;  %v1684_v8 = vmax.f32 %v1576_v63, 0.0 }
 0x2b6   : > { %v1581_v21 = vpop.f32.mrf.mxu0 }
 0x2b7   : > { %v1685_v42 = vmax.f32 %v1578_v25, 0.0  ;;  %v1730_v33 = vpack.c.bf16 %v1684_v8, %v1682_v27  ;;  %v1582_v36 = vadd.f32 %v1581_v21, %v6244_v11 }
 0x2b8   : > { %v1583_v29 = vpop.f32.mrf.mxu0 }
 0x2b9   : > { %v1731_v32 = vpack.c.bf16 %v1685_v42, %v1683_v31  ;;  %v1584_v59 = vadd.f32 %v1583_v29, %v6235_v6  ;;  %v1686_v43 = vmax.f32 %v1582_v36, 0.0 }
 0x2ba   : > { %v1585_v34 = vpop.f32.mrf.mxu0 }
 0x2bb   : > { %v1586_v35 = vadd.f32 %v1585_v34, %v6244_v11  ;;  %2064 = vmatprep.mubr.bf16.mxu1 %v1731_v32  ;;  %v1687_v39 = vmax.f32 %v1584_v59, 0.0 }
 0x2bc   : > { %v1587_v38 = vpop.f32.mrf.mxu0  ;;  %2065 = vmatmul.mubr.bf16.gmra.mxu1 %v1730_v33 }
 0x2bd   : > { %v1588_v40 = vadd.f32 %v1587_v38, %v6235_v6  ;;  %v1688_v60 = vmax.f32 %v1586_v35, 0.0 }
 0x2be   : > { %v1591_v5 = vpop.f32.mrf.mxu0 }
 0x2bf   : > { %v1689_v41 = vmax.f32 %v1588_v40, 0.0  ;;  %v1732_v4 = vpack.c.bf16 %v1688_v60, %v1686_v43  ;;  %v1592_v15 = vadd.f32 %v1591_v5, %v6244_v11 }
 0x2c0   : > { %v1593_v53 = vpop.f32.mrf.mxu0 }
 0x2c1   : > { %v1733_v45 = vpack.c.bf16 %v1689_v41, %v1687_v39  ;;  %v1594_v47 = vadd.f32 %v1593_v53, %v6235_v6  ;;  %v1690_v0 = vmax.f32 %v1592_v15, 0.0 }
 0x2c2   : > { %v1595_v46 = vpop.f32.mrf.mxu0 }
 0x2c3   : > { %v1596_v50 = vadd.f32 %v1595_v46, %v6244_v11  ;;  %2074 = vmatprep.mubr.bf16.mxu1 %v1733_v45  ;;  %v1691_v62 = vmax.f32 %v1594_v47, 0.0 }
 0x2c4   : > { %v1597_v54 = vpop.f32.mrf.mxu0  ;;  %2075 = vmatmul.mubr.bf16.gmra.mxu1 %v1732_v4 }
 0x2c5   : > { %v1598_v58 = vadd.f32 %v1597_v54, %v6235_v6  ;;  %v1692_v51 = vmax.f32 %v1596_v50, 0.0 }
 0x2c6   : > { %v1601_v49 = vpop.f32.mrf.mxu0 }
 0x2c7   : > { %v1693_v30 = vmax.f32 %v1598_v58, 0.0  ;;  %v1734_v28 = vpack.c.bf16 %v1692_v51, %v1690_v0  ;;  %v1602_v7 = vadd.f32 %v1601_v49, %v6244_v11 }
 0x2c8   : > { %v1603_v57 = vpop.f32.mrf.mxu0 }
 0x2c9   : > { %v1735_v1 = vpack.c.bf16 %v1693_v30, %v1691_v62  ;;  %v1604_v2 = vadd.f32 %v1603_v57, %v6235_v6  ;;  %v1694_v44 = vmax.f32 %v1602_v7, 0.0 }
 0x2ca   : > { %v1605_v52 = vpop.f32.mrf.mxu0 }
 0x2cb   : > { %v1606_v3 = vadd.f32 %v1605_v52, %v6244_v11  ;;  %2084 = vmatprep.mubr.bf16.mxu1 %v1735_v1  ;;  %v1695_v48 = vmax.f32 %v1604_v2, 0.0 }
 0x2cc   : > { %v1607_v10 = vpop.f32.mrf.mxu0  ;;  %2085 = vmatmul.mubr.bf16.gmra.mxu1 %v1734_v28 }
 0x2cd   : > { %v1608_v37 = vadd.f32 %v1607_v10, %v6235_v6  ;;  %v1696_v12 = vmax.f32 %v1606_v3, 0.0 }
 0x2ce   : > { %v1611_v13 = vpop.f32.mrf.mxu0 }
 0x2cf   : > { %v1697_v18 = vmax.f32 %v1608_v37, 0.0  ;;  %v1736_v17 = vpack.c.bf16 %v1696_v12, %v1694_v44  ;;  %v1612_v23 = vadd.f32 %v1611_v13, %v6244_v11  ;;  %v5430_v44 = vld [vmem:[%s7184_s3 + $0x450] ss:$8 sps:$4 sm:$0xff]  }
 0x2d0   : > { %v1613_v14 = vpop.f32.mrf.mxu0 }
 0x2d1   : > { %v1737_v9 = vpack.c.bf16 %v1697_v18, %v1695_v48  ;;  %v1614_v19 = vadd.f32 %v1613_v14, %v6235_v6  ;;  %v1698_v31 = vmax.f32 %v1612_v23, 0.0  ;;  %v5424_v48 = vld [vmem:[%s7184_s3 + $0x470] ss:$8 sps:$4 sm:$0xff]   ;;  %v5429_v18 = vld [vmem:[%s7184_s3 + $0x464] ss:$8 sps:$4 sm:$0xff]  }
 0x2d2   : > { %v1615_v20 = vpop.f32.mrf.mxu0  ;;  %v5432_v14 = vld [vmem:[%s7184_s3 + $0x454] ss:$8 sps:$4 sm:$0xff]  }
 0x2d3   : > { %v1616_v22 = vadd.f32 %v1615_v20, %v6244_v11  ;;  %2094 = vmatprep.mubr.bf16.mxu1 %v1737_v9  ;;  %v1699_v8 = vmax.f32 %v1614_v19, 0.0  ;;  %v5433_v9 = vld [vmem:[%s7184_s3 + $0x440] ss:$8 sps:$4 sm:$0xff]   ;;  %v5436_v20 = vld [vmem:[%s7184_s3 + $0x430] ss:$8 sps:$4 sm:$0xff]  }
 0x2d4   : > { %v1617_v63 = vpop.f32.mrf.mxu0  ;;  %2095 = vmatmul.mubr.bf16.gmra.mxu1 %v1736_v17  ;;  %v5435_v17 = vld [vmem:[%s7184_s3 + $0x444] ss:$8 sps:$4 sm:$0xff]   ;;  %v5438_v19 = vld [vmem:[%s7184_s3 + $0x434] ss:$8 sps:$4 sm:$0xff]  }
 0x2d5   : > { %v1618_v16 = vadd.f32 %v1617_v63, %v6235_v6  ;;  %v1700_v24 = vmax.f32 %v1616_v22, 0.0  ;;  %v4779_v22 = vld [vmem:[%s7185_s4 + $0x4] sm:$0x3] }
 0x2d6   : > { %v1621_v25 = vpop.f32.mrf.mxu0  ;;  %v6404_v63 = vrot.slane %v4779_v22, %v5796_v55 }
 0x2d7   : > { %v1701_v21 = vmax.f32 %v1618_v16, 0.0  ;;  %v1738_v29 = vpack.c.bf16 %v1700_v24, %v1698_v31  ;;  %v1622_v59 = vadd.f32 %v1621_v25, %v6244_v11  ;;  %v5439_v16 = vld [vmem:[%s7184_s3 + $0x420] ss:$8 sps:$4 sm:$0xff]   ;;  %v5441_v24 = vld [vmem:[%s7184_s3 + $0x424] ss:$8 sps:$4 sm:$0xff]   ;;  %v6413_v25 = vrot.slane %v4779_v22, %v5798_v56 }
 0x2d8   : > { %v1623_v42 = vpop.f32.mrf.mxu0 }
 0x2d9   : > { %v1739_v27 = vpack.c.bf16 %v1701_v21, %v1699_v8  ;;  %v1624_v33 = vadd.f32 %v1623_v42, %v6235_v6  ;;  %v1702_v39 = vmax.f32 %v1622_v59, 0.0  ;;  %v5447_v59 = vld [vmem:[%s7184_s3 + $0x404] ss:$8 sps:$4 sm:$0xff]  }
 0x2da   : > { %v1625_v32 = vpop.f32.mrf.mxu0 }
 0x2db   : > { %v1626_v34 = vadd.f32 %v1625_v32, %v6244_v11  ;;  %2104 = vmatprep.mubr.bf16.mxu1 %v1739_v27  ;;  %v1703_v60 = vmax.f32 %v1624_v33, 0.0  ;;  %v5442_v32 = vld [vmem:[%s7184_s3 + $0x410] ss:$8 sps:$4 sm:$0xff]   ;;  %v5444_v33 = vld [vmem:[%s7184_s3 + $0x414] ss:$8 sps:$4 sm:$0xff]  }
 0x2dc   : > { %v1627_v35 = vpop.f32.mrf.mxu0  ;;  %2105 = vmatmul.mubr.bf16.gmra.mxu1 %v1738_v29 }
 0x2dd   : > { %v1628_v36 = vadd.f32 %v1627_v35, %v6235_v6  ;;  %v1704_v38 = vmax.f32 %v1626_v34, 0.0 }
 0x2de   : > { %v1631_v40 = vpop.f32.mrf.mxu0 }
 0x2df   : > { %v1705_v5 = vmax.f32 %v1628_v36, 0.0  ;;  %v1740_v53 = vpack.c.bf16 %v1704_v38, %v1702_v39  ;;  %v1632_v47 = vadd.f32 %v1631_v40, %v6244_v11 }
 0x2e0   : > { %v1633_v41 = vpop.f32.mrf.mxu0 }
 0x2e1   : > { %v1741_v43 = vpack.c.bf16 %v1705_v5, %v1703_v60  ;;  %v1634_v4 = vadd.f32 %v1633_v41, %v6235_v6  ;;  %v1706_v51 = vmax.f32 %v1632_v47, 0.0  ;;  %v5445_v60 = vld [vmem:[%s7184_s3 + $0x400] ss:$8 sps:$4 sm:$0xff]   ;;  %v5450_v41 = vld [vmem:[%s7184_s3 + $0x4f4] ss:$8 sps:$4 sm:$0xff]  }
 0x2e2   : > { %v1635_v45 = vpop.f32.mrf.mxu0  ;;  %v5448_v47 = vld [vmem:[%s7184_s3 + $0x4f0] ss:$8 sps:$4 sm:$0xff]  }
 0x2e3   : > { %v1636_v46 = vadd.f32 %v1635_v45, %v6244_v11  ;;  %2114 = vmatprep.mubr.bf16.mxu1 %v1741_v43  ;;  %v1707_v58 = vmax.f32 %v1634_v4, 0.0 }
 0x2e4   : > { %v1637_v50 = vpop.f32.mrf.mxu0  ;;  %2115 = vmatmul.mubr.bf16.gmra.mxu1 %v1740_v53 }
 0x2e5   : > { %v1638_v15 = vadd.f32 %v1637_v50, %v6235_v6  ;;  %v1708_v54 = vmax.f32 %v1636_v46, 0.0 }
 0x2e6   : > { %v1641_v26 = vpop.f32.mrf.mxu0 }
 0x2e7   : > { %v1709_v61 = vmax.f32 %v1638_v15, 0.0  ;;  %v1742_v30 = vpack.c.bf16 %v1708_v54, %v1706_v51  ;;  %v1642_v28 = vadd.f32 %v1641_v26, %v6244_v11  ;;  %v5453_v54 = vld [vmem:[%s7184_s3 + $0x4e4] ss:$8 sps:$4 sm:$0xff]  }
 0x2e8   : > { %v1643_v49 = vpop.f32.mrf.mxu0 }
 0x2e9   : > { %v1743_v62 = vpack.c.bf16 %v1709_v61, %v1707_v58  ;;  %v1644_v57 = vadd.f32 %v1643_v49, %v6235_v6  ;;  %v1710_v37 = vmax.f32 %v1642_v28, 0.0 }
 0x2ea   : > { %v1645_v0 = vpop.f32.mrf.mxu0 }
 0x2eb   : > { %v1646_v1 = vadd.f32 %v1645_v0, %v6244_v11  ;;  %2124 = vmatprep.mubr.bf16.mxu1 %v1743_v62  ;;  %v1711_v7 = vmax.f32 %v1644_v57, 0.0  ;;  %v5426_v11 = vld [vmem:[%s7184_s3 + $0x474] ss:$8 sps:$4 sm:$0xff]   ;;  %v5451_v62 = vld [vmem:[%s7184_s3 + $0x4e0] ss:$8 sps:$4 sm:$0xff]  }
 0x2ec   : > { %v1647_v52 = vpop.f32.mrf.mxu0  ;;  %2125 = vmatmul.mubr.bf16.gmra.mxu1 %v1742_v30  ;;  %2942 = vmatprep.subr.bf16.mxu1 %v5426_v11  ;;  %v5456_v57 = vld [vmem:[%s7184_s3 + $0x4d4] ss:$8 sps:$4 sm:$0xff]  }
 0x2ed   : > { %v1648_v2 = vadd.f32 %v1647_v52, %v6235_v6  ;;  %v1712_v3 = vmax.f32 %v1646_v1, 0.0  ;;  %2943 = vmatpush1.bf16.msra.mxu1 %v5424_v48  ;;  %v5427_v6 = vld [vmem:[%s7184_s3 + $0x460] ss:$8 sps:$4 sm:$0xff]  }
 0x2ee   : > { %2944 = vmatprep.subr.bf16.mxu1 %v5429_v18 }
 0x2ef   : > { %v1713_v10 = vmax.f32 %v1648_v2, 0.0  ;;  %v1744_v13 = vpack.c.bf16 %v1712_v3, %v1710_v37 }
 0x2f1   : > { %v1745_v12 = vpack.c.bf16 %v1713_v10, %v1711_v7  ;;  %2945 = vmatpush1.bf16.msra.mxu1 %v5427_v6  ;;  %v5454_v7 = vld [vmem:[%s7184_s3 + $0x4d0] ss:$8 sps:$4 sm:$0xff]  }
 0x2f2   : > { %2946 = vmatprep.subr.bf16.mxu1 %v5432_v14 }
 0x2f3   : > { %2134 = vmatprep.mubr.bf16.mxu1 %v1745_v12  ;;  %v5459_v12 = vld [vmem:[%s7184_s3 + $0x4c4] ss:$8 sps:$4 sm:$0xff]  }
 0x2f4   : > { %2135 = vmatmul.mubr.bf16.gmra.mxu1 %v1744_v13 }
 0x2f5   : > { %2947 = vmatpush1.bf16.msra.mxu1 %v5430_v44  ;;  %v5457_v44 = vld [vmem:[%s7184_s3 + $0x4c0] ss:$8 sps:$4 sm:$0xff]  }
 0x2f6   : > { %2948 = vmatprep.subr.bf16.mxu1 %v5435_v17  ;;  %v5462_v17 = vld [vmem:[%s7184_s3 + $0x4b4] ss:$8 sps:$4 sm:$0xff]  }
 0x2f9   : > { %2949 = vmatpush1.bf16.msra.mxu1 %v5433_v9 }
 0x2fa   : > { %2950 = vmatprep.subr.bf16.mxu1 %v5438_v19 }
 0x2fd   : > { %2951 = vmatpush1.bf16.msra.mxu1 %v5436_v20 }
 0x2fe   : > { %2952 = vmatprep.subr.bf16.mxu1 %v5441_v24  ;;  %v5460_v24 = vld [vmem:[%s7184_s3 + $0x4b0] ss:$8 sps:$4 sm:$0xff]  }
 0x301   : > { %2953 = vmatpush1.bf16.msra.mxu1 %v5439_v16 }
 0x302   : > { %2954 = vmatprep.subr.bf16.mxu1 %v5444_v33 }
 0x305   : > { %2955 = vmatpush1.bf16.msra.mxu1 %v5442_v32 }
 0x306   : > { %2956 = vmatprep.subr.bf16.mxu1 %v5447_v59 }
 0x309   : > { %2957 = vmatpush1.bf16.msra.mxu1 %v5445_v60 }
 0x30a   : > { %2958 = vmatprep.subr.bf16.mxu1 %v5450_v41  ;;  %v5466_v41 = vld [vmem:[%s7184_s3 + $0x490] ss:$8 sps:$4 sm:$0xff]  }
 0x30d   : > { %2959 = vmatpush2.bf16.msra.mxu1 %v5448_v47 }
 0x30e   : > { %2960 = vmatprep.subr.bf16.mxu1 %v5453_v54 }
 0x311   : > { %2961 = vmatpush2.bf16.msra.mxu1 %v5451_v62 }
 0x312   : > { %2962 = vmatprep.subr.bf16.mxu1 %v5456_v57 }
 0x315   : > { %2963 = vmatpush2.bf16.msra.mxu1 %v5454_v7 }
 0x316   : > { %2964 = vmatprep.subr.bf16.mxu1 %v5459_v12 }
 0x319   : > { %2965 = vmatpush2.bf16.msra.mxu1 %v5457_v44 }
 0x31a   : > { %2966 = vmatprep.subr.bf16.mxu1 %v5462_v17 }
 0x31d   : > { %2967 = vmatpush2.bf16.msra.mxu1 %v5460_v24 }
 0x33c   : > { %v1986_v23 = vpop.f32.mrf.mxu1 }
 0x33d   : > { %v1987_v27 = vadd.f32 %v1986_v23, %v6413_v25 }
 0x33e   : > { %v1988_v8 = vpop.f32.mrf.mxu1 }
 0x33f   : > { %v1989_v31 = vadd.f32 %v1988_v8, %v6404_v63  ;;  %v2145_v5 = vmax.f32 %v1987_v27, 0.0 }
 0x340   : > { %v1990_v21 = vpop.f32.mrf.mxu1 }
 0x341   : > { %v1991_v42 = vadd.f32 %v1990_v21, %v6413_v25  ;;  %v2146_v38 = vmax.f32 %v1989_v31, 0.0  ;;  %v5465_v31 = vld [vmem:[%s7184_s3 + $0x4a4] ss:$8 sps:$4 sm:$0xff]  }
 0x342   : > { %v1992_v29 = vpop.f32.mrf.mxu1  ;;  %2968 = vmatprep.subr.bf16.mxu1 %v5465_v31 }
 0x343   : > { %v1993_v34 = vadd.f32 %v1992_v29, %v6404_v63  ;;  %v2147_v35 = vmax.f32 %v1991_v42, 0.0 }
 0x344   : > { %v1996_v36 = vpop.f32.mrf.mxu1 }
 0x345   : > { %v2148_v40 = vmax.f32 %v1993_v34, 0.0  ;;  %v2209_v53 = vpack.c.bf16 %v2147_v35, %v2145_v5  ;;  %v1997_v50 = vadd.f32 %v1996_v36, %v6413_v25  ;;  %v5463_v34 = vld [vmem:[%s7184_s3 + $0x4a0] ss:$8 sps:$4 sm:$0xff]   ;;  %v5468_v36 = vld [vmem:[%s7184_s3 + $0x494] ss:$8 sps:$4 sm:$0xff]  }
 0x346   : > { %v1998_v39 = vpop.f32.mrf.mxu1  ;;  %2969 = vmatpush2.bf16.msra.mxu1 %v5463_v34 }
 0x347   : > { %v2210_v43 = vpack.c.bf16 %v2148_v40, %v2146_v38  ;;  %v1999_v4 = vadd.f32 %v1998_v39, %v6404_v63  ;;  %v2149_v30 = vmax.f32 %v1997_v50, 0.0  ;;  %2970 = vmatprep.subr.bf16.mxu1 %v5468_v36 }
 0x348   : > { %v2000_v45 = vpop.f32.mrf.mxu1 }
 0x349   : > { %v2001_v46 = vadd.f32 %v2000_v45, %v6413_v25  ;;  %2479 = vmatprep.mubr.bf16.mxu0 %v2210_v43  ;;  %v2150_v51 = vmax.f32 %v1999_v4, 0.0 }
 0x34a   : > { %v2002_v15 = vpop.f32.mrf.mxu1  ;;  %2480 = vmatmul.mubr.bf16.vlgmr.msra.gmra.mxu0 %v2209_v53  ;;  %2971 = vmatpush2.bf16.msra.mxu1 %v5466_v41 }
 0x34b   : > { %v2003_v26 = vadd.f32 %v2002_v15, %v6404_v63  ;;  %v2151_v58 = vmax.f32 %v2001_v46, 0.0 }
 0x34c   : > { %v2006_v61 = vpop.f32.mrf.mxu1 }
 0x34d   : > { %v2152_v49 = vmax.f32 %v2003_v26, 0.0  ;;  %v2211_v28 = vpack.c.bf16 %v2151_v58, %v2149_v30  ;;  %v2007_v10 = vadd.f32 %v2006_v61, %v6413_v25 }
 0x34e   : > { %v2008_v0 = vpop.f32.mrf.mxu1 }
 0x34f   : > { %v2212_v1 = vpack.c.bf16 %v2152_v49, %v2150_v51  ;;  %v2009_v2 = vadd.f32 %v2008_v0, %v6404_v63  ;;  %v2153_v14 = vmax.f32 %v2007_v10, 0.0 }
 0x350   : > { %v2010_v52 = vpop.f32.mrf.mxu1 }
 0x351   : > { %v2011_v3 = vadd.f32 %v2010_v52, %v6413_v25  ;;  %2489 = vmatprep.mubr.bf16.mxu0 %v2212_v1  ;;  %v2154_v6 = vmax.f32 %v2009_v2, 0.0 }
 0x352   : > { %v2012_v37 = vpop.f32.mrf.mxu1  ;;  %2490 = vmatmul.mubr.bf16.gmra.mxu0 %v2211_v28 }
 0x353   : > { %v2013_v13 = vadd.f32 %v2012_v37, %v6404_v63  ;;  %v2155_v48 = vmax.f32 %v2011_v3, 0.0 }
 0x354   : > { %v2016_v11 = vpop.f32.mrf.mxu1 }
 0x355   : > { %v2156_v18 = vmax.f32 %v2013_v13, 0.0  ;;  %v2213_v19 = vpack.c.bf16 %v2155_v48, %v2153_v14  ;;  %v2017_v8 = vadd.f32 %v2016_v11, %v6413_v25 }
 0x356   : > { %v2018_v9 = vpop.f32.mrf.mxu1 }
 0x357   : > { %v2214_v20 = vpack.c.bf16 %v2156_v18, %v2154_v6  ;;  %v2019_v23 = vadd.f32 %v2018_v9, %v6404_v63  ;;  %v2157_v59 = vmax.f32 %v2017_v8, 0.0 }
 0x358   : > { %v2020_v22 = vpop.f32.mrf.mxu1 }
 0x359   : > { %v2021_v16 = vadd.f32 %v2020_v22, %v6413_v25  ;;  %2499 = vmatprep.mubr.bf16.mxu0 %v2214_v20  ;;  %v2158_v32 = vmax.f32 %v2019_v23, 0.0 }
 0x35a   : > { %v2022_v21 = vpop.f32.mrf.mxu1  ;;  %2500 = vmatmul.mubr.bf16.gmra.mxu0 %v2213_v19 }
 0x35b   : > { %v2023_v42 = vadd.f32 %v2022_v21, %v6404_v63  ;;  %v2159_v27 = vmax.f32 %v2021_v16, 0.0 }
 0x35c   : > { %v2026_v29 = vpop.f32.mrf.mxu1 }
 0x35d   : > { %v2160_v33 = vmax.f32 %v2023_v42, 0.0  ;;  %v2215_v40 = vpack.c.bf16 %v2159_v27, %v2157_v59  ;;  %v2027_v43 = vadd.f32 %v2026_v29, %v6413_v25 }
 0x35e   : > { %v2028_v35 = vpop.f32.mrf.mxu1 }
 0x35f   : > { %v2216_v38 = vpack.c.bf16 %v2160_v33, %v2158_v32  ;;  %v2029_v5 = vadd.f32 %v2028_v35, %v6404_v63  ;;  %v2161_v15 = vmax.f32 %v2027_v43, 0.0 }
 0x360   : > { %v2030_v60 = vpop.f32.mrf.mxu1 }
 0x361   : > { %v2031_v39 = vadd.f32 %v2030_v60, %v6413_v25  ;;  %2509 = vmatprep.mubr.bf16.mxu0 %v2216_v38  ;;  %v2162_v47 = vmax.f32 %v2029_v5, 0.0 }
 0x362   : > { %v2032_v53 = vpop.f32.mrf.mxu1  ;;  %2510 = vmatmul.mubr.bf16.gmra.mxu0 %v2215_v40 }
 0x363   : > { %v2033_v45 = vadd.f32 %v2032_v53, %v6404_v63  ;;  %v2163_v4 = vmax.f32 %v2031_v39, 0.0 }
 0x364   : > { %v2036_v46 = vpop.f32.mrf.mxu1 }
 0x365   : > { %v2164_v50 = vmax.f32 %v2033_v45, 0.0  ;;  %v2217_v58 = vpack.c.bf16 %v2163_v4, %v2161_v15  ;;  %v2037_v62 = vadd.f32 %v2036_v46, %v6413_v25 }
 0x366   : > { %v2038_v54 = vpop.f32.mrf.mxu1 }
 0x367   : > { %v2218_v26 = vpack.c.bf16 %v2164_v50, %v2162_v47  ;;  %v2039_v51 = vadd.f32 %v2038_v54, %v6404_v63  ;;  %v2165_v2 = vmax.f32 %v2037_v62, 0.0 }
 0x368   : > { %v2040_v61 = vpop.f32.mrf.mxu1 }
 0x369   : > { %v2041_v49 = vadd.f32 %v2040_v61, %v6413_v25  ;;  %2519 = vmatprep.mubr.bf16.mxu0 %v2218_v26  ;;  %v2166_v28 = vmax.f32 %v2039_v51, 0.0 }
 0x36a   : > { %v2042_v30 = vpop.f32.mrf.mxu1  ;;  %2520 = vmatmul.mubr.bf16.gmra.mxu0 %v2217_v58 }
 0x36b   : > { %v2043_v0 = vadd.f32 %v2042_v30, %v6404_v63  ;;  %v2167_v57 = vmax.f32 %v2041_v49, 0.0 }
 0x36c   : > { %v2046_v1 = vpop.f32.mrf.mxu1 }
 0x36d   : > { %v2168_v52 = vmax.f32 %v2043_v0, 0.0  ;;  %v2219_v10 = vpack.c.bf16 %v2167_v57, %v2165_v2  ;;  %v2047_v48 = vadd.f32 %v2046_v1, %v6413_v25 }
 0x36e   : > { %v2048_v3 = vpop.f32.mrf.mxu1 }
 0x36f   : > { %v2220_v7 = vpack.c.bf16 %v2168_v52, %v2166_v28  ;;  %v2049_v12 = vadd.f32 %v2048_v3, %v6404_v63  ;;  %v2169_v17 = vmax.f32 %v2047_v48, 0.0  ;;  %v5469_v48 = vld [vmem:[%s7184_s3 + $0x480] ss:$8 sps:$4 sm:$0xff]  }
 0x370   : > { %v2050_v37 = vpop.f32.mrf.mxu1 }
 0x371   : > { %v2051_v13 = vadd.f32 %v2050_v37, %v6413_v25  ;;  %2529 = vmatprep.mubr.bf16.mxu0 %v2220_v7  ;;  %v2170_v14 = vmax.f32 %v2049_v12, 0.0  ;;  %v5471_v12 = vld [vmem:[%s7184_s3 + $0x484] ss:$8 sps:$4 sm:$0xff]  }
 0x372   : > { %v2052_v11 = vpop.f32.mrf.mxu1  ;;  %2530 = vmatmul.mubr.bf16.gmra.mxu0 %v2219_v10  ;;  %2972 = vmatprep.subr.bf16.mxu1 %v5471_v12 }
 0x373   : > { %v2053_v6 = vadd.f32 %v2052_v11, %v6404_v63  ;;  %v2171_v18 = vmax.f32 %v2051_v13, 0.0  ;;  %2973 = vmatpush2.bf16.msra.mxu1 %v5469_v48 }
 0x374   : > { %v2056_v44 = vpop.f32.mrf.mxu1 }
 0x375   : > { %v2172_v9 = vmax.f32 %v2053_v6, 0.0  ;;  %v2221_v22 = vpack.c.bf16 %v2171_v18, %v2169_v17  ;;  %v2057_v8 = vadd.f32 %v2056_v44, %v6413_v25 }
 0x376   : > { %v2058_v20 = vpop.f32.mrf.mxu1 }
 0x377   : > { %v2222_v19 = vpack.c.bf16 %v2172_v9, %v2170_v14  ;;  %v2059_v16 = vadd.f32 %v2058_v20, %v6404_v63  ;;  %v2173_v33 = vmax.f32 %v2057_v8, 0.0 }
 0x378   : > { %v2060_v23 = vpop.f32.mrf.mxu1 }
 0x379   : > { %v2061_v24 = vadd.f32 %v2060_v23, %v6413_v25  ;;  %2539 = vmatprep.mubr.bf16.mxu0 %v2222_v19  ;;  %v2174_v29 = vmax.f32 %v2059_v16, 0.0 }
 0x37a   : > { %v2062_v21 = vpop.f32.mrf.mxu1  ;;  %2540 = vmatmul.mubr.bf16.gmra.mxu0 %v2221_v22 }
 0x37b   : > { %v2063_v31 = vadd.f32 %v2062_v21, %v6404_v63  ;;  %v2175_v42 = vmax.f32 %v2061_v24, 0.0 }
 0x37c   : > { %v2066_v27 = vpop.f32.mrf.mxu1 }
 0x37d   : > { %v2176_v32 = vmax.f32 %v2063_v31, 0.0  ;;  %v2223_v35 = vpack.c.bf16 %v2175_v42, %v2173_v33  ;;  %v2067_v60 = vadd.f32 %v2066_v27, %v6413_v25 }
 0x37e   : > { %v2068_v34 = vpop.f32.mrf.mxu1 }
 0x37f   : > { %v2224_v59 = vpack.c.bf16 %v2176_v32, %v2174_v29  ;;  %v2069_v38 = vadd.f32 %v2068_v34, %v6404_v63  ;;  %v2177_v4 = vmax.f32 %v2067_v60, 0.0 }
 0x380   : > { %v2070_v36 = vpop.f32.mrf.mxu1 }
 0x381   : > { %v2071_v40 = vadd.f32 %v2070_v36, %v6413_v25  ;;  %2549 = vmatprep.mubr.bf16.mxu0 %v2224_v59  ;;  %v2178_v53 = vmax.f32 %v2069_v38, 0.0 }
 0x382   : > { %v2072_v5 = vpop.f32.mrf.mxu1  ;;  %2550 = vmatmul.mubr.bf16.gmra.mxu0 %v2223_v35 }
 0x383   : > { %v2073_v39 = vadd.f32 %v2072_v5, %v6404_v63  ;;  %v2179_v41 = vmax.f32 %v2071_v40, 0.0 }
 0x384   : > { %v2076_v43 = vpop.f32.mrf.mxu1 }
 0x385   : > { %v2180_v45 = vmax.f32 %v2073_v39, 0.0  ;;  %v2225_v50 = vpack.c.bf16 %v2179_v41, %v2177_v4  ;;  %v2077_v58 = vadd.f32 %v2076_v43, %v6413_v25 }
 0x386   : > { %v2078_v46 = vpop.f32.mrf.mxu1 }
 0x387   : > { %v2226_v47 = vpack.c.bf16 %v2180_v45, %v2178_v53  ;;  %v2079_v54 = vadd.f32 %v2078_v46, %v6404_v63  ;;  %v2181_v57 = vmax.f32 %v2077_v58, 0.0 }
 0x388   : > { %v2080_v15 = vpop.f32.mrf.mxu1 }
 0x389   : > { %v2081_v26 = vadd.f32 %v2080_v15, %v6413_v25  ;;  %2559 = vmatprep.mubr.bf16.mxu0 %v2226_v47  ;;  %v2182_v30 = vmax.f32 %v2079_v54, 0.0 }
 0x38a   : > { %v2082_v61 = vpop.f32.mrf.mxu1  ;;  %2560 = vmatmul.mubr.bf16.gmra.mxu0 %v2225_v50 }
 0x38b   : > { %v2083_v51 = vadd.f32 %v2082_v61, %v6404_v63  ;;  %v2183_v49 = vmax.f32 %v2081_v26, 0.0 }
 0x38c   : > { %v2086_v62 = vpop.f32.mrf.mxu1 }
 0x38d   : > { %v2184_v0 = vmax.f32 %v2083_v51, 0.0  ;;  %v2227_v52 = vpack.c.bf16 %v2183_v49, %v2181_v57  ;;  %v2087_v10 = vadd.f32 %v2086_v62, %v6413_v25 }
 0x38e   : > { %v2088_v1 = vpop.f32.mrf.mxu1 }
 0x38f   : > { %v2228_v28 = vpack.c.bf16 %v2184_v0, %v2182_v30  ;;  %v2089_v3 = vadd.f32 %v2088_v1, %v6404_v63  ;;  %v2185_v14 = vmax.f32 %v2087_v10, 0.0 }
 0x390   : > { %v2090_v2 = vpop.f32.mrf.mxu1 }
 0x391   : > { %v2091_v7 = vadd.f32 %v2090_v2, %v6413_v25  ;;  %2569 = vmatprep.mubr.bf16.mxu0 %v2228_v28  ;;  %v2186_v18 = vmax.f32 %v2089_v3, 0.0 }
 0x392   : > { %v2092_v37 = vpop.f32.mrf.mxu1  ;;  %2570 = vmatmul.mubr.bf16.gmra.mxu0 %v2227_v52 }
 0x393   : > { %v2093_v13 = vadd.f32 %v2092_v37, %v6404_v63  ;;  %v2187_v11 = vmax.f32 %v2091_v7, 0.0 }
 0x394   : > { %v2096_v6 = vpop.f32.mrf.mxu1 }
 0x395   : > { %v2188_v44 = vmax.f32 %v2093_v13, 0.0  ;;  %v2229_v20 = vpack.c.bf16 %v2187_v11, %v2185_v14  ;;  %v2097_v16 = vadd.f32 %v2096_v6, %v6413_v25 }
 0x396   : > { %v2098_v9 = vpop.f32.mrf.mxu1 }
 0x397   : > { %v2230_v17 = vpack.c.bf16 %v2188_v44, %v2186_v18  ;;  %v2099_v22 = vadd.f32 %v2098_v9, %v6404_v63  ;;  %v2189_v29 = vmax.f32 %v2097_v16, 0.0 }
 0x398   : > { %v2100_v19 = vpop.f32.mrf.mxu1 }
 0x399   : > { %v2101_v23 = vadd.f32 %v2100_v19, %v6413_v25  ;;  %2579 = vmatprep.mubr.bf16.mxu0 %v2230_v17  ;;  %v2190_v42 = vmax.f32 %v2099_v22, 0.0 }
 0x39a   : > { %v2102_v24 = vpop.f32.mrf.mxu1  ;;  %2580 = vmatmul.mubr.bf16.gmra.mxu0 %v2229_v20 }
 0x39b   : > { %v2103_v8 = vadd.f32 %v2102_v24, %v6404_v63  ;;  %v2191_v21 = vmax.f32 %v2101_v23, 0.0 }
 0x39c   : > { %v2106_v31 = vpop.f32.mrf.mxu1 }
 0x39d   : > { %v2192_v27 = vmax.f32 %v2103_v8, 0.0  ;;  %v2231_v34 = vpack.c.bf16 %v2191_v21, %v2189_v29  ;;  %v2107_v38 = vadd.f32 %v2106_v31, %v6413_v25  ;;  %v5478_v29 = vld [vmem:[%s7184_s3 + $0x550] ss:$8 sps:$4 sm:$0xff]  }
 0x39e   : > { %v2108_v32 = vpop.f32.mrf.mxu1 }
 0x39f   : > { %v2232_v33 = vpack.c.bf16 %v2192_v27, %v2190_v42  ;;  %v2109_v35 = vadd.f32 %v2108_v32, %v6404_v63  ;;  %v2193_v53 = vmax.f32 %v2107_v38, 0.0  ;;  %v5472_v42 = vld [vmem:[%s7184_s3 + $0x570] ss:$8 sps:$4 sm:$0xff]   ;;  %v5477_v27 = vld [vmem:[%s7184_s3 + $0x564] ss:$8 sps:$4 sm:$0xff]  }
 0x3a0   : > { %v2110_v59 = vpop.f32.mrf.mxu1  ;;  %v5480_v32 = vld [vmem:[%s7184_s3 + $0x554] ss:$8 sps:$4 sm:$0xff]  }
 0x3a1   : > { %v2111_v36 = vadd.f32 %v2110_v59, %v6413_v25  ;;  %2589 = vmatprep.mubr.bf16.mxu0 %v2232_v33  ;;  %v2194_v41 = vmax.f32 %v2109_v35, 0.0  ;;  %v5481_v33 = vld [vmem:[%s7184_s3 + $0x540] ss:$8 sps:$4 sm:$0xff]   ;;  %v5484_v59 = vld [vmem:[%s7184_s3 + $0x530] ss:$8 sps:$4 sm:$0xff]  }
 0x3a2   : > { %v2112_v40 = vpop.f32.mrf.mxu1  ;;  %2590 = vmatmul.mubr.bf16.gmra.mxu0 %v2231_v34  ;;  %v5483_v34 = vld [vmem:[%s7184_s3 + $0x544] ss:$8 sps:$4 sm:$0xff]   ;;  %v5486_v35 = vld [vmem:[%s7184_s3 + $0x534] ss:$8 sps:$4 sm:$0xff]  }
 0x3a3   : > { %v2113_v60 = vadd.f32 %v2112_v40, %v6404_v63  ;;  %v2195_v5 = vmax.f32 %v2111_v36, 0.0  ;;  %v4844_v36 = vld [vmem:[%s7185_s4 + $0x6] sm:$0x3] }
 0x3a4   : > { %v2116_v39 = vpop.f32.mrf.mxu1  ;;  %v6573_v40 = vrot.slane %v4844_v36, %v5796_v55 }
 0x3a5   : > { %v2196_v43 = vmax.f32 %v2113_v60, 0.0  ;;  %v2233_v46 = vpack.c.bf16 %v2195_v5, %v2193_v53  ;;  %v2117_v54 = vadd.f32 %v2116_v39, %v6413_v25  ;;  %v5487_v60 = vld [vmem:[%s7184_s3 + $0x520] ss:$8 sps:$4 sm:$0xff]   ;;  %v5489_v5 = vld [vmem:[%s7184_s3 + $0x524] ss:$8 sps:$4 sm:$0xff]   ;;  %v6582_v39 = vrot.slane %v4844_v36, %v5798_v56 }
 0x3a6   : > { %v2118_v45 = vpop.f32.mrf.mxu1 }
 0x3a7   : > { %v2234_v4 = vpack.c.bf16 %v2196_v43, %v2194_v41  ;;  %v2119_v50 = vadd.f32 %v2118_v45, %v6404_v63  ;;  %v2197_v30 = vmax.f32 %v2117_v54, 0.0  ;;  %v5495_v54 = vld [vmem:[%s7184_s3 + $0x504] ss:$8 sps:$4 sm:$0xff]  }
 0x3a8   : > { %v2120_v47 = vpop.f32.mrf.mxu1 }
 0x3a9   : > { %v2121_v15 = vadd.f32 %v2120_v47, %v6413_v25  ;;  %2599 = vmatprep.mubr.bf16.mxu0 %v2234_v4  ;;  %v2198_v49 = vmax.f32 %v2119_v50, 0.0  ;;  %v5490_v47 = vld [vmem:[%s7184_s3 + $0x510] ss:$8 sps:$4 sm:$0xff]   ;;  %v5492_v50 = vld [vmem:[%s7184_s3 + $0x514] ss:$8 sps:$4 sm:$0xff]  }
 0x3aa   : > { %v2122_v26 = vpop.f32.mrf.mxu1  ;;  %2600 = vmatmul.mubr.bf16.gmra.mxu0 %v2233_v46 }
 0x3ab   : > { %v2123_v58 = vadd.f32 %v2122_v26, %v6404_v63  ;;  %v2199_v61 = vmax.f32 %v2121_v15, 0.0 }
 0x3ac   : > { %v2126_v51 = vpop.f32.mrf.mxu1 }
 0x3ad   : > { %v2200_v62 = vmax.f32 %v2123_v58, 0.0  ;;  %v2235_v1 = vpack.c.bf16 %v2199_v61, %v2197_v30  ;;  %v2127_v3 = vadd.f32 %v2126_v51, %v6413_v25 }
 0x3ae   : > { %v2128_v0 = vpop.f32.mrf.mxu1 }
 0x3af   : > { %v2236_v57 = vpack.c.bf16 %v2200_v62, %v2198_v49  ;;  %v2129_v52 = vadd.f32 %v2128_v0, %v6404_v63  ;;  %v2201_v11 = vmax.f32 %v2127_v3, 0.0  ;;  %v5493_v49 = vld [vmem:[%s7184_s3 + $0x500] ss:$8 sps:$4 sm:$0xff]   ;;  %v5498_v0 = vld [vmem:[%s7184_s3 + $0x5f4] ss:$8 sps:$4 sm:$0xff]  }
 0x3b0   : > { %v2130_v28 = vpop.f32.mrf.mxu1  ;;  %v5496_v3 = vld [vmem:[%s7184_s3 + $0x5f0] ss:$8 sps:$4 sm:$0xff]  }
 0x3b1   : > { %v2131_v2 = vadd.f32 %v2130_v28, %v6413_v25  ;;  %2609 = vmatprep.mubr.bf16.mxu0 %v2236_v57  ;;  %v2202_v13 = vmax.f32 %v2129_v52, 0.0 }
 0x3b2   : > { %v2132_v7 = vpop.f32.mrf.mxu1  ;;  %2610 = vmatmul.mubr.bf16.gmra.mxu0 %v2235_v1 }
 0x3b3   : > { %v2133_v10 = vadd.f32 %v2132_v7, %v6404_v63  ;;  %v2203_v37 = vmax.f32 %v2131_v2, 0.0 }
 0x3b4   : > { %v2136_v12 = vpop.f32.mrf.mxu1 }
 0x3b5   : > { %v2204_v48 = vmax.f32 %v2133_v10, 0.0  ;;  %v2237_v44 = vpack.c.bf16 %v2203_v37, %v2201_v11  ;;  %v2137_v20 = vadd.f32 %v2136_v12, %v6413_v25  ;;  %v5501_v37 = vld [vmem:[%s7184_s3 + $0x5e4] ss:$8 sps:$4 sm:$0xff]  }
 0x3b6   : > { %v2138_v6 = vpop.f32.mrf.mxu1 }
 0x3b7   : > { %v2238_v18 = vpack.c.bf16 %v2204_v48, %v2202_v13  ;;  %v2139_v9 = vadd.f32 %v2138_v6, %v6404_v63  ;;  %v2205_v8 = vmax.f32 %v2137_v20, 0.0 }
 0x3b8   : > { %v2140_v14 = vpop.f32.mrf.mxu1 }
 0x3b9   : > { %v2141_v17 = vadd.f32 %v2140_v14, %v6413_v25  ;;  %2619 = vmatprep.mubr.bf16.mxu0 %v2238_v18  ;;  %v2206_v16 = vmax.f32 %v2139_v9, 0.0  ;;  %v5474_v25 = vld [vmem:[%s7184_s3 + $0x574] ss:$8 sps:$4 sm:$0xff]   ;;  %v5499_v18 = vld [vmem:[%s7184_s3 + $0x5e0] ss:$8 sps:$4 sm:$0xff]  }
 0x3ba   : > { %v2142_v19 = vpop.f32.mrf.mxu1  ;;  %2620 = vmatmul.mubr.bf16.gmra.mxu0 %v2237_v44  ;;  %3437 = vmatprep.subr.bf16.mxu0 %v5474_v25  ;;  %v5504_v9 = vld [vmem:[%s7184_s3 + $0x5d4] ss:$8 sps:$4 sm:$0xff]  }
 0x3bb   : > { %v2143_v22 = vadd.f32 %v2142_v19, %v6404_v63  ;;  %v2207_v23 = vmax.f32 %v2141_v17, 0.0  ;;  %3438 = vmatpush1.bf16.msra.mxu0 %v5472_v42  ;;  %v5475_v63 = vld [vmem:[%s7184_s3 + $0x560] ss:$8 sps:$4 sm:$0xff]  }
 0x3bc   : > { %3439 = vmatprep.subr.bf16.mxu0 %v5477_v27 }
 0x3bd   : > { %v2208_v24 = vmax.f32 %v2143_v22, 0.0  ;;  %v2239_v31 = vpack.c.bf16 %v2207_v23, %v2205_v8 }
 0x3bf   : > { %v2240_v21 = vpack.c.bf16 %v2208_v24, %v2206_v16  ;;  %3440 = vmatpush1.bf16.msra.mxu0 %v5475_v63  ;;  %v5502_v16 = vld [vmem:[%s7184_s3 + $0x5d0] ss:$8 sps:$4 sm:$0xff]  }
 0x3c0   : > { %3441 = vmatprep.subr.bf16.mxu0 %v5480_v32 }
 0x3c1   : > { %2629 = vmatprep.mubr.bf16.mxu0 %v2240_v21  ;;  %v5507_v21 = vld [vmem:[%s7184_s3 + $0x5c4] ss:$8 sps:$4 sm:$0xff]  }
 0x3c2   : > { %2630 = vmatmul.mubr.bf16.gmra.mxu0 %v2239_v31 }
 0x3c3   : > { %3442 = vmatpush1.bf16.msra.mxu0 %v5478_v29  ;;  %v5505_v29 = vld [vmem:[%s7184_s3 + $0x5c0] ss:$8 sps:$4 sm:$0xff]  }
 0x3c4   : > { %3443 = vmatprep.subr.bf16.mxu0 %v5483_v34  ;;  %v5510_v34 = vld [vmem:[%s7184_s3 + $0x5b4] ss:$8 sps:$4 sm:$0xff]  }
 0x3c7   : > { %3444 = vmatpush1.bf16.msra.mxu0 %v5481_v33 }
 0x3c8   : > { %3445 = vmatprep.subr.bf16.mxu0 %v5486_v35 }
 0x3cb   : > { %3446 = vmatpush1.bf16.msra.mxu0 %v5484_v59 }
 0x3cc   : > { %3447 = vmatprep.subr.bf16.mxu0 %v5489_v5  ;;  %v5508_v5 = vld [vmem:[%s7184_s3 + $0x5b0] ss:$8 sps:$4 sm:$0xff]  }
 0x3cf   : > { %3448 = vmatpush1.bf16.msra.mxu0 %v5487_v60 }
 0x3d0   : > { %3449 = vmatprep.subr.bf16.mxu0 %v5492_v50 }
 0x3d3   : > { %3450 = vmatpush1.bf16.msra.mxu0 %v5490_v47 }
 0x3d4   : > { %3451 = vmatprep.subr.bf16.mxu0 %v5495_v54 }
 0x3d7   : > { %3452 = vmatpush1.bf16.msra.mxu0 %v5493_v49 }
 0x3d8   : > { %3453 = vmatprep.subr.bf16.mxu0 %v5498_v0  ;;  %v5514_v0 = vld [vmem:[%s7184_s3 + $0x590] ss:$8 sps:$4 sm:$0xff]  }
 0x3db   : > { %3454 = vmatpush2.bf16.msra.mxu0 %v5496_v3 }
 0x3dc   : > { %3455 = vmatprep.subr.bf16.mxu0 %v5501_v37 }
 0x3df   : > { %3456 = vmatpush2.bf16.msra.mxu0 %v5499_v18 }
 0x3e0   : > { %3457 = vmatprep.subr.bf16.mxu0 %v5504_v9 }
 0x3e3   : > { %3458 = vmatpush2.bf16.msra.mxu0 %v5502_v16 }
 0x3e4   : > { %3459 = vmatprep.subr.bf16.mxu0 %v5507_v21 }
 0x3e7   : > { %3460 = vmatpush2.bf16.msra.mxu0 %v5505_v29 }
 0x3e8   : > { %3461 = vmatprep.subr.bf16.mxu0 %v5510_v34 }
 0x3eb   : > { %3462 = vmatpush2.bf16.msra.mxu0 %v5508_v5 }
 0x40a   : > { %v2481_v38 = vpop.f32.mrf.mxu0 }
 0x40b   : > { %v2482_v4 = vadd.f32 %v2481_v38, %v6582_v39 }
 0x40c   : > { %v2483_v41 = vpop.f32.mrf.mxu0 }
 0x40d   : > { %v2484_v53 = vadd.f32 %v2483_v41, %v6573_v40  ;;  %v2640_v62 = vmax.f32 %v2482_v4, 0.0 }
 0x40e   : > { %v2485_v43 = vpop.f32.mrf.mxu0 }
 0x40f   : > { %v2486_v45 = vadd.f32 %v2485_v43, %v6582_v39  ;;  %v2641_v61 = vmax.f32 %v2484_v53, 0.0  ;;  %v5513_v53 = vld [vmem:[%s7184_s3 + $0x5a4] ss:$8 sps:$4 sm:$0xff]  }
 0x410   : > { %v2487_v46 = vpop.f32.mrf.mxu0  ;;  %3463 = vmatprep.subr.bf16.mxu0 %v5513_v53 }
 0x411   : > { %v2488_v15 = vadd.f32 %v2487_v46, %v6573_v40  ;;  %v2642_v26 = vmax.f32 %v2486_v45, 0.0 }
 0x412   : > { %v2491_v58 = vpop.f32.mrf.mxu0 }
 0x413   : > { %v2643_v51 = vmax.f32 %v2488_v15, 0.0  ;;  %v2704_v1 = vpack.c.bf16 %v2642_v26, %v2640_v62  ;;  %v2492_v7 = vadd.f32 %v2491_v58, %v6582_v39  ;;  %v5511_v15 = vld [vmem:[%s7184_s3 + $0x5a0] ss:$8 sps:$4 sm:$0xff]   ;;  %v5516_v58 = vld [vmem:[%s7184_s3 + $0x594] ss:$8 sps:$4 sm:$0xff]  }
 0x414   : > { %v2493_v30 = vpop.f32.mrf.mxu0  ;;  %3464 = vmatpush2.bf16.msra.mxu0 %v5511_v15 }
 0x415   : > { %v2705_v57 = vpack.c.bf16 %v2643_v51, %v2641_v61  ;;  %v2494_v52 = vadd.f32 %v2493_v30, %v6573_v40  ;;  %v2644_v44 = vmax.f32 %v2492_v7, 0.0  ;;  %3465 = vmatprep.subr.bf16.mxu0 %v5516_v58 }
 0x416   : > { %v2495_v28 = vpop.f32.mrf.mxu0 }
 0x417   : > { %v2496_v2 = vadd.f32 %v2495_v28, %v6582_v39  ;;  %2974 = vmatprep.mubr.bf16.mxu1 %v2705_v57  ;;  %v2645_v11 = vmax.f32 %v2494_v52, 0.0 }
 0x418   : > { %v2497_v10 = vpop.f32.mrf.mxu0  ;;  %2975 = vmatmul.mubr.bf16.vlgmr.msra.gmra.mxu1 %v2704_v1  ;;  %3466 = vmatpush2.bf16.msra.mxu0 %v5514_v0 }
 0x419   : > { %v2498_v12 = vadd.f32 %v2497_v10, %v6573_v40  ;;  %v2646_v13 = vmax.f32 %v2496_v2, 0.0 }
 0x41a   : > { %v2501_v48 = vpop.f32.mrf.mxu0 }
 0x41b   : > { %v2647_v6 = vmax.f32 %v2498_v12, 0.0  ;;  %v2706_v20 = vpack.c.bf16 %v2646_v13, %v2644_v44  ;;  %v2502_v24 = vadd.f32 %v2501_v48, %v6582_v39 }
 0x41c   : > { %v2503_v14 = vpop.f32.mrf.mxu0 }
 0x41d   : > { %v2707_v17 = vpack.c.bf16 %v2647_v6, %v2645_v11  ;;  %v2504_v22 = vadd.f32 %v2503_v14, %v6573_v40  ;;  %v2648_v32 = vmax.f32 %v2502_v24, 0.0 }
 0x41e   : > { %v2505_v19 = vpop.f32.mrf.mxu0 }
 0x41f   : > { %v2506_v23 = vadd.f32 %v2505_v19, %v6582_v39  ;;  %2984 = vmatprep.mubr.bf16.mxu1 %v2707_v17  ;;  %v2649_v63 = vmax.f32 %v2504_v22, 0.0 }
 0x420   : > { %v2507_v8 = vpop.f32.mrf.mxu0  ;;  %2985 = vmatmul.mubr.bf16.gmra.mxu1 %v2706_v20 }
 0x421   : > { %v2508_v31 = vadd.f32 %v2507_v8, %v6573_v40  ;;  %v2650_v42 = vmax.f32 %v2506_v23, 0.0 }
 0x422   : > { %v2511_v25 = vpop.f32.mrf.mxu0 }
 0x423   : > { %v2651_v27 = vmax.f32 %v2508_v31, 0.0  ;;  %v2708_v35 = vpack.c.bf16 %v2650_v42, %v2648_v32  ;;  %v2512_v41 = vadd.f32 %v2511_v25, %v6582_v39 }
 0x424   : > { %v2513_v33 = vpop.f32.mrf.mxu0 }
 0x425   : > { %v2709_v59 = vpack.c.bf16 %v2651_v27, %v2649_v63  ;;  %v2514_v38 = vadd.f32 %v2513_v33, %v6573_v40  ;;  %v2652_v54 = vmax.f32 %v2512_v41, 0.0 }
 0x426   : > { %v2515_v36 = vpop.f32.mrf.mxu0 }
 0x427   : > { %v2516_v60 = vadd.f32 %v2515_v36, %v6582_v39  ;;  %2994 = vmatprep.mubr.bf16.mxu1 %v2709_v59  ;;  %v2653_v47 = vmax.f32 %v2514_v38, 0.0 }
 0x428   : > { %v2517_v43 = vpop.f32.mrf.mxu0  ;;  %2995 = vmatmul.mubr.bf16.gmra.mxu1 %v2708_v35 }
 0x429   : > { %v2518_v45 = vadd.f32 %v2517_v43, %v6573_v40  ;;  %v2654_v4 = vmax.f32 %v2516_v60, 0.0 }
 0x42a   : > { %v2521_v46 = vpop.f32.mrf.mxu0 }
 0x42b   : > { %v2655_v50 = vmax.f32 %v2518_v45, 0.0  ;;  %v2710_v51 = vpack.c.bf16 %v2654_v4, %v2652_v54  ;;  %v2522_v57 = vadd.f32 %v2521_v46, %v6582_v39 }
 0x42c   : > { %v2523_v26 = vpop.f32.mrf.mxu0 }
 0x42d   : > { %v2711_v61 = vpack.c.bf16 %v2655_v50, %v2653_v47  ;;  %v2524_v62 = vadd.f32 %v2523_v26, %v6573_v40  ;;  %v2656_v10 = vmax.f32 %v2522_v57, 0.0 }
 0x42e   : > { %v2525_v49 = vpop.f32.mrf.mxu0 }
 0x42f   : > { %v2526_v30 = vadd.f32 %v2525_v49, %v6582_v39  ;;  %3004 = vmatprep.mubr.bf16.mxu1 %v2711_v61  ;;  %v2657_v3 = vmax.f32 %v2524_v62, 0.0 }
 0x430   : > { %v2527_v1 = vpop.f32.mrf.mxu0  ;;  %3005 = vmatmul.mubr.bf16.gmra.mxu1 %v2710_v51 }
 0x431   : > { %v2528_v28 = vadd.f32 %v2527_v1, %v6573_v40  ;;  %v2658_v52 = vmax.f32 %v2526_v30, 0.0 }
 0x432   : > { %v2531_v2 = vpop.f32.mrf.mxu0 }
 0x433   : > { %v2659_v7 = vmax.f32 %v2528_v28, 0.0  ;;  %v2712_v13 = vpack.c.bf16 %v2658_v52, %v2656_v10  ;;  %v2532_v18 = vadd.f32 %v2531_v2, %v6582_v39 }
 0x434   : > { %v2533_v37 = vpop.f32.mrf.mxu0 }
 0x435   : > { %v2713_v12 = vpack.c.bf16 %v2659_v7, %v2657_v3  ;;  %v2534_v11 = vadd.f32 %v2533_v37, %v6573_v40  ;;  %v2660_v22 = vmax.f32 %v2532_v18, 0.0 }
 0x436   : > { %v2535_v48 = vpop.f32.mrf.mxu0 }
 0x437   : > { %v2536_v6 = vadd.f32 %v2535_v48, %v6582_v39  ;;  %3014 = vmatprep.mubr.bf16.mxu1 %v2713_v12  ;;  %v2661_v20 = vmax.f32 %v2534_v11, 0.0 }
 0x438   : > { %v2537_v44 = vpop.f32.mrf.mxu0  ;;  %3015 = vmatmul.mubr.bf16.gmra.mxu1 %v2712_v13 }
 0x439   : > { %v2538_v14 = vadd.f32 %v2537_v44, %v6573_v40  ;;  %v2662_v9 = vmax.f32 %v2536_v6, 0.0 }
 0x43a   : > { %v2541_v17 = vpop.f32.mrf.mxu0 }
 0x43b   : > { %v2663_v19 = vmax.f32 %v2538_v14, 0.0  ;;  %v2714_v24 = vpack.c.bf16 %v2662_v9, %v2660_v22  ;;  %v2542_v42 = vadd.f32 %v2541_v17, %v6582_v39 }
 0x43c   : > { %v2543_v23 = vpop.f32.mrf.mxu0 }
 0x43d   : > { %v2715_v16 = vpack.c.bf16 %v2663_v19, %v2661_v20  ;;  %v2544_v21 = vadd.f32 %v2543_v23, %v6573_v40  ;;  %v2664_v34 = vmax.f32 %v2542_v42, 0.0  ;;  %v5517_v42 = vld [vmem:[%s7184_s3 + $0x580] ss:$8 sps:$4 sm:$0xff]  }
 0x43e   : > { %v2545_v8 = vpop.f32.mrf.mxu0 }
 0x43f   : > { %v2546_v31 = vadd.f32 %v2545_v8, %v6582_v39  ;;  %3024 = vmatprep.mubr.bf16.mxu1 %v2715_v16  ;;  %v2665_v32 = vmax.f32 %v2544_v21, 0.0  ;;  %v5519_v21 = vld [vmem:[%s7184_s3 + $0x584] ss:$8 sps:$4 sm:$0xff]  }
 0x440   : > { %v2547_v25 = vpop.f32.mrf.mxu0  ;;  %3025 = vmatmul.mubr.bf16.gmra.mxu1 %v2714_v24  ;;  %3467 = vmatprep.subr.bf16.mxu0 %v5519_v21 }
 0x441   : > { %v2548_v63 = vadd.f32 %v2547_v25, %v6573_v40  ;;  %v2666_v27 = vmax.f32 %v2546_v31, 0.0  ;;  %3468 = vmatpush2.bf16.msra.mxu0 %v5517_v42 }
 0x442   : > { %v2551_v29 = vpop.f32.mrf.mxu0 }
 0x443   : > { %v2667_v33 = vmax.f32 %v2548_v63, 0.0  ;;  %v2716_v36 = vpack.c.bf16 %v2666_v27, %v2664_v34  ;;  %v2552_v41 = vadd.f32 %v2551_v29, %v6582_v39 }
 0x444   : > { %v2553_v59 = vpop.f32.mrf.mxu0 }
 0x445   : > { %v2717_v35 = vpack.c.bf16 %v2667_v33, %v2665_v32  ;;  %v2554_v60 = vadd.f32 %v2553_v59, %v6573_v40  ;;  %v2668_v50 = vmax.f32 %v2552_v41, 0.0 }
 0x446   : > { %v2555_v38 = vpop.f32.mrf.mxu0 }
 0x447   : > { %v2556_v5 = vadd.f32 %v2555_v38, %v6582_v39  ;;  %3034 = vmatprep.mubr.bf16.mxu1 %v2717_v35  ;;  %v2669_v46 = vmax.f32 %v2554_v60, 0.0 }
 0x448   : > { %v2557_v43 = vpop.f32.mrf.mxu0  ;;  %3035 = vmatmul.mubr.bf16.gmra.mxu1 %v2716_v36 }
 0x449   : > { %v2558_v53 = vadd.f32 %v2557_v43, %v6573_v40  ;;  %v2670_v45 = vmax.f32 %v2556_v5, 0.0 }
 0x44a   : > { %v2561_v4 = vpop.f32.mrf.mxu0 }
 0x44b   : > { %v2671_v47 = vmax.f32 %v2558_v53, 0.0  ;;  %v2718_v26 = vpack.c.bf16 %v2670_v45, %v2668_v50  ;;  %v2562_v49 = vadd.f32 %v2561_v4, %v6582_v39 }
 0x44c   : > { %v2563_v15 = vpop.f32.mrf.mxu0 }
 0x44d   : > { %v2719_v54 = vpack.c.bf16 %v2671_v47, %v2669_v46  ;;  %v2564_v61 = vadd.f32 %v2563_v15, %v6573_v40  ;;  %v2672_v52 = vmax.f32 %v2562_v49, 0.0 }
 0x44e   : > { %v2565_v58 = vpop.f32.mrf.mxu0 }
 0x44f   : > { %v2566_v51 = vadd.f32 %v2565_v58, %v6582_v39  ;;  %3044 = vmatprep.mubr.bf16.mxu1 %v2719_v54  ;;  %v2673_v1 = vmax.f32 %v2564_v61, 0.0 }
 0x450   : > { %v2567_v62 = vpop.f32.mrf.mxu0  ;;  %3045 = vmatmul.mubr.bf16.gmra.mxu1 %v2718_v26 }
 0x451   : > { %v2568_v30 = vadd.f32 %v2567_v62, %v6573_v40  ;;  %v2674_v0 = vmax.f32 %v2566_v51, 0.0 }
 0x452   : > { %v2571_v57 = vpop.f32.mrf.mxu0 }
 0x453   : > { %v2675_v28 = vmax.f32 %v2568_v30, 0.0  ;;  %v2720_v7 = vpack.c.bf16 %v2674_v0, %v2672_v52  ;;  %v2572_v13 = vadd.f32 %v2571_v57, %v6582_v39 }
 0x454   : > { %v2573_v2 = vpop.f32.mrf.mxu0 }
 0x455   : > { %v2721_v3 = vpack.c.bf16 %v2675_v28, %v2673_v1  ;;  %v2574_v37 = vadd.f32 %v2573_v2, %v6573_v40  ;;  %v2676_v9 = vmax.f32 %v2572_v13, 0.0 }
 0x456   : > { %v2575_v10 = vpop.f32.mrf.mxu0 }
 0x457   : > { %v2576_v12 = vadd.f32 %v2575_v10, %v6582_v39  ;;  %3054 = vmatprep.mubr.bf16.mxu1 %v2721_v3  ;;  %v2677_v44 = vmax.f32 %v2574_v37, 0.0 }
 0x458   : > { %v2577_v48 = vpop.f32.mrf.mxu0  ;;  %3055 = vmatmul.mubr.bf16.gmra.mxu1 %v2720_v7 }
 0x459   : > { %v2578_v11 = vadd.f32 %v2577_v48, %v6573_v40  ;;  %v2678_v6 = vmax.f32 %v2576_v12, 0.0 }
 0x45a   : > { %v2581_v18 = vpop.f32.mrf.mxu0 }
 0x45b   : > { %v2679_v14 = vmax.f32 %v2578_v11, 0.0  ;;  %v2722_v19 = vpack.c.bf16 %v2678_v6, %v2676_v9  ;;  %v2582_v24 = vadd.f32 %v2581_v18, %v6582_v39 }
 0x45c   : > { %v2583_v17 = vpop.f32.mrf.mxu0 }
 0x45d   : > { %v2723_v20 = vpack.c.bf16 %v2679_v14, %v2677_v44  ;;  %v2584_v23 = vadd.f32 %v2583_v17, %v6573_v40  ;;  %v2680_v32 = vmax.f32 %v2582_v24, 0.0 }
 0x45e   : > { %v2585_v22 = vpop.f32.mrf.mxu0 }
 0x45f   : > { %v2586_v16 = vadd.f32 %v2585_v22, %v6582_v39  ;;  %3064 = vmatprep.mubr.bf16.mxu1 %v2723_v20  ;;  %v2681_v27 = vmax.f32 %v2584_v23, 0.0 }
 0x460   : > { %v2587_v8 = vpop.f32.mrf.mxu0  ;;  %3065 = vmatmul.mubr.bf16.gmra.mxu1 %v2722_v19 }
 0x461   : > { %v2588_v31 = vadd.f32 %v2587_v8, %v6573_v40  ;;  %v2682_v25 = vmax.f32 %v2586_v16, 0.0 }
 0x462   : > { %v2591_v63 = vpop.f32.mrf.mxu0 }
 0x463   : > { %v2683_v29 = vmax.f32 %v2588_v31, 0.0  ;;  %v2724_v59 = vpack.c.bf16 %v2682_v25, %v2680_v32  ;;  %v2592_v60 = vadd.f32 %v2591_v63, %v6582_v39 }
 0x464   : > { %v2593_v33 = vpop.f32.mrf.mxu0 }
 0x465   : > { %v2725_v34 = vpack.c.bf16 %v2683_v29, %v2681_v27  ;;  %v2594_v36 = vadd.f32 %v2593_v33, %v6573_v40  ;;  %v2684_v46 = vmax.f32 %v2592_v60, 0.0 }
 0x466   : > { %v2595_v35 = vpop.f32.mrf.mxu0 }
 0x467   : > { %v2596_v38 = vadd.f32 %v2595_v35, %v6582_v39  ;;  %3074 = vmatprep.mubr.bf16.mxu1 %v2725_v34  ;;  %v2685_v45 = vmax.f32 %v2594_v36, 0.0 }
 0x468   : > { %v2597_v5 = vpop.f32.mrf.mxu0  ;;  %3075 = vmatmul.mubr.bf16.gmra.mxu1 %v2724_v59 }
 0x469   : > { %v2598_v41 = vadd.f32 %v2597_v5, %v6573_v40  ;;  %v2686_v43 = vmax.f32 %v2596_v38, 0.0 }
 0x46a   : > { %v2601_v53 = vpop.f32.mrf.mxu0 }
 0x46b   : > { %v2687_v4 = vmax.f32 %v2598_v41, 0.0  ;;  %v2726_v15 = vpack.c.bf16 %v2686_v43, %v2684_v46  ;;  %v2602_v61 = vadd.f32 %v2601_v53, %v6582_v39  ;;  %v5526_v46 = vld [vmem:[%s7184_s3 + $0x650] ss:$8 sps:$4 sm:$0xff]  }
 0x46c   : > { %v2603_v47 = vpop.f32.mrf.mxu0 }
 0x46d   : > { %v2727_v50 = vpack.c.bf16 %v2687_v4, %v2685_v45  ;;  %v2604_v26 = vadd.f32 %v2603_v47, %v6573_v40  ;;  %v2688_v1 = vmax.f32 %v2602_v61, 0.0  ;;  %v5520_v45 = vld [vmem:[%s7184_s3 + $0x670] ss:$8 sps:$4 sm:$0xff]   ;;  %v5525_v4 = vld [vmem:[%s7184_s3 + $0x664] ss:$8 sps:$4 sm:$0xff]  }
 0x46e   : > { %v2605_v54 = vpop.f32.mrf.mxu0  ;;  %v5528_v47 = vld [vmem:[%s7184_s3 + $0x654] ss:$8 sps:$4 sm:$0xff]  }
 0x46f   : > { %v2606_v58 = vadd.f32 %v2605_v54, %v6582_v39  ;;  %3084 = vmatprep.mubr.bf16.mxu1 %v2727_v50  ;;  %v2689_v0 = vmax.f32 %v2604_v26, 0.0  ;;  %v5529_v50 = vld [vmem:[%s7184_s3 + $0x640] ss:$8 sps:$4 sm:$0xff]   ;;  %v5532_v54 = vld [vmem:[%s7184_s3 + $0x630] ss:$8 sps:$4 sm:$0xff]  }
 0x470   : > { %v2607_v51 = vpop.f32.mrf.mxu0  ;;  %3085 = vmatmul.mubr.bf16.gmra.mxu1 %v2726_v15  ;;  %v5531_v15 = vld [vmem:[%s7184_s3 + $0x644] ss:$8 sps:$4 sm:$0xff]   ;;  %v5534_v26 = vld [vmem:[%s7184_s3 + $0x634] ss:$8 sps:$4 sm:$0xff]  }
 0x471   : > { %v2608_v49 = vadd.f32 %v2607_v51, %v6573_v40  ;;  %v2690_v62 = vmax.f32 %v2606_v58, 0.0  ;;  %v4909_v58 = vld [vmem:[%s7185_s4 + $0x8] sm:$0x3] }
 0x472   : > { %v2611_v30 = vpop.f32.mrf.mxu0  ;;  %v6742_v51 = vrot.slane %v4909_v58, %v5796_v55 }
 0x473   : > { %v2691_v57 = vmax.f32 %v2608_v49, 0.0  ;;  %v2728_v2 = vpack.c.bf16 %v2690_v62, %v2688_v1  ;;  %v2612_v37 = vadd.f32 %v2611_v30, %v6582_v39  ;;  %v6745_v49 = vrot.slane %v4909_v58, %v5798_v56  ;;  %v5535_v30 = vld [vmem:[%s7184_s3 + $0x620] ss:$8 sps:$4 sm:$0xff]  }
 0x474   : > { %v2613_v28 = vpop.f32.mrf.mxu0 }
 0x475   : > { %v2729_v52 = vpack.c.bf16 %v2691_v57, %v2689_v0  ;;  %v2614_v7 = vadd.f32 %v2613_v28, %v6573_v40  ;;  %v2692_v44 = vmax.f32 %v2612_v37, 0.0  ;;  %v5537_v0 = vld [vmem:[%s7184_s3 + $0x624] ss:$8 sps:$4 sm:$0xff]  }
 0x476   : > { %v2615_v3 = vpop.f32.mrf.mxu0  ;;  %v5543_v37 = vld [vmem:[%s7184_s3 + $0x604] ss:$8 sps:$4 sm:$0xff]  }
 0x477   : > { %v2616_v10 = vadd.f32 %v2615_v3, %v6582_v39  ;;  %3094 = vmatprep.mubr.bf16.mxu1 %v2729_v52  ;;  %v2693_v6 = vmax.f32 %v2614_v7, 0.0  ;;  %v5538_v3 = vld [vmem:[%s7184_s3 + $0x610] ss:$8 sps:$4 sm:$0xff]   ;;  %v5540_v7 = vld [vmem:[%s7184_s3 + $0x614] ss:$8 sps:$4 sm:$0xff]  }
 0x478   : > { %v2617_v12 = vpop.f32.mrf.mxu0  ;;  %3095 = vmatmul.mubr.bf16.gmra.mxu1 %v2728_v2 }
 0x479   : > { %v2618_v13 = vadd.f32 %v2617_v12, %v6573_v40  ;;  %v2694_v48 = vmax.f32 %v2616_v10, 0.0 }
 0x47a   : > { %v2621_v11 = vpop.f32.mrf.mxu0 }
 0x47b   : > { %v2695_v18 = vmax.f32 %v2618_v13, 0.0  ;;  %v2730_v17 = vpack.c.bf16 %v2694_v48, %v2692_v44  ;;  %v2622_v23 = vadd.f32 %v2621_v11, %v6582_v39  ;;  %v5541_v44 = vld [vmem:[%s7184_s3 + $0x600] ss:$8 sps:$4 sm:$0xff]  }
 0x47c   : > { %v2623_v14 = vpop.f32.mrf.mxu0 }
 0x47d   : > { %v2731_v9 = vpack.c.bf16 %v2695_v18, %v2693_v6  ;;  %v2624_v19 = vadd.f32 %v2623_v14, %v6573_v40  ;;  %v2696_v25 = vmax.f32 %v2622_v23, 0.0 }
 0x47e   : > { %v2625_v20 = vpop.f32.mrf.mxu0 }
 0x47f   : > { %v2626_v22 = vadd.f32 %v2625_v20, %v6582_v39  ;;  %3104 = vmatprep.mubr.bf16.mxu1 %v2731_v9  ;;  %v2697_v31 = vmax.f32 %v2624_v19, 0.0  ;;  %v5546_v9 = vld [vmem:[%s7184_s3 + $0x6f4] ss:$8 sps:$4 sm:$0xff]  }
 0x480   : > { %v2627_v16 = vpop.f32.mrf.mxu0  ;;  %3105 = vmatmul.mubr.bf16.gmra.mxu1 %v2730_v17 }
 0x481   : > { %v2628_v24 = vadd.f32 %v2627_v16, %v6573_v40  ;;  %v2698_v8 = vmax.f32 %v2626_v22, 0.0 }
 0x482   : > { %v2631_v21 = vpop.f32.mrf.mxu0 }
 0x483   : > { %v2699_v42 = vmax.f32 %v2628_v24, 0.0  ;;  %v2732_v29 = vpack.c.bf16 %v2698_v8, %v2696_v25  ;;  %v2632_v59 = vadd.f32 %v2631_v21, %v6582_v39  ;;  %v5544_v24 = vld [vmem:[%s7184_s3 + $0x6f0] ss:$8 sps:$4 sm:$0xff]   ;;  %v5549_v21 = vld [vmem:[%s7184_s3 + $0x6e4] ss:$8 sps:$4 sm:$0xff]  }
 0x484   : > { %v2633_v63 = vpop.f32.mrf.mxu0 }
 0x485   : > { %v2733_v27 = vpack.c.bf16 %v2699_v42, %v2697_v31  ;;  %v2634_v33 = vadd.f32 %v2633_v63, %v6573_v40  ;;  %v2700_v41 = vmax.f32 %v2632_v59, 0.0 }
 0x486   : > { %v2635_v32 = vpop.f32.mrf.mxu0 }
 0x487   : > { %v2636_v34 = vadd.f32 %v2635_v32, %v6582_v39  ;;  %3114 = vmatprep.mubr.bf16.mxu1 %v2733_v27  ;;  %v2701_v60 = vmax.f32 %v2634_v33, 0.0  ;;  %v5522_v39 = vld [vmem:[%s7184_s3 + $0x674] ss:$8 sps:$4 sm:$0xff]   ;;  %v5547_v32 = vld [vmem:[%s7184_s3 + $0x6e0] ss:$8 sps:$4 sm:$0xff]  }
 0x488   : > { %v2637_v35 = vpop.f32.mrf.mxu0  ;;  %3115 = vmatmul.mubr.bf16.gmra.mxu1 %v2732_v29  ;;  %3932 = vmatprep.subr.bf16.mxu1 %v5522_v39 }
 0x489   : > { %v2638_v36 = vadd.f32 %v2637_v35, %v6573_v40  ;;  %v2702_v38 = vmax.f32 %v2636_v34, 0.0  ;;  %3933 = vmatpush1.bf16.msra.mxu1 %v5520_v45  ;;  %v5523_v40 = vld [vmem:[%s7184_s3 + $0x660] ss:$8 sps:$4 sm:$0xff]   ;;  %v5552_v34 = vld [vmem:[%s7184_s3 + $0x6d4] ss:$8 sps:$4 sm:$0xff]  }
 0x48a   : > { %3934 = vmatprep.subr.bf16.mxu1 %v5525_v4 }
 0x48b   : > { %v2703_v5 = vmax.f32 %v2638_v36, 0.0  ;;  %v2734_v53 = vpack.c.bf16 %v2702_v38, %v2700_v41  ;;  %v5550_v41 = vld [vmem:[%s7184_s3 + $0x6d0] ss:$8 sps:$4 sm:$0xff]  }
 0x48d   : > { %v2735_v43 = vpack.c.bf16 %v2703_v5, %v2701_v60  ;;  %3935 = vmatpush1.bf16.msra.mxu1 %v5523_v40 }
 0x48e   : > { %3936 = vmatprep.subr.bf16.mxu1 %v5528_v47 }
 0x48f   : > { %3124 = vmatprep.mubr.bf16.mxu1 %v2735_v43 }
 0x490   : > { %3125 = vmatmul.mubr.bf16.gmra.mxu1 %v2734_v53  ;;  %v5555_v53 = vld [vmem:[%s7184_s3 + $0x6c4] ss:$8 sps:$4 sm:$0xff]  }
 0x491   : > { %3937 = vmatpush1.bf16.msra.mxu1 %v5526_v46 }
 0x492   : > { %3938 = vmatprep.subr.bf16.mxu1 %v5531_v15 }
 0x495   : > { %3939 = vmatpush1.bf16.msra.mxu1 %v5529_v50  ;;  %v5553_v50 = vld [vmem:[%s7184_s3 + $0x6c0] ss:$8 sps:$4 sm:$0xff]  }
 0x496   : > { %3940 = vmatprep.subr.bf16.mxu1 %v5534_v26 }
 0x499   : > { %3941 = vmatpush1.bf16.msra.mxu1 %v5532_v54  ;;  %v5558_v54 = vld [vmem:[%s7184_s3 + $0x6b4] ss:$8 sps:$4 sm:$0xff]  }
 0x49a   : > { %3942 = vmatprep.subr.bf16.mxu1 %v5537_v0 }
 0x49d   : > { %3943 = vmatpush1.bf16.msra.mxu1 %v5535_v30 }
 0x49e   : > { %3944 = vmatprep.subr.bf16.mxu1 %v5540_v7 }
 0x4a1   : > { %3945 = vmatpush1.bf16.msra.mxu1 %v5538_v3 }
 0x4a2   : > { %3946 = vmatprep.subr.bf16.mxu1 %v5543_v37 }
 0x4a5   : > { %3947 = vmatpush1.bf16.msra.mxu1 %v5541_v44 }
 0x4a6   : > { %3948 = vmatprep.subr.bf16.mxu1 %v5546_v9 }
 0x4a9   : > { %3949 = vmatpush2.bf16.msra.mxu1 %v5544_v24 }
 0x4aa   : > { %3950 = vmatprep.subr.bf16.mxu1 %v5549_v21 }
 0x4ad   : > { %3951 = vmatpush2.bf16.msra.mxu1 %v5547_v32 }
 0x4ae   : > { %3952 = vmatprep.subr.bf16.mxu1 %v5552_v34 }
 0x4b1   : > { %3953 = vmatpush2.bf16.msra.mxu1 %v5550_v41 }
 0x4b2   : > { %3954 = vmatprep.subr.bf16.mxu1 %v5555_v53 }
 0x4b5   : > { %3955 = vmatpush2.bf16.msra.mxu1 %v5553_v50 }
 0x4b6   : > { %3956 = vmatprep.subr.bf16.mxu1 %v5558_v54 }
 0x4d8   : > { %v2976_v61 = vpop.f32.mrf.mxu1 }
 0x4d9   : > { %v2977_v52 = vadd.f32 %v2976_v61, %v6745_v49 }
 0x4da   : > { %v2978_v62 = vpop.f32.mrf.mxu1 }
 0x4db   : > { %v2979_v1 = vadd.f32 %v2978_v62, %v6742_v51  ;;  %v3135_v6 = vmax.f32 %v2977_v52, 0.0 }
 0x4dc   : > { %v2980_v57 = vpop.f32.mrf.mxu1 }
 0x4dd   : > { %v2981_v28 = vadd.f32 %v2980_v57, %v6745_v49  ;;  %v3136_v48 = vmax.f32 %v2979_v1, 0.0  ;;  %v5556_v57 = vld [vmem:[%s7184_s3 + $0x6b0] ss:$8 sps:$4 sm:$0xff]  }
 0x4de   : > { %v2982_v2 = vpop.f32.mrf.mxu1  ;;  %3957 = vmatpush2.bf16.msra.mxu1 %v5556_v57 }
 0x4df   : > { %v2983_v10 = vadd.f32 %v2982_v2, %v6742_v51  ;;  %v3137_v12 = vmax.f32 %v2981_v28, 0.0  ;;  %v5561_v28 = vld [vmem:[%s7184_s3 + $0x6a4] ss:$8 sps:$4 sm:$0xff]  }
 0x4e0   : > { %v2986_v13 = vpop.f32.mrf.mxu1  ;;  %3958 = vmatprep.subr.bf16.mxu1 %v5561_v28 }
 0x4e1   : > { %v3138_v11 = vmax.f32 %v2983_v10, 0.0  ;;  %v3199_v17 = vpack.c.bf16 %v3137_v12, %v3135_v6  ;;  %v2987_v23 = vadd.f32 %v2986_v13, %v6745_v49  ;;  %v5559_v12 = vld [vmem:[%s7184_s3 + $0x6a0] ss:$8 sps:$4 sm:$0xff]  }
 0x4e2   : > { %v2988_v18 = vpop.f32.mrf.mxu1  ;;  %3959 = vmatpush2.bf16.msra.mxu1 %v5559_v12 }
 0x4e3   : > { %v3200_v14 = vpack.c.bf16 %v3138_v11, %v3136_v48  ;;  %v2989_v19 = vadd.f32 %v2988_v18, %v6742_v51  ;;  %v3139_v27 = vmax.f32 %v2987_v23, 0.0  ;;  %v5564_v48 = vld [vmem:[%s7184_s3 + $0x694] ss:$8 sps:$4 sm:$0xff]  }
 0x4e4   : > { %v2990_v20 = vpop.f32.mrf.mxu1  ;;  %3960 = vmatprep.subr.bf16.mxu1 %v5564_v48 }
 0x4e5   : > { %v2991_v22 = vadd.f32 %v2990_v20, %v6745_v49  ;;  %3469 = vmatprep.mubr.bf16.mxu0 %v3200_v14  ;;  %v3140_v25 = vmax.f32 %v2989_v19, 0.0 }
 0x4e6   : > { %v2992_v16 = vpop.f32.mrf.mxu1  ;;  %3470 = vmatmul.mubr.bf16.vlgmr.msra.gmra.mxu0 %v3199_v17  ;;  %v5562_v17 = vld [vmem:[%s7184_s3 + $0x690] ss:$8 sps:$4 sm:$0xff]  }
 0x4e7   : > { %v2993_v8 = vadd.f32 %v2992_v16, %v6742_v51  ;;  %v3141_v31 = vmax.f32 %v2991_v22, 0.0  ;;  %3961 = vmatpush2.bf16.msra.mxu1 %v5562_v17 }
 0x4e8   : > { %v2996_v42 = vpop.f32.mrf.mxu1 }
 0x4e9   : > { %v3142_v63 = vmax.f32 %v2993_v8, 0.0  ;;  %v3201_v59 = vpack.c.bf16 %v3141_v31, %v3139_v27  ;;  %v2997_v60 = vadd.f32 %v2996_v42, %v6745_v49 }
 0x4ea   : > { %v2998_v29 = vpop.f32.mrf.mxu1 }
 0x4eb   : > { %v3202_v33 = vpack.c.bf16 %v3142_v63, %v3140_v25  ;;  %v2999_v36 = vadd.f32 %v2998_v29, %v6742_v51  ;;  %v3143_v46 = vmax.f32 %v2997_v60, 0.0 }
 0x4ec   : > { %v3000_v35 = vpop.f32.mrf.mxu1 }
 0x4ed   : > { %v3001_v38 = vadd.f32 %v3000_v35, %v6745_v49  ;;  %3479 = vmatprep.mubr.bf16.mxu0 %v3202_v33  ;;  %v3144_v40 = vmax.f32 %v2999_v36, 0.0 }
 0x4ee   : > { %v3002_v5 = vpop.f32.mrf.mxu1  ;;  %3480 = vmatmul.mubr.bf16.gmra.mxu0 %v3201_v59 }
 0x4ef   : > { %v3003_v43 = vadd.f32 %v3002_v5, %v6742_v51  ;;  %v3145_v45 = vmax.f32 %v3001_v38, 0.0 }
 0x4f0   : > { %v3006_v39 = vpop.f32.mrf.mxu1 }
 0x4f1   : > { %v3146_v4 = vmax.f32 %v3003_v43, 0.0  ;;  %v3203_v26 = vpack.c.bf16 %v3145_v45, %v3143_v46  ;;  %v3007_v30 = vadd.f32 %v3006_v39, %v6745_v49 }
 0x4f2   : > { %v3008_v47 = vpop.f32.mrf.mxu1 }
 0x4f3   : > { %v3204_v15 = vpack.c.bf16 %v3146_v4, %v3144_v40  ;;  %v3009_v61 = vadd.f32 %v3008_v47, %v6742_v51  ;;  %v3147_v10 = vmax.f32 %v3007_v30, 0.0 }
 0x4f4   : > { %v3010_v58 = vpop.f32.mrf.mxu1 }
 0x4f5   : > { %v3011_v62 = vadd.f32 %v3010_v58, %v6745_v49  ;;  %3489 = vmatprep.mubr.bf16.mxu0 %v3204_v15  ;;  %v3148_v3 = vmax.f32 %v3009_v61, 0.0 }
 0x4f6   : > { %v3012_v0 = vpop.f32.mrf.mxu1  ;;  %3490 = vmatmul.mubr.bf16.gmra.mxu0 %v3203_v26 }
 0x4f7   : > { %v3013_v1 = vadd.f32 %v3012_v0, %v6742_v51  ;;  %v3149_v52 = vmax.f32 %v3011_v62, 0.0 }
 0x4f8   : > { %v3016_v2 = vpop.f32.mrf.mxu1 }
 0x4f9   : > { %v3150_v7 = vmax.f32 %v3013_v1, 0.0  ;;  %v3205_v11 = vpack.c.bf16 %v3149_v52, %v3147_v10  ;;  %v3017_v14 = vadd.f32 %v3016_v2, %v6745_v49 }
 0x4fa   : > { %v3018_v37 = vpop.f32.mrf.mxu1 }
 0x4fb   : > { %v3206_v13 = vpack.c.bf16 %v3150_v7, %v3148_v3  ;;  %v3019_v18 = vadd.f32 %v3018_v37, %v6742_v51  ;;  %v3151_v24 = vmax.f32 %v3017_v14, 0.0 }
 0x4fc   : > { %v3020_v6 = vpop.f32.mrf.mxu1 }
 0x4fd   : > { %v3021_v44 = vadd.f32 %v3020_v6, %v6745_v49  ;;  %3499 = vmatprep.mubr.bf16.mxu0 %v3206_v13  ;;  %v3152_v23 = vmax.f32 %v3019_v18, 0.0 }
 0x4fe   : > { %v3022_v9 = vpop.f32.mrf.mxu1  ;;  %3500 = vmatmul.mubr.bf16.gmra.mxu0 %v3205_v11 }
 0x4ff   : > { %v3023_v20 = vadd.f32 %v3022_v9, %v6742_v51  ;;  %v3153_v19 = vmax.f32 %v3021_v44, 0.0 }
 0x500   : > { %v3026_v22 = vpop.f32.mrf.mxu1 }
 0x501   : > { %v3154_v16 = vmax.f32 %v3023_v20, 0.0  ;;  %v3207_v31 = vpack.c.bf16 %v3153_v19, %v3151_v24  ;;  %v3027_v27 = vadd.f32 %v3026_v22, %v6745_v49 }
 0x502   : > { %v3028_v8 = vpop.f32.mrf.mxu1 }
 0x503   : > { %v3208_v21 = vpack.c.bf16 %v3154_v16, %v3152_v23  ;;  %v3029_v25 = vadd.f32 %v3028_v8, %v6742_v51  ;;  %v3155_v36 = vmax.f32 %v3027_v27, 0.0 }
 0x504   : > { %v3030_v42 = vpop.f32.mrf.mxu1 }
 0x505   : > { %v3031_v63 = vadd.f32 %v3030_v42, %v6745_v49  ;;  %3509 = vmatprep.mubr.bf16.mxu0 %v3208_v21  ;;  %v3156_v59 = vmax.f32 %v3029_v25, 0.0 }
 0x506   : > { %v3032_v29 = vpop.f32.mrf.mxu1  ;;  %3510 = vmatmul.mubr.bf16.gmra.mxu0 %v3207_v31 }
 0x507   : > { %v3033_v32 = vadd.f32 %v3032_v29, %v6742_v51  ;;  %v3157_v33 = vmax.f32 %v3031_v63, 0.0 }
 0x508   : > { %v3036_v34 = vpop.f32.mrf.mxu1 }
 0x509   : > { %v3158_v35 = vmax.f32 %v3033_v32, 0.0  ;;  %v3209_v5 = vpack.c.bf16 %v3157_v33, %v3155_v36  ;;  %v3037_v45 = vadd.f32 %v3036_v34, %v6745_v49 }
 0x50a   : > { %v3038_v38 = vpop.f32.mrf.mxu1 }
 0x50b   : > { %v3210_v60 = vpack.c.bf16 %v3158_v35, %v3156_v59  ;;  %v3039_v43 = vadd.f32 %v3038_v38, %v6742_v51  ;;  %v3159_v15 = vmax.f32 %v3037_v45, 0.0  ;;  %v5565_v45 = vld [vmem:[%s7184_s3 + $0x680] ss:$8 sps:$4 sm:$0xff]  }
 0x50c   : > { %v3040_v41 = vpop.f32.mrf.mxu1 }
 0x50d   : > { %v3041_v53 = vadd.f32 %v3040_v41, %v6745_v49  ;;  %3519 = vmatprep.mubr.bf16.mxu0 %v3210_v60  ;;  %v3160_v47 = vmax.f32 %v3039_v43, 0.0  ;;  %v5567_v43 = vld [vmem:[%s7184_s3 + $0x684] ss:$8 sps:$4 sm:$0xff]  }
 0x50e   : > { %v3042_v39 = vpop.f32.mrf.mxu1  ;;  %3520 = vmatmul.mubr.bf16.gmra.mxu0 %v3209_v5  ;;  %3962 = vmatprep.subr.bf16.mxu1 %v5567_v43 }
 0x50f   : > { %v3043_v40 = vadd.f32 %v3042_v39, %v6742_v51  ;;  %v3161_v4 = vmax.f32 %v3041_v53, 0.0  ;;  %3963 = vmatpush2.bf16.msra.mxu1 %v5565_v45 }
 0x510   : > { %v3046_v46 = vpop.f32.mrf.mxu1 }
 0x511   : > { %v3162_v50 = vmax.f32 %v3043_v40, 0.0  ;;  %v3211_v58 = vpack.c.bf16 %v3161_v4, %v3159_v15  ;;  %v3047_v0 = vadd.f32 %v3046_v46, %v6745_v49 }
 0x512   : > { %v3048_v54 = vpop.f32.mrf.mxu1 }
 0x513   : > { %v3212_v26 = vpack.c.bf16 %v3162_v50, %v3160_v47  ;;  %v3049_v62 = vadd.f32 %v3048_v54, %v6742_v51  ;;  %v3163_v7 = vmax.f32 %v3047_v0, 0.0 }
 0x514   : > { %v3050_v61 = vpop.f32.mrf.mxu1 }
 0x515   : > { %v3051_v30 = vadd.f32 %v3050_v61, %v6745_v49  ;;  %3529 = vmatprep.mubr.bf16.mxu0 %v3212_v26  ;;  %v3164_v2 = vmax.f32 %v3049_v62, 0.0 }
 0x516   : > { %v3052_v57 = vpop.f32.mrf.mxu1  ;;  %3530 = vmatmul.mubr.bf16.gmra.mxu0 %v3211_v58 }
 0x517   : > { %v3053_v1 = vadd.f32 %v3052_v57, %v6742_v51  ;;  %v3165_v28 = vmax.f32 %v3051_v30, 0.0 }
 0x518   : > { %v3056_v52 = vpop.f32.mrf.mxu1 }
 0x519   : > { %v3166_v3 = vmax.f32 %v3053_v1, 0.0  ;;  %v3213_v12 = vpack.c.bf16 %v3165_v28, %v3163_v7  ;;  %v3057_v6 = vadd.f32 %v3056_v52, %v6745_v49 }
 0x51a   : > { %v3058_v10 = vpop.f32.mrf.mxu1 }
 0x51b   : > { %v3214_v37 = vpack.c.bf16 %v3166_v3, %v3164_v2  ;;  %v3059_v48 = vadd.f32 %v3058_v10, %v6742_v51  ;;  %v3167_v19 = vmax.f32 %v3057_v6, 0.0 }
 0x51c   : > { %v3060_v13 = vpop.f32.mrf.mxu1 }
 0x51d   : > { %v3061_v11 = vadd.f32 %v3060_v13, %v6745_v49  ;;  %3539 = vmatprep.mubr.bf16.mxu0 %v3214_v37  ;;  %v3168_v17 = vmax.f32 %v3059_v48, 0.0 }
 0x51e   : > { %v3062_v18 = vpop.f32.mrf.mxu1  ;;  %3540 = vmatmul.mubr.bf16.gmra.mxu0 %v3213_v12 }
 0x51f   : > { %v3063_v44 = vadd.f32 %v3062_v18, %v6742_v51  ;;  %v3169_v14 = vmax.f32 %v3061_v11, 0.0 }
 0x520   : > { %v3066_v9 = vpop.f32.mrf.mxu1 }
 0x521   : > { %v3170_v20 = vmax.f32 %v3063_v44, 0.0  ;;  %v3215_v16 = vpack.c.bf16 %v3169_v14, %v3167_v19  ;;  %v3067_v31 = vadd.f32 %v3066_v9, %v6745_v49 }
 0x522   : > { %v3068_v22 = vpop.f32.mrf.mxu1 }
 0x523   : > { %v3216_v23 = vpack.c.bf16 %v3170_v20, %v3168_v17  ;;  %v3069_v8 = vadd.f32 %v3068_v22, %v6742_v51  ;;  %v3171_v33 = vmax.f32 %v3067_v31, 0.0 }
 0x524   : > { %v3070_v24 = vpop.f32.mrf.mxu1 }
 0x525   : > { %v3071_v21 = vadd.f32 %v3070_v24, %v6745_v49  ;;  %3549 = vmatprep.mubr.bf16.mxu0 %v3216_v23  ;;  %v3172_v29 = vmax.f32 %v3069_v8, 0.0 }
 0x526   : > { %v3072_v42 = vpop.f32.mrf.mxu1  ;;  %3550 = vmatmul.mubr.bf16.gmra.mxu0 %v3215_v16 }
 0x527   : > { %v3073_v25 = vadd.f32 %v3072_v42, %v6742_v51  ;;  %v3173_v63 = vmax.f32 %v3071_v21, 0.0 }
 0x528   : > { %v3076_v27 = vpop.f32.mrf.mxu1 }
 0x529   : > { %v3174_v32 = vmax.f32 %v3073_v25, 0.0  ;;  %v3217_v35 = vpack.c.bf16 %v3173_v63, %v3171_v33  ;;  %v3077_v5 = vadd.f32 %v3076_v27, %v6745_v49 }
 0x52a   : > { %v3078_v34 = vpop.f32.mrf.mxu1 }
 0x52b   : > { %v3218_v59 = vpack.c.bf16 %v3174_v32, %v3172_v29  ;;  %v3079_v38 = vadd.f32 %v3078_v34, %v6742_v51  ;;  %v3175_v47 = vmax.f32 %v3077_v5, 0.0 }
 0x52c   : > { %v3080_v36 = vpop.f32.mrf.mxu1 }
 0x52d   : > { %v3081_v60 = vadd.f32 %v3080_v36, %v6745_v49  ;;  %3559 = vmatprep.mubr.bf16.mxu0 %v3218_v59  ;;  %v3176_v4 = vmax.f32 %v3079_v38, 0.0 }
 0x52e   : > { %v3082_v41 = vpop.f32.mrf.mxu1  ;;  %3560 = vmatmul.mubr.bf16.gmra.mxu0 %v3217_v35 }
 0x52f   : > { %v3083_v53 = vadd.f32 %v3082_v41, %v6742_v51  ;;  %v3177_v39 = vmax.f32 %v3081_v60, 0.0 }
 0x530   : > { %v3086_v40 = vpop.f32.mrf.mxu1 }
 0x531   : > { %v3178_v46 = vmax.f32 %v3083_v53, 0.0  ;;  %v3219_v54 = vpack.c.bf16 %v3177_v39, %v3175_v47  ;;  %v3087_v62 = vadd.f32 %v3086_v40, %v6745_v49 }
 0x532   : > { %v3088_v50 = vpop.f32.mrf.mxu1 }
 0x533   : > { %v3220_v15 = vpack.c.bf16 %v3178_v46, %v3176_v4  ;;  %v3089_v58 = vadd.f32 %v3088_v50, %v6742_v51  ;;  %v3179_v2 = vmax.f32 %v3087_v62, 0.0 }
 0x534   : > { %v3090_v26 = vpop.f32.mrf.mxu1 }
 0x535   : > { %v3091_v61 = vadd.f32 %v3090_v26, %v6745_v49  ;;  %3569 = vmatprep.mubr.bf16.mxu0 %v3220_v15  ;;  %v3180_v28 = vmax.f32 %v3089_v58, 0.0 }
 0x536   : > { %v3092_v30 = vpop.f32.mrf.mxu1  ;;  %3570 = vmatmul.mubr.bf16.gmra.mxu0 %v3219_v54 }
 0x537   : > { %v3093_v0 = vadd.f32 %v3092_v30, %v6742_v51  ;;  %v3181_v57 = vmax.f32 %v3091_v61, 0.0 }
 0x538   : > { %v3096_v1 = vpop.f32.mrf.mxu1 }
 0x539   : > { %v3182_v52 = vmax.f32 %v3093_v0, 0.0  ;;  %v3221_v10 = vpack.c.bf16 %v3181_v57, %v3179_v2  ;;  %v3097_v48 = vadd.f32 %v3096_v1, %v6745_v49  ;;  %v5572_v2 = vld [vmem:[%s7186_s5 + $0x68] sm:$0xff]  }
 0x53a   : > { %v3098_v3 = vpop.f32.mrf.mxu1 }
 0x53b   : > { %v3222_v7 = vpack.c.bf16 %v3182_v52, %v3180_v28  ;;  %v3099_v12 = vadd.f32 %v3098_v3, %v6742_v51  ;;  %v3183_v17 = vmax.f32 %v3097_v48, 0.0  ;;  %v5568_v28 = vld [vmem:[%s7186_s5 + $0x78] sm:$0xff]   ;;  %v5571_v52 = vld [vmem:[%s7186_s5 + $0x30] sm:$0xff]   ;;  %v4974_v3 = vld [vmem:[%s7185_s4 + $0xa] sm:$0x3] }
 0x53c   : > { %v3100_v37 = vpop.f32.mrf.mxu1  ;;  %5091 = vmatprep.subr.bf16.mxu0 %v5568_v28 }
 0x53d   : > { %v3101_v13 = vadd.f32 %v3100_v37, %v6745_v49  ;;  %3579 = vmatprep.mubr.bf16.mxu0 %v3222_v7  ;;  %v3184_v14 = vmax.f32 %v3099_v12, 0.0  ;;  %v5573_v37 = vld [vmem:[%s7186_s5 + $0x28] sm:$0xff]   ;;  %v6902_v12 = vrot.slane %v4974_v3, %v5798_v56 }
 0x53e   : > { %v3102_v11 = vpop.f32.mrf.mxu1  ;;  %3580 = vmatmul.mubr.bf16.gmra.mxu0 %v3221_v10  ;;  %v6896_v10 = vrot.slane %v4974_v3, %v5796_v55 }
 0x53f   : > { %v3103_v6 = vadd.f32 %v3102_v11, %v6742_v51  ;;  %v3185_v18 = vmax.f32 %v3101_v13, 0.0 }
 0x540   : > { %v3106_v44 = vpop.f32.mrf.mxu1 }
 0x541   : > { %v3186_v9 = vmax.f32 %v3103_v6, 0.0  ;;  %v3223_v22 = vpack.c.bf16 %v3185_v18, %v3183_v17  ;;  %v3107_v8 = vadd.f32 %v3106_v44, %v6745_v49  ;;  %v5576_v17 = vld [vmem:[%s7186_s5 + $0x58] sm:$0xff]  }
 0x542   : > { %v3108_v20 = vpop.f32.mrf.mxu1 }
 0x543   : > { %v3224_v19 = vpack.c.bf16 %v3186_v9, %v3184_v14  ;;  %v3109_v16 = vadd.f32 %v3108_v20, %v6742_v51  ;;  %v3187_v29 = vmax.f32 %v3107_v8, 0.0  ;;  %v5574_v14 = vld [vmem:[%s7186_s5 + $0x60] sm:$0xff]  }
 0x544   : > { %v3110_v23 = vpop.f32.mrf.mxu1  ;;  %v5575_v9 = vld [vmem:[%s7186_s5 + $0x20] sm:$0xff]  }
 0x545   : > { %v3111_v24 = vadd.f32 %v3110_v23, %v6745_v49  ;;  %3589 = vmatprep.mubr.bf16.mxu0 %v3224_v19  ;;  %v3188_v63 = vmax.f32 %v3109_v16, 0.0 }
 0x546   : > { %v3112_v21 = vpop.f32.mrf.mxu1  ;;  %3590 = vmatmul.mubr.bf16.gmra.mxu0 %v3223_v22 }
 0x547   : > { %v3113_v31 = vadd.f32 %v3112_v21, %v6742_v51  ;;  %v3189_v42 = vmax.f32 %v3111_v24, 0.0  ;;  %v5577_v24 = vld [vmem:[%s7186_s5 + $0x18] sm:$0xff]  }
 0x548   : > { %v3116_v25 = vpop.f32.mrf.mxu1 }
 0x549   : > { %v3190_v27 = vmax.f32 %v3113_v31, 0.0  ;;  %v3225_v34 = vpack.c.bf16 %v3189_v42, %v3187_v29  ;;  %v3117_v38 = vadd.f32 %v3116_v25, %v6745_v49  ;;  %v5578_v31 = vld [vmem:[%s7186_s5 + $0x50] sm:$0xff]  }
 0x54a   : > { %v3118_v32 = vpop.f32.mrf.mxu1 }
 0x54b   : > { %v3226_v33 = vpack.c.bf16 %v3190_v27, %v3188_v63  ;;  %v3119_v35 = vadd.f32 %v3118_v32, %v6742_v51  ;;  %v3191_v39 = vmax.f32 %v3117_v38, 0.0  ;;  %v5579_v32 = vld [vmem:[%s7186_s5 + $0x10] sm:$0xff]  }
 0x54c   : > { %v3120_v59 = vpop.f32.mrf.mxu1 }
 0x54d   : > { %v3121_v36 = vadd.f32 %v3120_v59, %v6745_v49  ;;  %3599 = vmatprep.mubr.bf16.mxu0 %v3226_v33  ;;  %v3192_v53 = vmax.f32 %v3119_v35, 0.0  ;;  %v5580_v59 = vld [vmem:[%s7186_s5 + $0x48] sm:$0xff]  }
 0x54e   : > { %v3122_v60 = vpop.f32.mrf.mxu1  ;;  %3600 = vmatmul.mubr.bf16.gmra.mxu0 %v3225_v34 }
 0x54f   : > { %v3123_v5 = vadd.f32 %v3122_v60, %v6742_v51  ;;  %v3193_v41 = vmax.f32 %v3121_v36, 0.0 }
 0x550   : > { %v3126_v43 = vpop.f32.mrf.mxu1 }
 0x551   : > { %v3194_v45 = vmax.f32 %v3123_v5, 0.0  ;;  %v3227_v46 = vpack.c.bf16 %v3193_v41, %v3191_v39  ;;  %v3127_v54 = vadd.f32 %v3126_v43, %v6745_v49  ;;  %v5581_v41 = vld [vmem:[%s7186_s5 + $0x8] sm:$0xff]  }
 0x552   : > { %v3128_v40 = vpop.f32.mrf.mxu1 }
 0x553   : > { %v3228_v4 = vpack.c.bf16 %v3194_v45, %v3192_v53  ;;  %v3129_v50 = vadd.f32 %v3128_v40, %v6742_v51  ;;  %v3195_v0 = vmax.f32 %v3127_v54, 0.0  ;;  %v5582_v45 = vld [vmem:[%s7186_s5 + $0x40] sm:$0xff]  }
 0x554   : > { %v3130_v47 = vpop.f32.mrf.mxu1 }
 0x555   : > { %v3131_v15 = vadd.f32 %v3130_v47, %v6745_v49  ;;  %3609 = vmatprep.mubr.bf16.mxu0 %v3228_v4  ;;  %v3196_v62 = vmax.f32 %v3129_v50, 0.0  ;;  %v5569_v49 = vld [vmem:[%s7186_s5 + $0x38] sm:$0xff]   ;;  %v5583_v50 = vld [vmem:[%s7186_s5] sm:$0xff]  }
 0x556   : > { %v3132_v26 = vpop.f32.mrf.mxu1  ;;  %3610 = vmatmul.mubr.bf16.gmra.mxu0 %v3227_v46 }
 0x557   : > { %v3133_v58 = vadd.f32 %v3132_v26, %v6742_v51  ;;  %v3197_v61 = vmax.f32 %v3131_v15, 0.0  ;;  %5092 = vmatpush3.bf16.msra.mxu0 %v5569_v49  ;;  %v5570_v51 = vld [vmem:[%s7186_s5 + $0x70] sm:$0xff]  }
 0x558   : > { %5093 = vmatprep.subr.bf16.mxu0 %v5570_v51 }
 0x559   : > { %v3198_v30 = vmax.f32 %v3133_v58, 0.0  ;;  %v3229_v1 = vpack.c.bf16 %v3197_v61, %v3195_v0 }
 0x55b   : > { %v3230_v57 = vpack.c.bf16 %v3198_v30, %v3196_v62  ;;  %5094 = vmatpush3.bf16.msra.mxu0 %v5571_v52 }
 0x55c   : > { %5095 = vmatprep.subr.bf16.mxu0 %v5572_v2 }
 0x55d   : > { %3619 = vmatprep.mubr.bf16.mxu0 %v3230_v57 }
 0x55e   : > { %3620 = vmatmul.mubr.bf16.gmra.mxu0 %v3229_v1 }
 0x55f   : > { %5096 = vmatpush3.bf16.msra.mxu0 %v5573_v37 }
 0x560   : > { %5097 = vmatprep.subr.bf16.mxu0 %v5574_v14 }
 0x563   : > { %5098 = vmatpush3.bf16.msra.mxu0 %v5575_v9 }
 0x564   : > { %5099 = vmatprep.subr.bf16.mxu0 %v5576_v17 }
 0x567   : > { %5100 = vmatpush3.bf16.msra.mxu0 %v5577_v24 }
 0x568   : > { %5101 = vmatprep.subr.bf16.mxu0 %v5578_v31 }
 0x56b   : > { %5102 = vmatpush3.bf16.msra.mxu0 %v5579_v32 }
 0x56c   : > { %5103 = vmatprep.subr.bf16.mxu0 %v5580_v59 }
 0x56f   : > { %5104 = vmatpush3.bf16.msra.mxu0 %v5581_v41 }
 0x570   : > { %5105 = vmatprep.subr.bf16.mxu0 %v5582_v45 }
 0x573   : > { %5106 = vmatpush3.bf16.msra.mxu0 %v5583_v50 }
 0x5a6   : > { %v3471_v7 = vpop.f32.mrf.mxu0 }
 0x5a7   : > { %v3472_v18 = vadd.f32 %v3471_v7, %v6902_v12 }
 0x5a8   : > { %v3473_v13 = vpop.f32.mrf.mxu0 }
 0x5a9   : > { %v3474_v11 = vadd.f32 %v3473_v13, %v6896_v10  ;;  %v3630_v8 = vmax.f32 %v3472_v18, 0.0 }
 0x5aa   : > { %v3475_v48 = vpop.f32.mrf.mxu0 }
 0x5ab   : > { %v3476_v6 = vadd.f32 %v3475_v48, %v6902_v12  ;;  %v3631_v23 = vmax.f32 %v3474_v11, 0.0 }
 0x5ac   : > { %v3477_v44 = vpop.f32.mrf.mxu0 }
 0x5ad   : > { %v3478_v20 = vadd.f32 %v3477_v44, %v6896_v10  ;;  %v3632_v19 = vmax.f32 %v3476_v6, 0.0 }
 0x5ae   : > { %v3481_v22 = vpop.f32.mrf.mxu0 }
 0x5af   : > { %v3633_v16 = vmax.f32 %v3478_v20, 0.0  ;;  %v3694_v25 = vpack.c.bf16 %v3632_v19, %v3630_v8  ;;  %v3482_v33 = vadd.f32 %v3481_v22, %v6902_v12 }
 0x5b0   : > { %v3483_v21 = vpop.f32.mrf.mxu0 }
 0x5b1   : > { %v3695_v42 = vpack.c.bf16 %v3633_v16, %v3631_v23  ;;  %v3484_v27 = vadd.f32 %v3483_v21, %v6896_v10  ;;  %v3634_v43 = vmax.f32 %v3482_v33, 0.0 }
 0x5b2   : > { %v3485_v63 = vpop.f32.mrf.mxu0 }
 0x5b3   : > { %v3486_v29 = vadd.f32 %v3485_v63, %v6902_v12  ;;  %3964 = vmatprep.mubr.bf16.mxu1 %v3695_v42  ;;  %v3635_v60 = vmax.f32 %v3484_v27, 0.0 }
 0x5b4   : > { %v3487_v34 = vpop.f32.mrf.mxu0  ;;  %3965 = vmatmul.mubr.bf16.vlgmr.msra.gmra.mxu1 %v3694_v25 }
 0x5b5   : > { %v3488_v35 = vadd.f32 %v3487_v34, %v6896_v10  ;;  %v3636_v36 = vmax.f32 %v3486_v29, 0.0 }
 0x5b6   : > { %v3491_v38 = vpop.f32.mrf.mxu0 }
 0x5b7   : > { %v3637_v5 = vmax.f32 %v3488_v35, 0.0  ;;  %v3696_v40 = vpack.c.bf16 %v3636_v36, %v3634_v43  ;;  %v3492_v15 = vadd.f32 %v3491_v38, %v6902_v12 }
 0x5b8   : > { %v3493_v53 = vpop.f32.mrf.mxu0 }
 0x5b9   : > { %v3697_v39 = vpack.c.bf16 %v3637_v5, %v3635_v60  ;;  %v3494_v46 = vadd.f32 %v3493_v53, %v6896_v10  ;;  %v3638_v0 = vmax.f32 %v3492_v15, 0.0 }
 0x5ba   : > { %v3495_v4 = vpop.f32.mrf.mxu0 }
 0x5bb   : > { %v3496_v47 = vadd.f32 %v3495_v4, %v6902_v12  ;;  %3974 = vmatprep.mubr.bf16.mxu1 %v3697_v39  ;;  %v3639_v62 = vmax.f32 %v3494_v46, 0.0 }
 0x5bc   : > { %v3497_v54 = vpop.f32.mrf.mxu0  ;;  %3975 = vmatmul.mubr.bf16.gmra.mxu1 %v3696_v40 }
 0x5bd   : > { %v3498_v26 = vadd.f32 %v3497_v54, %v6896_v10  ;;  %v3640_v58 = vmax.f32 %v3496_v47, 0.0 }
 0x5be   : > { %v3501_v61 = vpop.f32.mrf.mxu0 }
 0x5bf   : > { %v3641_v30 = vmax.f32 %v3498_v26, 0.0  ;;  %v3698_v28 = vpack.c.bf16 %v3640_v58, %v3638_v0  ;;  %v3502_v2 = vadd.f32 %v3501_v61, %v6902_v12 }
 0x5c0   : > { %v3503_v57 = vpop.f32.mrf.mxu0 }
 0x5c1   : > { %v3699_v1 = vpack.c.bf16 %v3641_v30, %v3639_v62  ;;  %v3504_v51 = vadd.f32 %v3503_v57, %v6896_v10  ;;  %v3642_v6 = vmax.f32 %v3502_v2, 0.0 }
 0x5c2   : > { %v3505_v49 = vpop.f32.mrf.mxu0 }
 0x5c3   : > { %v3506_v52 = vadd.f32 %v3505_v49, %v6902_v12  ;;  %3984 = vmatprep.mubr.bf16.mxu1 %v3699_v1  ;;  %v3643_v48 = vmax.f32 %v3504_v51, 0.0 }
 0x5c4   : > { %v3507_v3 = vpop.f32.mrf.mxu0  ;;  %3985 = vmatmul.mubr.bf16.gmra.mxu1 %v3698_v28 }
 0x5c5   : > { %v3508_v7 = vadd.f32 %v3507_v3, %v6896_v10  ;;  %v3644_v37 = vmax.f32 %v3506_v52, 0.0 }
 0x5c6   : > { %v3511_v13 = vpop.f32.mrf.mxu0 }
 0x5c7   : > { %v3645_v11 = vmax.f32 %v3508_v7, 0.0  ;;  %v3700_v14 = vpack.c.bf16 %v3644_v37, %v3642_v6  ;;  %v3512_v19 = vadd.f32 %v3511_v13, %v6902_v12 }
 0x5c8   : > { %v3513_v18 = vpop.f32.mrf.mxu0 }
 0x5c9   : > { %v3701_v44 = vpack.c.bf16 %v3645_v11, %v3643_v48  ;;  %v3514_v17 = vadd.f32 %v3513_v18, %v6896_v10  ;;  %v3646_v31 = vmax.f32 %v3512_v19, 0.0 }
 0x5ca   : > { %v3515_v9 = vpop.f32.mrf.mxu0 }
 0x5cb   : > { %v3516_v20 = vadd.f32 %v3515_v9, %v6902_v12  ;;  %3994 = vmatprep.mubr.bf16.mxu1 %v3701_v44  ;;  %v3647_v8 = vmax.f32 %v3514_v17, 0.0 }
 0x5cc   : > { %v3517_v22 = vpop.f32.mrf.mxu0  ;;  %3995 = vmatmul.mubr.bf16.gmra.mxu1 %v3700_v14 }
 0x5cd   : > { %v3518_v23 = vadd.f32 %v3517_v22, %v6896_v10  ;;  %v3648_v16 = vmax.f32 %v3516_v20, 0.0 }
 0x5ce   : > { %v3521_v24 = vpop.f32.mrf.mxu0 }
 0x5cf   : > { %v3649_v21 = vmax.f32 %v3518_v23, 0.0  ;;  %v3702_v63 = vpack.c.bf16 %v3648_v16, %v3646_v31  ;;  %v3522_v33 = vadd.f32 %v3521_v24, %v6902_v12 }
 0x5d0   : > { %v3523_v42 = vpop.f32.mrf.mxu0 }
 0x5d1   : > { %v3703_v25 = vpack.c.bf16 %v3649_v21, %v3647_v8  ;;  %v3524_v29 = vadd.f32 %v3523_v42, %v6896_v10  ;;  %v3650_v5 = vmax.f32 %v3522_v33, 0.0 }
 0x5d2   : > { %v3525_v27 = vpop.f32.mrf.mxu0 }
 0x5d3   : > { %v3526_v32 = vadd.f32 %v3525_v27, %v6902_v12  ;;  %4004 = vmatprep.mubr.bf16.mxu1 %v3703_v25  ;;  %v3651_v38 = vmax.f32 %v3524_v29, 0.0 }
 0x5d4   : > { %v3527_v34 = vpop.f32.mrf.mxu0  ;;  %4005 = vmatmul.mubr.bf16.gmra.mxu1 %v3702_v63 }
 0x5d5   : > { %v3528_v59 = vadd.f32 %v3527_v34, %v6896_v10  ;;  %v3652_v35 = vmax.f32 %v3526_v32, 0.0 }
 0x5d6   : > { %v3531_v36 = vpop.f32.mrf.mxu0 }
 0x5d7   : > { %v3653_v60 = vmax.f32 %v3528_v59, 0.0  ;;  %v3704_v53 = vpack.c.bf16 %v3652_v35, %v3650_v5  ;;  %v3532_v4 = vadd.f32 %v3531_v36, %v6902_v12 }
 0x5d8   : > { %v3533_v41 = vpop.f32.mrf.mxu0 }
 0x5d9   : > { %v3705_v43 = vpack.c.bf16 %v3653_v60, %v3651_v38  ;;  %v3534_v39 = vadd.f32 %v3533_v41, %v6896_v10  ;;  %v3654_v58 = vmax.f32 %v3532_v4, 0.0 }
 0x5da   : > { %v3535_v45 = vpop.f32.mrf.mxu0 }
 0x5db   : > { %v3536_v40 = vadd.f32 %v3535_v45, %v6902_v12  ;;  %4014 = vmatprep.mubr.bf16.mxu1 %v3705_v43  ;;  %v3655_v54 = vmax.f32 %v3534_v39, 0.0 }
 0x5dc   : > { %v3537_v46 = vpop.f32.mrf.mxu0  ;;  %4015 = vmatmul.mubr.bf16.gmra.mxu1 %v3704_v53 }
 0x5dd   : > { %v3538_v47 = vadd.f32 %v3537_v46, %v6896_v10  ;;  %v3656_v50 = vmax.f32 %v3536_v40, 0.0 }
 0x5de   : > { %v3541_v15 = vpop.f32.mrf.mxu0 }
 0x5df   : > { %v3657_v26 = vmax.f32 %v3538_v47, 0.0  ;;  %v3706_v30 = vpack.c.bf16 %v3656_v50, %v3654_v58  ;;  %v3542_v28 = vadd.f32 %v3541_v15, %v6902_v12 }
 0x5e0   : > { %v3543_v61 = vpop.f32.mrf.mxu0 }
 0x5e1   : > { %v3707_v62 = vpack.c.bf16 %v3657_v26, %v3655_v54  ;;  %v3544_v57 = vadd.f32 %v3543_v61, %v6896_v10  ;;  %v3658_v37 = vmax.f32 %v3542_v28, 0.0 }
 0x5e2   : > { %v3545_v0 = vpop.f32.mrf.mxu0 }
 0x5e3   : > { %v3546_v1 = vadd.f32 %v3545_v0, %v6902_v12  ;;  %4024 = vmatprep.mubr.bf16.mxu1 %v3707_v62  ;;  %v3659_v3 = vmax.f32 %v3544_v57, 0.0 }
 0x5e4   : > { %v3547_v49 = vpop.f32.mrf.mxu0  ;;  %4025 = vmatmul.mubr.bf16.gmra.mxu1 %v3706_v30 }
 0x5e5   : > { %v3548_v51 = vadd.f32 %v3547_v49, %v6896_v10  ;;  %v3660_v52 = vmax.f32 %v3546_v1, 0.0 }
 0x5e6   : > { %v3551_v2 = vpop.f32.mrf.mxu0 }
 0x5e7   : > { %v3661_v7 = vmax.f32 %v3548_v51, 0.0  ;;  %v3708_v11 = vpack.c.bf16 %v3660_v52, %v3658_v37  ;;  %v3552_v14 = vadd.f32 %v3551_v2, %v6902_v12 }
 0x5e8   : > { %v3553_v13 = vpop.f32.mrf.mxu0 }
 0x5e9   : > { %v3709_v48 = vpack.c.bf16 %v3661_v7, %v3659_v3  ;;  %v3554_v18 = vadd.f32 %v3553_v13, %v6896_v10  ;;  %v3662_v16 = vmax.f32 %v3552_v14, 0.0 }
 0x5ea   : > { %v3555_v6 = vpop.f32.mrf.mxu0 }
 0x5eb   : > { %v3556_v44 = vadd.f32 %v3555_v6, %v6902_v12  ;;  %4034 = vmatprep.mubr.bf16.mxu1 %v3709_v48  ;;  %v3663_v22 = vmax.f32 %v3554_v18, 0.0 }
 0x5ec   : > { %v3557_v9 = vpop.f32.mrf.mxu0  ;;  %4035 = vmatmul.mubr.bf16.gmra.mxu1 %v3708_v11 }
 0x5ed   : > { %v3558_v17 = vadd.f32 %v3557_v9, %v6896_v10  ;;  %v3664_v20 = vmax.f32 %v3556_v44, 0.0 }
 0x5ee   : > { %v3561_v19 = vpop.f32.mrf.mxu0 }
 0x5ef   : > { %v3665_v23 = vmax.f32 %v3558_v17, 0.0  ;;  %v3710_v21 = vpack.c.bf16 %v3664_v20, %v3662_v16  ;;  %v3562_v63 = vadd.f32 %v3561_v19, %v6902_v12 }
 0x5f0   : > { %v3563_v24 = vpop.f32.mrf.mxu0 }
 0x5f1   : > { %v3711_v8 = vpack.c.bf16 %v3665_v23, %v3663_v22  ;;  %v3564_v42 = vadd.f32 %v3563_v24, %v6896_v10  ;;  %v3666_v35 = vmax.f32 %v3562_v63, 0.0 }
 0x5f2   : > { %v3565_v31 = vpop.f32.mrf.mxu0 }
 0x5f3   : > { %v3566_v25 = vadd.f32 %v3565_v31, %v6902_v12  ;;  %4044 = vmatprep.mubr.bf16.mxu1 %v3711_v8  ;;  %v3667_v34 = vmax.f32 %v3564_v42, 0.0 }
 0x5f4   : > { %v3567_v27 = vpop.f32.mrf.mxu0  ;;  %4045 = vmatmul.mubr.bf16.gmra.mxu1 %v3710_v21 }
 0x5f5   : > { %v3568_v29 = vadd.f32 %v3567_v27, %v6896_v10  ;;  %v3668_v32 = vmax.f32 %v3566_v25, 0.0 }
 0x5f6   : > { %v3571_v33 = vpop.f32.mrf.mxu0 }
 0x5f7   : > { %v3669_v59 = vmax.f32 %v3568_v29, 0.0  ;;  %v3712_v60 = vpack.c.bf16 %v3668_v32, %v3666_v35  ;;  %v3572_v53 = vadd.f32 %v3571_v33, %v6902_v12 }
 0x5f8   : > { %v3573_v36 = vpop.f32.mrf.mxu0 }
 0x5f9   : > { %v3713_v38 = vpack.c.bf16 %v3669_v59, %v3667_v34  ;;  %v3574_v41 = vadd.f32 %v3573_v36, %v6896_v10  ;;  %v3670_v50 = vmax.f32 %v3572_v53, 0.0 }
 0x5fa   : > { %v3575_v5 = vpop.f32.mrf.mxu0 }
 0x5fb   : > { %v3576_v43 = vadd.f32 %v3575_v5, %v6902_v12  ;;  %4054 = vmatprep.mubr.bf16.mxu1 %v3713_v38  ;;  %v3671_v46 = vmax.f32 %v3574_v41, 0.0 }
 0x5fc   : > { %v3577_v45 = vpop.f32.mrf.mxu0  ;;  %4055 = vmatmul.mubr.bf16.gmra.mxu1 %v3712_v60 }
 0x5fd   : > { %v3578_v39 = vadd.f32 %v3577_v45, %v6896_v10  ;;  %v3672_v40 = vmax.f32 %v3576_v43, 0.0 }
 0x5fe   : > { %v3581_v4 = vpop.f32.mrf.mxu0 }
 0x5ff   : > { %v3673_v47 = vmax.f32 %v3578_v39, 0.0  ;;  %v3714_v26 = vpack.c.bf16 %v3672_v40, %v3670_v50  ;;  %v3582_v30 = vadd.f32 %v3581_v4, %v6902_v12 }
 0x600   : > { %v3583_v15 = vpop.f32.mrf.mxu0 }
 0x601   : > { %v3715_v54 = vpack.c.bf16 %v3673_v47, %v3671_v46  ;;  %v3584_v61 = vadd.f32 %v3583_v15, %v6896_v10  ;;  %v3674_v52 = vmax.f32 %v3582_v30, 0.0 }
 0x602   : > { %v3585_v58 = vpop.f32.mrf.mxu0 }
 0x603   : > { %v3586_v62 = vadd.f32 %v3585_v58, %v6902_v12  ;;  %4064 = vmatprep.mubr.bf16.mxu1 %v3715_v54  ;;  %v3675_v49 = vmax.f32 %v3584_v61, 0.0 }
 0x604   : > { %v3587_v0 = vpop.f32.mrf.mxu0  ;;  %4065 = vmatmul.mubr.bf16.gmra.mxu1 %v3714_v26 }
 0x605   : > { %v3588_v57 = vadd.f32 %v3587_v0, %v6896_v10  ;;  %v3676_v1 = vmax.f32 %v3586_v62, 0.0 }
 0x606   : > { %v3591_v28 = vpop.f32.mrf.mxu0 }
 0x607   : > { %v3677_v51 = vmax.f32 %v3588_v57, 0.0  ;;  %v3716_v7 = vpack.c.bf16 %v3676_v1, %v3674_v52  ;;  %v3592_v11 = vadd.f32 %v3591_v28, %v6902_v12 }
 0x608   : > { %v3593_v2 = vpop.f32.mrf.mxu0 }
 0x609   : > { %v3717_v3 = vpack.c.bf16 %v3677_v51, %v3675_v49  ;;  %v3594_v13 = vadd.f32 %v3593_v2, %v6896_v10  ;;  %v3678_v20 = vmax.f32 %v3592_v11, 0.0  ;;  %v5039_v49 = vld [vmem:[%s7185_s4 + $0xc] sm:$0x3] }
 0x60a   : > { %v3595_v37 = vpop.f32.mrf.mxu0  ;;  %v7002_v52 = vrot.slane %v5039_v49, %v5796_v55 }
 0x60b   : > { %v3596_v48 = vadd.f32 %v3595_v37, %v6902_v12  ;;  %4074 = vmatprep.mubr.bf16.mxu1 %v3717_v3  ;;  %v3679_v9 = vmax.f32 %v3594_v13, 0.0 }
 0x60c   : > { %v3597_v6 = vpop.f32.mrf.mxu0  ;;  %4075 = vmatmul.mubr.bf16.gmra.mxu1 %v3716_v7 }
 0x60d   : > { %v3598_v18 = vadd.f32 %v3597_v6, %v6896_v10  ;;  %v3680_v44 = vmax.f32 %v3596_v48, 0.0 }
 0x60e   : > { %v3601_v14 = vpop.f32.mrf.mxu0 }
 0x60f   : > { %v3681_v17 = vmax.f32 %v3598_v18, 0.0  ;;  %v3718_v23 = vpack.c.bf16 %v3680_v44, %v3678_v20  ;;  %v3602_v21 = vadd.f32 %v3601_v14, %v6902_v12 }
 0x610   : > { %v3603_v19 = vpop.f32.mrf.mxu0 }
 0x611   : > { %v3719_v22 = vpack.c.bf16 %v3681_v17, %v3679_v9  ;;  %v3604_v24 = vadd.f32 %v3603_v19, %v6896_v10  ;;  %v3682_v32 = vmax.f32 %v3602_v21, 0.0 }
 0x612   : > { %v3605_v16 = vpop.f32.mrf.mxu0 }
 0x613   : > { %v3606_v8 = vadd.f32 %v3605_v16, %v6902_v12  ;;  %4084 = vmatprep.mubr.bf16.mxu1 %v3719_v22  ;;  %v3683_v27 = vmax.f32 %v3604_v24, 0.0 }
 0x614   : > { %v3607_v31 = vpop.f32.mrf.mxu0  ;;  %4085 = vmatmul.mubr.bf16.gmra.mxu1 %v3718_v23 }
 0x615   : > { %v3608_v42 = vadd.f32 %v3607_v31, %v6896_v10  ;;  %v3684_v25 = vmax.f32 %v3606_v8, 0.0 }
 0x616   : > { %v3611_v63 = vpop.f32.mrf.mxu0 }
 0x617   : > { %v3685_v29 = vmax.f32 %v3608_v42, 0.0  ;;  %v3720_v59 = vpack.c.bf16 %v3684_v25, %v3682_v32  ;;  %v3612_v60 = vadd.f32 %v3611_v63, %v6902_v12 }
 0x618   : > { %v3613_v33 = vpop.f32.mrf.mxu0 }
 0x619   : > { %v3721_v34 = vpack.c.bf16 %v3685_v29, %v3683_v27  ;;  %v3614_v36 = vadd.f32 %v3613_v33, %v6896_v10  ;;  %v3686_v40 = vmax.f32 %v3612_v60, 0.0 }
 0x61a   : > { %v3615_v35 = vpop.f32.mrf.mxu0 }
 0x61b   : > { %v3616_v38 = vadd.f32 %v3615_v35, %v6902_v12  ;;  %4094 = vmatprep.mubr.bf16.mxu1 %v3721_v34  ;;  %v3687_v45 = vmax.f32 %v3614_v36, 0.0 }
 0x61c   : > { %v3617_v5 = vpop.f32.mrf.mxu0  ;;  %4095 = vmatmul.mubr.bf16.gmra.mxu1 %v3720_v59 }
 0x61d   : > { %v3618_v41 = vadd.f32 %v3617_v5, %v6896_v10  ;;  %v3688_v43 = vmax.f32 %v3616_v38, 0.0 }
 0x61e   : > { %v3621_v53 = vpop.f32.mrf.mxu0 }
 0x61f   : > { %v3689_v39 = vmax.f32 %v3618_v41, 0.0  ;;  %v3722_v47 = vpack.c.bf16 %v3688_v43, %v3686_v40  ;;  %v3622_v26 = vadd.f32 %v3621_v53, %v6902_v12 }
 0x620   : > { %v3623_v4 = vpop.f32.mrf.mxu0 }
 0x621   : > { %v3723_v46 = vpack.c.bf16 %v3689_v39, %v3687_v45  ;;  %v3624_v15 = vadd.f32 %v3623_v4, %v6896_v10  ;;  %v3690_v57 = vmax.f32 %v3622_v26, 0.0 }
 0x622   : > { %v3625_v50 = vpop.f32.mrf.mxu0 }
 0x623   : > { %v3626_v54 = vadd.f32 %v3625_v50, %v6902_v12  ;;  %4104 = vmatprep.mubr.bf16.mxu1 %v3723_v46  ;;  %v3691_v30 = vmax.f32 %v3624_v15, 0.0  ;;  %v7005_v12 = vrot.slane %v5039_v49, %v5798_v56 }
 0x624   : > { %v3627_v58 = vpop.f32.mrf.mxu0  ;;  %4105 = vmatmul.mubr.bf16.gmra.mxu1 %v3722_v47 }
 0x625   : > { %v3628_v61 = vadd.f32 %v3627_v58, %v6896_v10  ;;  %v3692_v62 = vmax.f32 %v3626_v54, 0.0 }
 0x627   : > { %v3693_v0 = vmax.f32 %v3628_v61, 0.0  ;;  %v3724_v28 = vpack.c.bf16 %v3692_v62, %v3690_v57 }
 0x629   : > { %v3725_v1 = vpack.c.bf16 %v3693_v0, %v3691_v30 }
 0x62b   : > { %4114 = vmatprep.mubr.bf16.mxu1 %v3725_v1 }
 0x62c   : > { %4115 = vmatmul.mubr.bf16.gmra.mxu1 %v3724_v28 }
 0x674   : > { %v3966_v51 = vpop.f32.mrf.mxu1 }
 0x675   : > { %v3967_v37 = vadd.f32 %v3966_v51, %v7005_v12 }
 0x676   : > { %v3968_v10 = vpop.f32.mrf.mxu1 }
 0x677   : > { %v3969_v3 = vadd.f32 %v3968_v10, %v7002_v52  ;;  %v4125_v55 = vmax.f32 %v3967_v37, 0.0 }
 0x678   : > { %v3970_v2 = vpop.f32.mrf.mxu1 }
 0x679   : > { %v3971_v7 = vadd.f32 %v3970_v2, %v7005_v12  ;;  %v4126_v18 = vmax.f32 %v3969_v3, 0.0 }
 0x67a   : > { %v3972_v13 = vpop.f32.mrf.mxu1 }
 0x67b   : > { %v3973_v48 = vadd.f32 %v3972_v13, %v7002_v52  ;;  %v4127_v11 = vmax.f32 %v3971_v7, 0.0 }
 0x67c   : > { %v3976_v6 = vpop.f32.mrf.mxu1 }
 0x67d   : > { %v4128_v44 = vmax.f32 %v3973_v48, 0.0  ;;  %v4189_v56 = vpack.c.bf16 %v4127_v11, %v4125_v55  ;;  %v3977_v22 = vadd.f32 %v3976_v6, %v7005_v12 }
 0x67e   : > { %v3978_v14 = vpop.f32.mrf.mxu1 }
 0x67f   : > { %v4190_v9 = vpack.c.bf16 %v4128_v44, %v4126_v18  ;;  %v3979_v20 = vadd.f32 %v3978_v14, %v7002_v52  ;;  %v4129_v42 = vmax.f32 %v3977_v22, 0.0 }
 0x680   : > { %v3980_v17 = vpop.f32.mrf.mxu1 }
 0x681   : > { %v3981_v19 = vadd.f32 %v3980_v17, %v7005_v12  ;;  %4388 = vmatprep.mubr.bf16.mxu0 %v4190_v9  ;;  %v4130_v21 = vmax.f32 %v3979_v20, 0.0 }
 0x682   : > { %v3982_v23 = vpop.f32.mrf.mxu1  ;;  %4389 = vmatmul.mubr.bf16.vlgmr.msra.gmra.mxu0 %v4189_v56 }
 0x683   : > { %v3983_v16 = vadd.f32 %v3982_v23, %v7002_v52  ;;  %v4131_v24 = vmax.f32 %v3981_v19, 0.0 }
 0x684   : > { %v3986_v8 = vpop.f32.mrf.mxu1 }
 0x685   : > { %v4132_v31 = vmax.f32 %v3983_v16, 0.0  ;;  %v4191_v27 = vpack.c.bf16 %v4131_v24, %v4129_v42  ;;  %v3987_v34 = vadd.f32 %v3986_v8, %v7005_v12 }
 0x686   : > { %v3988_v25 = vpop.f32.mrf.mxu1 }
 0x687   : > { %v4192_v63 = vpack.c.bf16 %v4132_v31, %v4130_v21  ;;  %v3989_v32 = vadd.f32 %v3988_v25, %v7002_v52  ;;  %v4133_v41 = vmax.f32 %v3987_v34, 0.0 }
 0x688   : > { %v3990_v29 = vpop.f32.mrf.mxu1 }
 0x689   : > { %v3991_v33 = vadd.f32 %v3990_v29, %v7005_v12  ;;  %4396 = vmatprep.mubr.bf16.mxu0 %v4192_v63  ;;  %v4134_v60 = vmax.f32 %v3989_v32, 0.0 }
 0x68a   : > { %v3992_v59 = vpop.f32.mrf.mxu1  ;;  %4397 = vmatmul.mubr.bf16.gmra.mxu0 %v4191_v27 }
 0x68b   : > { %v3993_v35 = vadd.f32 %v3992_v59, %v7002_v52  ;;  %v4135_v36 = vmax.f32 %v3991_v33, 0.0 }
 0x68c   : > { %v3996_v38 = vpop.f32.mrf.mxu1 }
 0x68d   : > { %v4136_v5 = vmax.f32 %v3993_v35, 0.0  ;;  %v4193_v45 = vpack.c.bf16 %v4135_v36, %v4133_v41  ;;  %v3997_v46 = vadd.f32 %v3996_v38, %v7005_v12 }
 0x68e   : > { %v3998_v43 = vpop.f32.mrf.mxu1 }
 0x68f   : > { %v4194_v53 = vpack.c.bf16 %v4136_v5, %v4134_v60  ;;  %v3999_v40 = vadd.f32 %v3998_v43, %v7002_v52  ;;  %v4137_v61 = vmax.f32 %v3997_v46, 0.0 }
 0x690   : > { %v4000_v39 = vpop.f32.mrf.mxu1 }
 0x691   : > { %v4001_v4 = vadd.f32 %v4000_v39, %v7005_v12  ;;  %4404 = vmatprep.mubr.bf16.mxu0 %v4194_v53  ;;  %v4138_v26 = vmax.f32 %v3999_v40, 0.0 }
 0x692   : > { %v4002_v47 = vpop.f32.mrf.mxu1  ;;  %4405 = vmatmul.mubr.bf16.gmra.mxu0 %v4193_v45 }
 0x693   : > { %v4003_v50 = vadd.f32 %v4002_v47, %v7002_v52  ;;  %v4139_v15 = vmax.f32 %v4001_v4, 0.0 }
 0x694   : > { %v4006_v54 = vpop.f32.mrf.mxu1 }
 0x695   : > { %v4140_v58 = vmax.f32 %v4003_v50, 0.0  ;;  %v4195_v0 = vpack.c.bf16 %v4139_v15, %v4137_v61  ;;  %v4007_v49 = vadd.f32 %v4006_v54, %v7005_v12 }
 0x696   : > { %v4008_v62 = vpop.f32.mrf.mxu1 }
 0x697   : > { %v4196_v30 = vpack.c.bf16 %v4140_v58, %v4138_v26  ;;  %v4009_v1 = vadd.f32 %v4008_v62, %v7002_v52  ;;  %v4141_v13 = vmax.f32 %v4007_v49, 0.0 }
 0x698   : > { %v4010_v57 = vpop.f32.mrf.mxu1 }
 0x699   : > { %v4011_v28 = vadd.f32 %v4010_v57, %v7005_v12  ;;  %4412 = vmatprep.mubr.bf16.mxu0 %v4196_v30  ;;  %v4142_v7 = vmax.f32 %v4009_v1, 0.0 }
 0x69a   : > { %v4012_v51 = vpop.f32.mrf.mxu1  ;;  %4413 = vmatmul.mubr.bf16.gmra.mxu0 %v4195_v0 }
 0x69b   : > { %v4013_v10 = vadd.f32 %v4012_v51, %v7002_v52  ;;  %v4143_v2 = vmax.f32 %v4011_v28, 0.0 }
 0x69c   : > { %v4016_v3 = vpop.f32.mrf.mxu1 }
 0x69d   : > { %v4144_v37 = vmax.f32 %v4013_v10, 0.0  ;;  %v4197_v6 = vpack.c.bf16 %v4143_v2, %v4141_v13  ;;  %v4017_v14 = vadd.f32 %v4016_v3, %v7005_v12 }
 0x69e   : > { %v4018_v48 = vpop.f32.mrf.mxu1 }
 0x69f   : > { %v4198_v11 = vpack.c.bf16 %v4144_v37, %v4142_v7  ;;  %v4019_v44 = vadd.f32 %v4018_v48, %v7002_v52  ;;  %v4145_v23 = vmax.f32 %v4017_v14, 0.0 }
 0x6a0   : > { %v4020_v18 = vpop.f32.mrf.mxu1 }
 0x6a1   : > { %v4021_v55 = vadd.f32 %v4020_v18, %v7005_v12  ;;  %4420 = vmatprep.mubr.bf16.mxu0 %v4198_v11  ;;  %v4146_v19 = vmax.f32 %v4019_v44, 0.0 }
 0x6a2   : > { %v4022_v9 = vpop.f32.mrf.mxu1  ;;  %4421 = vmatmul.mubr.bf16.gmra.mxu0 %v4197_v6 }
 0x6a3   : > { %v4023_v56 = vadd.f32 %v4022_v9, %v7002_v52  ;;  %v4147_v17 = vmax.f32 %v4021_v55, 0.0 }
 0x6a4   : > { %v4026_v20 = vpop.f32.mrf.mxu1 }
 0x6a5   : > { %v4148_v22 = vmax.f32 %v4023_v56, 0.0  ;;  %v4199_v8 = vpack.c.bf16 %v4147_v17, %v4145_v23  ;;  %v4027_v25 = vadd.f32 %v4026_v20, %v7005_v12 }
 0x6a6   : > { %v4028_v16 = vpop.f32.mrf.mxu1 }
 0x6a7   : > { %v4200_v24 = vpack.c.bf16 %v4148_v22, %v4146_v19  ;;  %v4029_v31 = vadd.f32 %v4028_v16, %v7002_v52  ;;  %v4149_v59 = vmax.f32 %v4027_v25, 0.0 }
 0x6a8   : > { %v4030_v21 = vpop.f32.mrf.mxu1 }
 0x6a9   : > { %v4031_v42 = vadd.f32 %v4030_v21, %v7005_v12  ;;  %4428 = vmatprep.mubr.bf16.mxu0 %v4200_v24  ;;  %v4150_v33 = vmax.f32 %v4029_v31, 0.0 }
 0x6aa   : > { %v4032_v63 = vpop.f32.mrf.mxu1  ;;  %4429 = vmatmul.mubr.bf16.gmra.mxu0 %v4199_v8 }
 0x6ab   : > { %v4033_v27 = vadd.f32 %v4032_v63, %v7002_v52  ;;  %v4151_v29 = vmax.f32 %v4031_v42, 0.0 }
 0x6ac   : > { %v4036_v32 = vpop.f32.mrf.mxu1 }
 0x6ad   : > { %v4152_v34 = vmax.f32 %v4033_v27, 0.0  ;;  %v4201_v38 = vpack.c.bf16 %v4151_v29, %v4149_v59  ;;  %v4037_v43 = vadd.f32 %v4036_v32, %v7005_v12 }
 0x6ae   : > { %v4038_v35 = vpop.f32.mrf.mxu1 }
 0x6af   : > { %v4202_v36 = vpack.c.bf16 %v4152_v34, %v4150_v33  ;;  %v4039_v5 = vadd.f32 %v4038_v35, %v7002_v52  ;;  %v4153_v47 = vmax.f32 %v4037_v43, 0.0 }
 0x6b0   : > { %v4040_v60 = vpop.f32.mrf.mxu1 }
 0x6b1   : > { %v4041_v41 = vadd.f32 %v4040_v60, %v7005_v12  ;;  %4436 = vmatprep.mubr.bf16.mxu0 %v4202_v36  ;;  %v4154_v4 = vmax.f32 %v4039_v5, 0.0 }
 0x6b2   : > { %v4042_v53 = vpop.f32.mrf.mxu1  ;;  %4437 = vmatmul.mubr.bf16.gmra.mxu0 %v4201_v38 }
 0x6b3   : > { %v4043_v45 = vadd.f32 %v4042_v53, %v7002_v52  ;;  %v4155_v39 = vmax.f32 %v4041_v41, 0.0 }
 0x6b4   : > { %v4046_v40 = vpop.f32.mrf.mxu1 }
 0x6b5   : > { %v4156_v46 = vmax.f32 %v4043_v45, 0.0  ;;  %v4203_v54 = vpack.c.bf16 %v4155_v39, %v4153_v47  ;;  %v4047_v62 = vadd.f32 %v4046_v40, %v7005_v12 }
 0x6b6   : > { %v4048_v50 = vpop.f32.mrf.mxu1 }
 0x6b7   : > { %v4204_v15 = vpack.c.bf16 %v4156_v46, %v4154_v4  ;;  %v4049_v58 = vadd.f32 %v4048_v50, %v7002_v52  ;;  %v4157_v51 = vmax.f32 %v4047_v62, 0.0 }
 0x6b8   : > { %v4050_v26 = vpop.f32.mrf.mxu1 }
 0x6b9   : > { %v4051_v61 = vadd.f32 %v4050_v26, %v7005_v12  ;;  %4444 = vmatprep.mubr.bf16.mxu0 %v4204_v15  ;;  %v4158_v28 = vmax.f32 %v4049_v58, 0.0 }
 0x6ba   : > { %v4052_v30 = vpop.f32.mrf.mxu1  ;;  %4445 = vmatmul.mubr.bf16.gmra.mxu0 %v4203_v54 }
 0x6bb   : > { %v4053_v0 = vadd.f32 %v4052_v30, %v7002_v52  ;;  %v4159_v57 = vmax.f32 %v4051_v61, 0.0 }
 0x6bc   : > { %v4056_v1 = vpop.f32.mrf.mxu1 }
 0x6bd   : > { %v4160_v49 = vmax.f32 %v4053_v0, 0.0  ;;  %v4205_v3 = vpack.c.bf16 %v4159_v57, %v4157_v51  ;;  %v4057_v48 = vadd.f32 %v4056_v1, %v7005_v12 }
 0x6be   : > { %v4058_v10 = vpop.f32.mrf.mxu1 }
 0x6bf   : > { %v4206_v2 = vpack.c.bf16 %v4160_v49, %v4158_v28  ;;  %v4059_v37 = vadd.f32 %v4058_v10, %v7002_v52  ;;  %v4161_v9 = vmax.f32 %v4057_v48, 0.0 }
 0x6c0   : > { %v4060_v7 = vpop.f32.mrf.mxu1 }
 0x6c1   : > { %v4061_v13 = vadd.f32 %v4060_v7, %v7005_v12  ;;  %4452 = vmatprep.mubr.bf16.mxu0 %v4206_v2  ;;  %v4162_v55 = vmax.f32 %v4059_v37, 0.0 }
 0x6c2   : > { %v4062_v11 = vpop.f32.mrf.mxu1  ;;  %4453 = vmatmul.mubr.bf16.gmra.mxu0 %v4205_v3 }
 0x6c3   : > { %v4063_v6 = vadd.f32 %v4062_v11, %v7002_v52  ;;  %v4163_v18 = vmax.f32 %v4061_v13, 0.0 }
 0x6c4   : > { %v4066_v44 = vpop.f32.mrf.mxu1 }
 0x6c5   : > { %v4164_v14 = vmax.f32 %v4063_v6, 0.0  ;;  %v4207_v20 = vpack.c.bf16 %v4163_v18, %v4161_v9  ;;  %v4067_v16 = vadd.f32 %v4066_v44, %v7005_v12 }
 0x6c6   : > { %v4068_v56 = vpop.f32.mrf.mxu1 }
 0x6c7   : > { %v4208_v17 = vpack.c.bf16 %v4164_v14, %v4162_v55  ;;  %v4069_v22 = vadd.f32 %v4068_v56, %v7002_v52  ;;  %v4165_v63 = vmax.f32 %v4067_v16, 0.0 }
 0x6c8   : > { %v4070_v19 = vpop.f32.mrf.mxu1 }
 0x6c9   : > { %v4071_v23 = vadd.f32 %v4070_v19, %v7005_v12  ;;  %4460 = vmatprep.mubr.bf16.mxu0 %v4208_v17  ;;  %v4166_v42 = vmax.f32 %v4069_v22, 0.0 }
 0x6ca   : > { %v4072_v24 = vpop.f32.mrf.mxu1  ;;  %4461 = vmatmul.mubr.bf16.gmra.mxu0 %v4207_v20 }
 0x6cb   : > { %v4073_v8 = vadd.f32 %v4072_v24, %v7002_v52  ;;  %v4167_v21 = vmax.f32 %v4071_v23, 0.0 }
 0x6cc   : > { %v4076_v31 = vpop.f32.mrf.mxu1 }
 0x6cd   : > { %v4168_v25 = vmax.f32 %v4073_v8, 0.0  ;;  %v4209_v32 = vpack.c.bf16 %v4167_v21, %v4165_v63  ;;  %v4077_v35 = vadd.f32 %v4076_v31, %v7005_v12 }
 0x6ce   : > { %v4078_v27 = vpop.f32.mrf.mxu1 }
 0x6cf   : > { %v4210_v29 = vpack.c.bf16 %v4168_v25, %v4166_v42  ;;  %v4079_v34 = vadd.f32 %v4078_v27, %v7002_v52  ;;  %v4169_v53 = vmax.f32 %v4077_v35, 0.0 }
 0x6d0   : > { %v4080_v33 = vpop.f32.mrf.mxu1 }
 0x6d1   : > { %v4081_v59 = vadd.f32 %v4080_v33, %v7005_v12  ;;  %4468 = vmatprep.mubr.bf16.mxu0 %v4210_v29  ;;  %v4170_v41 = vmax.f32 %v4079_v34, 0.0 }
 0x6d2   : > { %v4082_v36 = vpop.f32.mrf.mxu1  ;;  %4469 = vmatmul.mubr.bf16.gmra.mxu0 %v4209_v32 }
 0x6d3   : > { %v4083_v38 = vadd.f32 %v4082_v36, %v7002_v52  ;;  %v4171_v60 = vmax.f32 %v4081_v59, 0.0 }
 0x6d4   : > { %v4086_v5 = vpop.f32.mrf.mxu1 }
 0x6d5   : > { %v4172_v43 = vmax.f32 %v4083_v38, 0.0  ;;  %v4211_v40 = vpack.c.bf16 %v4171_v60, %v4169_v53  ;;  %v4087_v50 = vadd.f32 %v4086_v5, %v7005_v12  ;;  %v7075_v5 = vld [vmem:[%s7187_s6] ss:$0 sm:$0xff] }
 0x6d6   : > { %v4088_v45 = vpop.f32.mrf.mxu1 }
 0x6d7   : > { %v4212_v39 = vpack.c.bf16 %v4172_v43, %v4170_v41  ;;  %v4089_v46 = vadd.f32 %v4088_v45, %v7002_v52  ;;  %v4173_v30 = vmax.f32 %v4087_v50, 0.0 }
 0x6d8   : > { %v4090_v4 = vpop.f32.mrf.mxu1 }
 0x6d9   : > { %v4091_v47 = vadd.f32 %v4090_v4, %v7005_v12  ;;  %4476 = vmatprep.mubr.bf16.mxu0 %v4212_v39  ;;  %v4174_v61 = vmax.f32 %v4089_v46, 0.0 }
 0x6da   : > { %v4092_v15 = vpop.f32.mrf.mxu1  ;;  %4477 = vmatmul.mubr.bf16.gmra.mxu0 %v4211_v40 }
 0x6db   : > { %v4093_v54 = vadd.f32 %v4092_v15, %v7002_v52  ;;  %v4175_v26 = vmax.f32 %v4091_v47, 0.0 }
 0x6dc   : > { %v4096_v58 = vpop.f32.mrf.mxu1 }
 0x6dd   : > { %v4176_v62 = vmax.f32 %v4093_v54, 0.0  ;;  %v4213_v1 = vpack.c.bf16 %v4175_v26, %v4173_v30  ;;  %v4097_v10 = vadd.f32 %v4096_v58, %v7005_v12 }
 0x6de   : > { %v4098_v0 = vpop.f32.mrf.mxu1 }
 0x6df   : > { %v4214_v57 = vpack.c.bf16 %v4176_v62, %v4174_v61  ;;  %v4099_v49 = vadd.f32 %v4098_v0, %v7002_v52  ;;  %v4177_v11 = vmax.f32 %v4097_v10, 0.0 }
 0x6e0   : > { %v4100_v28 = vpop.f32.mrf.mxu1 }
 0x6e1   : > { %v4101_v51 = vadd.f32 %v4100_v28, %v7005_v12  ;;  %4484 = vmatprep.mubr.bf16.mxu0 %v4214_v57  ;;  %v4178_v13 = vmax.f32 %v4099_v49, 0.0 }
 0x6e2   : > { %v4102_v2 = vpop.f32.mrf.mxu1  ;;  %4485 = vmatmul.mubr.bf16.gmra.mxu0 %v4213_v1 }
 0x6e3   : > { %v4103_v3 = vadd.f32 %v4102_v2, %v7002_v52  ;;  %v4179_v7 = vmax.f32 %v4101_v51, 0.0 }
 0x6e4   : > { %v4106_v37 = vpop.f32.mrf.mxu1 }
 0x6e5   : > { %v4180_v48 = vmax.f32 %v4103_v3, 0.0  ;;  %v4215_v44 = vpack.c.bf16 %v4179_v7, %v4177_v11  ;;  %v4107_v56 = vadd.f32 %v4106_v37, %v7005_v12 }
 0x6e6   : > { %v4108_v6 = vpop.f32.mrf.mxu1 }
 0x6e7   : > { %v4216_v18 = vpack.c.bf16 %v4180_v48, %v4178_v13  ;;  %v4109_v14 = vadd.f32 %v4108_v6, %v7002_v52  ;;  %v4181_v24 = vmax.f32 %v4107_v56, 0.0 }
 0x6e8   : > { %v4110_v55 = vpop.f32.mrf.mxu1 }
 0x6e9   : > { %v4111_v9 = vadd.f32 %v4110_v55, %v7005_v12  ;;  %4492 = vmatprep.mubr.bf16.mxu0 %v4216_v18  ;;  %v4182_v23 = vmax.f32 %v4109_v14, 0.0 }
 0x6ea   : > { %v4112_v17 = vpop.f32.mrf.mxu1  ;;  %4493 = vmatmul.mubr.bf16.gmra.mxu0 %v4215_v44 }
 0x6eb   : > { %v4113_v20 = vadd.f32 %v4112_v17, %v7002_v52  ;;  %v4183_v19 = vmax.f32 %v4111_v9, 0.0 }
 0x6ec   : > { %v4116_v22 = vpop.f32.mrf.mxu1 }
 0x6ed   : > { %v4184_v16 = vmax.f32 %v4113_v20, 0.0  ;;  %v4217_v31 = vpack.c.bf16 %v4183_v19, %v4181_v24  ;;  %v4117_v27 = vadd.f32 %v4116_v22, %v7005_v12 }
 0x6ee   : > { %v4118_v8 = vpop.f32.mrf.mxu1 }
 0x6ef   : > { %v4218_v21 = vpack.c.bf16 %v4184_v16, %v4182_v23  ;;  %v4119_v25 = vadd.f32 %v4118_v8, %v7002_v52  ;;  %v4185_v35 = vmax.f32 %v4117_v27, 0.0 }
 0x6f0   : > { %v4120_v42 = vpop.f32.mrf.mxu1 }
 0x6f1   : > { %v4121_v63 = vadd.f32 %v4120_v42, %v7005_v12  ;;  %4500 = vmatprep.mubr.bf16.mxu0 %v4218_v21  ;;  %v4186_v34 = vmax.f32 %v4119_v25, 0.0 }
 0x6f2   : > { %v4122_v29 = vpop.f32.mrf.mxu1  ;;  %4501 = vmatmul.mubr.bf16.gmra.mxu0 %v4217_v31 }
 0x6f3   : > { %v4123_v32 = vadd.f32 %v4122_v29, %v7002_v52  ;;  %v4187_v33 = vmax.f32 %v4121_v63, 0.0 }
 0x6f5   : > { %v4188_v59 = vmax.f32 %v4123_v32, 0.0  ;;  %v4219_v38 = vpack.c.bf16 %v4187_v33, %v4185_v35 }
 0x6f7   : > { %v4220_v36 = vpack.c.bf16 %v4188_v59, %v4186_v34 }
 0x6f9   : > { %4508 = vmatprep.mubr.bf16.mxu0 %v4220_v36 }
 0x6fa   : > { %4509 = vmatmul.mubr.bf16.gmra.mxu0 %v4219_v38 }
 0x742   : > { %v5107_v60 = vpop.f32.mrf.mxu0 }
 0x744   : > { %v5108_v12 = vpop.f32.mrf.mxu0 }
 0x745   : > { %v5109_v41 = vadd.f32 %v5108_v12, %v5107_v60 }
 0x746   : > { %v5110_v52 = vpop.f32.mrf.mxu0 }
 0x747   : > { %v4391_v43 = vadd.f32 %v5109_v41, %v7075_v5 }
 0x748   : > { %v5111_v53 = vpop.f32.mrf.mxu0 }
 0x749   : > { %4518 = vst.msk [vmem:[%s7080_s11] sm:$0xff] %vm4517_vm2, %v4391_v43  ;;  %v5112_v45 = vadd.f32 %v5111_v53, %v5110_v52 }
 0x74a   : > { %v5113_v39 = vpop.f32.mrf.mxu0 }
 0x74b   : > { %v4394_v40 = vadd.f32 %v5112_v45, %v7075_v5 }
 0x74c   : > { %v5114_v4 = vpop.f32.mrf.mxu0 }
 0x74d   : > { %4519 = vst.msk [vmem:[%s7080_s11 + $0x8] sm:$0xff] %vm4517_vm2, %v4394_v40  ;;  %v5115_v46 = vadd.f32 %v5114_v4, %v5113_v39 }
 0x74e   : > { %v5116_v47 = vpop.f32.mrf.mxu0 }
 0x74f   : > { %v4399_v50 = vadd.f32 %v5115_v46, %v7075_v5 }
 0x750   : > { %v5117_v15 = vpop.f32.mrf.mxu0 }
 0x751   : > { %4520 = vst.msk [vmem:[%s7080_s11 + $0x10] sm:$0xff] %vm4517_vm2, %v4399_v50  ;;  %v5118_v54 = vadd.f32 %v5117_v15, %v5116_v47 }
 0x752   : > { %v5119_v26 = vpop.f32.mrf.mxu0 }
 0x753   : > { %v4402_v58 = vadd.f32 %v5118_v54, %v7075_v5 }
 0x754   : > { %v5120_v61 = vpop.f32.mrf.mxu0 }
 0x755   : > { %4521 = vst.msk [vmem:[%s7080_s11 + $0x18] sm:$0xff] %vm4517_vm2, %v4402_v58  ;;  %v5121_v62 = vadd.f32 %v5120_v61, %v5119_v26 }
 0x756   : > { %v5122_v30 = vpop.f32.mrf.mxu0 }
 0x757   : > { %v4407_v0 = vadd.f32 %v5121_v62, %v7075_v5 }
 0x758   : > { %v5123_v57 = vpop.f32.mrf.mxu0 }
 0x759   : > { %4522 = vst.msk [vmem:[%s7080_s11 + $0x20] sm:$0xff] %vm4517_vm2, %v4407_v0  ;;  %v5124_v1 = vadd.f32 %v5123_v57, %v5122_v30 }
 0x75a   : > { %v5125_v28 = vpop.f32.mrf.mxu0 }
 0x75b   : > { %v4410_v49 = vadd.f32 %v5124_v1, %v7075_v5 }
 0x75c   : > { %v5126_v51 = vpop.f32.mrf.mxu0 }
 0x75d   : > { %4523 = vst.msk [vmem:[%s7080_s11 + $0x28] sm:$0xff] %vm4517_vm2, %v4410_v49  ;;  %v5127_v10 = vadd.f32 %v5126_v51, %v5125_v28 }
 0x75e   : > { %v5128_v2 = vpop.f32.mrf.mxu0 }
 0x75f   : > { %v4415_v3 = vadd.f32 %v5127_v10, %v7075_v5 }
 0x760   : > { %v5129_v7 = vpop.f32.mrf.mxu0 }
 0x761   : > { %4524 = vst.msk [vmem:[%s7080_s11 + $0x30] sm:$0xff] %vm4517_vm2, %v4415_v3  ;;  %v5130_v37 = vadd.f32 %v5129_v7, %v5128_v2 }
 0x762   : > { %v5131_v13 = vpop.f32.mrf.mxu0 }
 0x763   : > { %v4418_v48 = vadd.f32 %v5130_v37, %v7075_v5 }
 0x764   : > { %v5132_v11 = vpop.f32.mrf.mxu0 }
 0x765   : > { %4525 = vst.msk [vmem:[%s7080_s11 + $0x38] sm:$0xff] %vm4517_vm2, %v4418_v48  ;;  %v5133_v6 = vadd.f32 %v5132_v11, %v5131_v13 }
 0x766   : > { %v5134_v18 = vpop.f32.mrf.mxu0 }
 0x767   : > { %v4423_v44 = vadd.f32 %v5133_v6, %v7075_v5 }
 0x768   : > { %v5135_v55 = vpop.f32.mrf.mxu0 }
 0x769   : > { %4526 = vst.msk [vmem:[%s7080_s11 + $0x40] sm:$0xff] %vm4517_vm2, %v4423_v44  ;;  %v5136_v14 = vadd.f32 %v5135_v55, %v5134_v18 }
 0x76a   : > { %v5137_v9 = vpop.f32.mrf.mxu0 }
 0x76b   : > { %v4426_v56 = vadd.f32 %v5136_v14, %v7075_v5 }
 0x76c   : > { %v5138_v17 = vpop.f32.mrf.mxu0 }
 0x76d   : > { %4527 = vst.msk [vmem:[%s7080_s11 + $0x48] sm:$0xff] %vm4517_vm2, %v4426_v56  ;;  %v5139_v20 = vadd.f32 %v5138_v17, %v5137_v9 }
 0x76e   : > { %v5140_v19 = vpop.f32.mrf.mxu0 }
 0x76f   : > { %v4431_v22 = vadd.f32 %v5139_v20, %v7075_v5 }
 0x770   : > { %v5141_v23 = vpop.f32.mrf.mxu0 }
 0x771   : > { %4528 = vst.msk [vmem:[%s7080_s11 + $0x50] sm:$0xff] %vm4517_vm2, %v4431_v22  ;;  %v5142_v16 = vadd.f32 %v5141_v23, %v5140_v19 }
 0x772   : > { %v5143_v24 = vpop.f32.mrf.mxu0 }
 0x773   : > { %v4434_v8 = vadd.f32 %v5142_v16, %v7075_v5 }
 0x774   : > { %v5144_v21 = vpop.f32.mrf.mxu0 }
 0x775   : > { %4529 = vst.msk [vmem:[%s7080_s11 + $0x58] sm:$0xff] %vm4517_vm2, %v4434_v8  ;;  %v5145_v31 = vadd.f32 %v5144_v21, %v5143_v24 }
 0x776   : > { %v5146_v42 = vpop.f32.mrf.mxu0 }
 0x777   : > { %v4439_v25 = vadd.f32 %v5145_v31, %v7075_v5 }
 0x778   : > { %v5147_v63 = vpop.f32.mrf.mxu0 }
 0x779   : > { %4530 = vst.msk [vmem:[%s7080_s11 + $0x60] sm:$0xff] %vm4517_vm2, %v4439_v25  ;;  %v5148_v27 = vadd.f32 %v5147_v63, %v5146_v42 }
 0x77a   : > { %v5149_v29 = vpop.f32.mrf.mxu0 }
 0x77b   : > { %v4442_v32 = vadd.f32 %v5148_v27, %v7075_v5 }
 0x77c   : > { %v5150_v33 = vpop.f32.mrf.mxu0 }
 0x77d   : > { %4531 = vst.msk [vmem:[%s7080_s11 + $0x68] sm:$0xff] %vm4517_vm2, %v4442_v32  ;;  %v5151_v34 = vadd.f32 %v5150_v33, %v5149_v29 }
 0x77e   : > { %v5152_v59 = vpop.f32.mrf.mxu0 }
 0x77f   : > { %v4447_v35 = vadd.f32 %v5151_v34, %v7075_v5 }
 0x780   : > { %v5153_v36 = vpop.f32.mrf.mxu0 }
 0x781   : > { %4532 = vst.msk [vmem:[%s7080_s11 + $0x70] sm:$0xff] %vm4517_vm2, %v4447_v35  ;;  %v5154_v38 = vadd.f32 %v5153_v36, %v5152_v59 }
 0x782   : > { %v5155_v60 = vpop.f32.mrf.mxu0 }
 0x783   : > { %v4450_v12 = vadd.f32 %v5154_v38, %v7075_v5 }
 0x784   : > { %v5156_v41 = vpop.f32.mrf.mxu0 }
 0x785   : > { %4533 = vst.msk [vmem:[%s7080_s11 + $0x78] sm:$0xff] %vm4517_vm2, %v4450_v12  ;;  %v5157_v52 = vadd.f32 %v5156_v41, %v5155_v60 }
 0x786   : > { %v5158_v43 = vpop.f32.mrf.mxu0 }
 0x787   : > { %v4455_v53 = vadd.f32 %v5157_v52, %v7075_v5 }
 0x788   : > { %v5159_v45 = vpop.f32.mrf.mxu0 }
 0x789   : > { %4534 = vst.msk [vmem:[%s7080_s11 + $0x80] sm:$0xff] %vm4517_vm2, %v4455_v53  ;;  %v5160_v39 = vadd.f32 %v5159_v45, %v5158_v43 }
 0x78a   : > { %v5161_v40 = vpop.f32.mrf.mxu0 }
 0x78b   : > { %v4458_v4 = vadd.f32 %v5160_v39, %v7075_v5 }
 0x78c   : > { %v5162_v46 = vpop.f32.mrf.mxu0 }
 0x78d   : > { %4535 = vst.msk [vmem:[%s7080_s11 + $0x88] sm:$0xff] %vm4517_vm2, %v4458_v4  ;;  %v5163_v47 = vadd.f32 %v5162_v46, %v5161_v40 }
 0x78e   : > { %v5164_v50 = vpop.f32.mrf.mxu0 }
 0x78f   : > { %v4463_v15 = vadd.f32 %v5163_v47, %v7075_v5 }
 0x790   : > { %v5165_v54 = vpop.f32.mrf.mxu0 }
 0x791   : > { %4536 = vst.msk [vmem:[%s7080_s11 + $0x90] sm:$0xff] %vm4517_vm2, %v4463_v15  ;;  %v5166_v26 = vadd.f32 %v5165_v54, %v5164_v50 }
 0x792   : > { %v5167_v58 = vpop.f32.mrf.mxu0 }
 0x793   : > { %v4466_v61 = vadd.f32 %v5166_v26, %v7075_v5 }
 0x794   : > { %v5168_v62 = vpop.f32.mrf.mxu0 }
 0x795   : > { %4537 = vst.msk [vmem:[%s7080_s11 + $0x98] sm:$0xff] %vm4517_vm2, %v4466_v61  ;;  %v5169_v30 = vadd.f32 %v5168_v62, %v5167_v58 }
 0x796   : > { %v5170_v0 = vpop.f32.mrf.mxu0 }
 0x797   : > { %v4471_v57 = vadd.f32 %v5169_v30, %v7075_v5 }
 0x798   : > { %v5171_v1 = vpop.f32.mrf.mxu0 }
 0x799   : > { %4538 = vst.msk [vmem:[%s7080_s11 + $0xa0] sm:$0xff] %vm4517_vm2, %v4471_v57  ;;  %v5172_v28 = vadd.f32 %v5171_v1, %v5170_v0 }
 0x79a   : > { %v5173_v49 = vpop.f32.mrf.mxu0 }
 0x79b   : > { %v4474_v51 = vadd.f32 %v5172_v28, %v7075_v5 }
 0x79c   : > { %v5174_v10 = vpop.f32.mrf.mxu0 }
 0x79d   : > { %4539 = vst.msk [vmem:[%s7080_s11 + $0xa8] sm:$0xff] %vm4517_vm2, %v4474_v51  ;;  %v5175_v2 = vadd.f32 %v5174_v10, %v5173_v49 }
 0x79e   : > { %v5176_v3 = vpop.f32.mrf.mxu0 }
 0x79f   : > { %v4479_v7 = vadd.f32 %v5175_v2, %v7075_v5 }
 0x7a0   : > { %v5177_v37 = vpop.f32.mrf.mxu0 }
 0x7a1   : > { %4540 = vst.msk [vmem:[%s7080_s11 + $0xb0] sm:$0xff] %vm4517_vm2, %v4479_v7  ;;  %v5178_v13 = vadd.f32 %v5177_v37, %v5176_v3 }
 0x7a2   : > { %v5179_v48 = vpop.f32.mrf.mxu0 }
 0x7a3   : > { %v4482_v11 = vadd.f32 %v5178_v13, %v7075_v5 }
 0x7a4   : > { %v5180_v6 = vpop.f32.mrf.mxu0 }
 0x7a5   : > { %4541 = vst.msk [vmem:[%s7080_s11 + $0xb8] sm:$0xff] %vm4517_vm2, %v4482_v11  ;;  %v5181_v18 = vadd.f32 %v5180_v6, %v5179_v48 }
 0x7a6   : > { %v5182_v44 = vpop.f32.mrf.mxu0 }
 0x7a7   : > { %v4487_v55 = vadd.f32 %v5181_v18, %v7075_v5 }
 0x7a8   : > { %v5183_v14 = vpop.f32.mrf.mxu0 }
 0x7a9   : > { %4542 = vst.msk [vmem:[%s7080_s11 + $0xc0] sm:$0xff] %vm4517_vm2, %v4487_v55  ;;  %v5184_v9 = vadd.f32 %v5183_v14, %v5182_v44 }
 0x7aa   : > { %v5185_v56 = vpop.f32.mrf.mxu0 }
 0x7ab   : > { %v4490_v17 = vadd.f32 %v5184_v9, %v7075_v5 }
 0x7ac   : > { %v5186_v20 = vpop.f32.mrf.mxu0 }
 0x7ad   : > { %4543 = vst.msk [vmem:[%s7080_s11 + $0xc8] sm:$0xff] %vm4517_vm2, %v4490_v17  ;;  %v5187_v19 = vadd.f32 %v5186_v20, %v5185_v56 }
 0x7ae   : > { %v5188_v22 = vpop.f32.mrf.mxu0 }
 0x7af   : > { %v4495_v23 = vadd.f32 %v5187_v19, %v7075_v5 }
 0x7b0   : > { %v5189_v16 = vpop.f32.mrf.mxu0 }
 0x7b1   : > { %4544 = vst.msk [vmem:[%s7080_s11 + $0xd0] sm:$0xff] %vm4517_vm2, %v4495_v23  ;;  %v5190_v24 = vadd.f32 %v5189_v16, %v5188_v22 }
 0x7b2   : > { %v5191_v8 = vpop.f32.mrf.mxu0 }
 0x7b3   : > { %v4498_v21 = vadd.f32 %v5190_v24, %v7075_v5 }
 0x7b4   : > { %v5192_v31 = vpop.f32.mrf.mxu0 }
 0x7b5   : > { %4545 = vst.msk [vmem:[%s7080_s11 + $0xd8] sm:$0xff] %vm4517_vm2, %v4498_v21  ;;  %v5193_v42 = vadd.f32 %v5192_v31, %v5191_v8 }
 0x7b6   : > { %v5194_v25 = vpop.f32.mrf.mxu0 }
 0x7b7   : > { %v4503_v63 = vadd.f32 %v5193_v42, %v7075_v5 }
 0x7b8   : > { %v5195_v27 = vpop.f32.mrf.mxu0 }
 0x7b9   : > { %4546 = vst.msk [vmem:[%s7080_s11 + $0xe0] sm:$0xff] %vm4517_vm2, %v4503_v63  ;;  %v5196_v29 = vadd.f32 %v5195_v27, %v5194_v25 }
 0x7ba   : > { %v5197_v32 = vpop.f32.mrf.mxu0 }
 0x7bb   : > { %v4506_v33 = vadd.f32 %v5196_v29, %v7075_v5 }
 0x7bc   : > { %v5198_v34 = vpop.f32.mrf.mxu0 }
 0x7bd   : > { %4547 = vst.msk [vmem:[%s7080_s11 + $0xe8] sm:$0xff] %vm4517_vm2, %v4506_v33  ;;  %v5199_v59 = vadd.f32 %v5198_v34, %v5197_v32 }
 0x7be   : > { %v5200_v35 = vpop.f32.mrf.mxu0 }
 0x7bf   : > { %v4511_v36 = vadd.f32 %v5199_v59, %v7075_v5 }
 0x7c0   : > { %v5201_v38 = vpop.f32.mrf.mxu0 }
 0x7c1   : > { %4548 = vst.msk [vmem:[%s7080_s11 + $0xf0] sm:$0xff] %vm4517_vm2, %v4511_v36  ;;  %v5202_v60 = vadd.f32 %v5201_v38, %v5200_v35 }
 0x7c3   : > { %v4514_v12 = vadd.f32 %v5202_v60, %v7075_v5 }
 0x7c5   : > { %4549 = vst.msk [vmem:[%s7080_s11 + $0xf8] sm:$0xff] %vm4517_vm2, %v4514_v12 }
 0x7c6 PF: > { %s17_s24 = sadd.s32 1, %s5590_s24  }
 0x7c7   : > { %p14_p4 = scmp.ge.s32.totalorder %s17_s24, 4  }
 0x7c9   :  { %16 = sbr.rel (!%p14_p4) target bundleno = 1 (0x1), region = 90 }

</bundles_post_ra>
